<compile_context>
chip_gen: v6e
topology: v6e:2x2x1
jax: 0.10.0
libtpu: 0.0.40
codegen_flags: <defaults>
</compile_context>

<pallas_src>
import numpy as np
import jax
import jax.numpy as jnp
from jax import lax
from jax.experimental import pallas as pl
from jax.experimental.pallas import tpu as pltpu


# ---------------------------------------------------------------------------
# Reference GRU cell (PyTorch nn.GRUCell semantics, gate order r, z, n).
# Used only by the pure-JAX reference below.
# w_ih: (in, 3H) already transposed, w_hh: (H, 3H), b_*: (1, 3H).
# ---------------------------------------------------------------------------
def _gru(x, h, w_ih, w_hh, b_ih, b_hh):
    H = h.shape[-1]
    gx = jnp.dot(x, w_ih, preferred_element_type=jnp.float32) + b_ih
    gh = jnp.dot(h, w_hh, preferred_element_type=jnp.float32) + b_hh
    r = jax.nn.sigmoid(gx[:, 0:H] + gh[:, 0:H])
    z = jax.nn.sigmoid(gx[:, H:2 * H] + gh[:, H:2 * H])
    n = jnp.tanh(gx[:, 2 * H:3 * H] + r * gh[:, 2 * H:3 * H])
    return (1.0 - z) * n + z * h


# ---------------------------------------------------------------------------
# Pallas kernel.
#
# Fused-gate column layout (4H = 128 lanes): [r_pre | z_pre | gx_n+b_in | gh_n+b_hn]
#   wbot (hidden side): [W_hr | W_hz |  0  | W_hn]
#   wtop (input  side): [W_ir | W_iz | W_in |  0 ]
#   bias fused        : [b_ir+b_hr | b_iz+b_hz | b_in | b_hn]
# ---------------------------------------------------------------------------
def fs_rnn_kernel(gx_ref, wbot_ref, wtop_ref, b_ref, wo_ref, bo_ref, out_ref,
                  hf_ref, hs_ref, ystk_ref):
    c = pl.program_id(0)
    H = hf_ref.shape[-1]
    T = gx_ref.shape[0]
    GROUP = 8

    @pl.when(c == 0)
    def _():
        # hiddens_f / hiddens_s start as None in torch -> GRUCell uses zeros.
        hf_ref[...] = jnp.zeros_like(hf_ref)
        hs_ref[...] = jnp.zeros_like(hs_ref)

    # Load the (small) weights once per chunk; the inner loop closes over values.
    w0_b = wbot_ref[0]                                 # fast0 hidden-side (x side hoisted)
    ws_t, ws_b, bs = wtop_ref[0], wbot_ref[1], b_ref[0:1, :]     # slow cell
    wf1_t, wf1_b, bf1 = wtop_ref[1], wbot_ref[2], b_ref[1:2, :]  # fast cell 1
    wz2, bz2 = wbot_ref[3], b_ref[2:3, :]              # fast cell 2 (zero input)
    wz3, bz3 = wbot_ref[4], b_ref[3:4, :]              # fast cell 3 (zero input)

    def gates(G, h):
        # One EUP sigmoid push covers both r and z.
        rz = jax.nn.sigmoid(G[:, 0:2 * H])
        r = rz[:, 0:H]
        z = rz[:, H:2 * H]
        n = jnp.tanh(G[:, 2 * H:3 * H] + r * G[:, 3 * H:4 * H])
        return (1.0 - z) * n + z * h

    def gru_hx(inp, h, wt, wb, b):
        # Two small dots summed -- no per-step lane concatenate.
        G = (jnp.dot(inp, wt, preferred_element_type=jnp.float32)
             + jnp.dot(h, wb, preferred_element_type=jnp.float32) + b)
        return gates(G, h)

    def gru_h(h, wb, b):
        # x == 0  =>  gx == b_ih exactly (folded into b); hidden side only.
        G = jnp.dot(h, wb, preferred_element_type=jnp.float32) + b
        return gates(G, h)

    def group_step(g, carry):
        h_f, h_s = carry
        base = pl.multiple_of(g * GROUP, GROUP)
        rows = []
        for j in range(GROUP):                              # fully unrolled
            gx_t = gx_ref[pl.ds(base + j, 1), :]             # (1, 4H) lane-dense row
            # fast cell 0: x-side projection precomputed, one hidden dot left.
            h_f = gates(gx_t + jnp.dot(h_f, w0_b,
                                       preferred_element_type=jnp.float32), h_f)
            h_s = gru_hx(h_f, h_s, ws_t, ws_b, bs)           # slow cell
            h_f = gru_hx(h_s, h_f, wf1_t, wf1_b, bf1)        # fast cell 1
            h_f = gru_h(h_f, wz2, bz2)                       # fast cell 2
            h_f = gru_h(h_f, wz3, bz3)                       # fast cell 3
            rows.append(h_f)
        # One sublane-aligned (8, H) store per group instead of 8 masked stores.
        ystk_ref[pl.ds(base, GROUP), :] = jnp.concatenate(rows, axis=0)
        return (h_f, h_s)

    h_f, h_s = lax.fori_loop(0, T // GROUP, group_step,
                             (hf_ref[...], hs_ref[...]))
    # Write hidden-state carry back to scratch once per chunk.
    hf_ref[...] = h_f
    hs_ref[...] = h_s

    # One lane-dense output projection + store per chunk:
    # (n_out, H) @ (H, T) -> (n_out, T), time in the lane dimension.
    y = jnp.tanh(jnp.dot(wo_ref[...], ystk_ref[...].T,
                         preferred_element_type=jnp.float32) + bo_ref[...])
    out_ref[...] = y.astype(out_ref.dtype)


# ---------------------------------------------------------------------------
# Weight packing into the fused 4H-column layout described above.
# ---------------------------------------------------------------------------
def _pack_params(p):
    H = p['w_hh0'].shape[0]
    f32 = jnp.float32

    def top(w_ih):                                    # [W_ir | W_iz | W_in | 0]
        I = w_ih.shape[0]
        return jnp.concatenate([w_ih, jnp.zeros((I, H), f32)], axis=1)

    def bot(w_hh):                                    # [W_hr | W_hz | 0 | W_hn]
        return jnp.concatenate([w_hh[:, 0:2 * H], jnp.zeros((H, H), f32),
                                w_hh[:, 2 * H:3 * H]], axis=1)

    def bias(b_ih, b_hh):                             # [b_r sum | b_z sum | b_in | b_hn]
        return jnp.concatenate([b_ih[:, 0:2 * H] + b_hh[:, 0:2 * H],
                                b_ih[:, 2 * H:3 * H], b_hh[:, 2 * H:3 * H]], axis=1)

    # fast cell 0: the x side (w_ih0, full bias) is hoisted into the wrapper.
    w_ih0 = top(p['w_ih0'])                                           # (n_input, 4H)
    b0 = bias(p['b_ih0'], p['b_hh0'])                                 # (1, 4H)
    wbot = jnp.stack([bot(p['w_hh0']),        # fast0
                      bot(p['w_hh_s'][0]),    # slow
                      bot(p['w_hh_s'][1]),    # fast1
                      bot(p['w_hh_s'][2]),    # fast2
                      bot(p['w_hh_s'][3])],   # fast3
                     axis=0)                                          # (5, H, 4H)
    wtop = jnp.stack([top(p['w_ih_s'][0]),    # slow  (input = h_f)
                      top(p['w_ih_s'][1])],   # fast1 (input = h_s)
                     axis=0)                                          # (2, H, 4H)
    b = jnp.concatenate([bias(p['b_ih_s'][0:1], p['b_hh_s'][0:1]),
                         bias(p['b_ih_s'][1:2], p['b_hh_s'][1:2]),
                         bias(p['b_ih_s'][2:3], p['b_hh_s'][2:3]),
                         bias(p['b_ih_s'][3:4], p['b_hh_s'][3:4])],
                        axis=0)                                       # (4, 4H)
    return dict(w_ih0=w_ih0, b0=b0, wbot=wbot, wtop=wtop, b=b,
                wo=p['w_o'].T,                                        # (n_output, H)
                bo=p['b_o'].T)                                        # (n_output, 1)


# ---------------------------------------------------------------------------
# Wrapper
# ---------------------------------------------------------------------------
def fs_rnn_forward(x_bsi, params):
    """x_bsi: (batch, seq, n_input) like the torch module. Returns (n_output, seq)."""
    x = jnp.transpose(x_bsi, (1, 0, 2)).astype(jnp.float32)   # (seq, batch, n_input)
    seq, batch, n_input = x.shape
    H = params['w_hh0'].shape[0]
    n_output = params['w_o'].shape[1]
    fp = _pack_params(params)

    # Only batch row 0 ever reaches the output (torch uses h_f[0]; GRU batch rows
    # evolve independently) -> drop dead batch rows, keep clean 2-D blocks.
    x0 = x[:, 0, :]                                            # (seq, n_input)

    # Time-chunking: lane-dense (n_out, T) output slabs, T a multiple of 8.
    T = (-(-seq // 8) * 8) if seq <= 128 else 128
    n_chunks = -(-seq // T)
    seq_pad = n_chunks * T
    if seq_pad != seq:
        x0 = jnp.pad(x0, ((0, seq_pad - seq), (0, 0)))

    # Hoist fast-cell-0's input projection out of the recurrence: one
    # (seq_pad, n_input) @ (n_input, 4H) matmul with all fast0 biases folded in.
    gx = jnp.dot(x0, fp['w_ih0'], preferred_element_type=jnp.float32) + fp['b0']

    grid_spec = pltpu.PrefetchScalarGridSpec(
        num_scalar_prefetch=0,
        grid=(n_chunks,),
        in_specs=[
            pl.BlockSpec((T, 4 * H), lambda c: (c, 0)),            # GX chunk (lane-dense)
            pl.BlockSpec((5, H, 4 * H), lambda c: (0, 0, 0)),      # hidden-side weights
            pl.BlockSpec((2, H, 4 * H), lambda c: (0, 0, 0)),      # input-side weights
            pl.BlockSpec((4, 4 * H), lambda c: (0, 0)),            # fused biases
            pl.BlockSpec((n_output, H), lambda c: (0, 0)),         # h2o1 weight
            pl.BlockSpec((n_output, 1), lambda c: (0, 0)),         # h2o1 bias
        ],
        out_specs=pl.BlockSpec((n_output, T), lambda c: (0, c)),   # time in lanes
        scratch_shapes=[pltpu.VMEM((1, H), jnp.float32),           # h_f carry (row 0)
                        pltpu.VMEM((1, H), jnp.float32),           # h_s carry (row 0)
                        pltpu.VMEM((T, H), jnp.float32)],          # stacked h_f rows
    )

    out = pl.pallas_call(
        fs_rnn_kernel,
        out_shape=jax.ShapeDtypeStruct((n_output, seq_pad), jnp.float32),
        grid_spec=grid_spec,
        compiler_params=pltpu.CompilerParams(dimension_semantics=("arbitrary",)),
    )(gx, fp['wbot'], fp['wtop'], fp['b'], fp['wo'], fp['bo'])

    # torch: output_t = tanh(h2o1(h_f[0])); torch.stack(outputs, 1) -> (n_output, seq).
    # TODO(synk): the original `.squeeze(2)` is invalid on a 2-D tensor; treated as a no-op.
    return out[:, :seq]


# ---------------------------------------------------------------------------
# Pure-JAX reference of FS_RNN.forward (for correctness check)
# ---------------------------------------------------------------------------
def fs_rnn_reference(x_bsi, params):
    x = jnp.transpose(x_bsi, (1, 0, 2)).astype(jnp.float32)
    seq, batch, _ = x.shape
    H = params['w_hh0'].shape[0]
    h_f = jnp.zeros((batch, H), jnp.float32)
    h_s = jnp.zeros((batch, H), jnp.float32)
    outs = []
    for t in range(seq):
        h_f = _gru(x[t], h_f, params['w_ih0'], params['w_hh0'],
                   params['b_ih0'], params['b_hh0'])
        h_s = _gru(h_f, h_s, params['w_ih_s'][0], params['w_hh_s'][0],
                   params['b_ih_s'][0:1], params['b_hh_s'][0:1])
        h_f = _gru(h_s, h_f, params['w_ih_s'][1], params['w_hh_s'][1],
                   params['b_ih_s'][1:2], params['b_hh_s'][1:2])
        z = jnp.zeros_like(h_f)
        h_f = _gru(z, h_f, params['w_ih_s'][2], params['w_hh_s'][2],
                   params['b_ih_s'][2:3], params['b_hh_s'][2:3])
        h_f = _gru(z, h_f, params['w_ih_s'][3], params['w_hh_s'][3],
                   params['b_ih_s'][3:4], params['b_hh_s'][3:4])
        y = jnp.tanh(h_f[0] @ params['w_o'] + params['b_o'][0])
        outs.append(y)
    return jnp.stack(outs, axis=1)   # (n_output, seq)


def init_params(key, n_input, n_hidden, n_output, k=4):
    """Deterministic init mimicking torch's U(-1/sqrt(H), 1/sqrt(H))."""
    H = n_hidden
    bound = 1.0 / float(np.sqrt(H))

    def u(k_, shape):
        return jax.random.uniform(k_, shape, jnp.float32, -bound, bound)

    keys = jax.random.split(key, 10)
    p = {}
    # fast cell 0: n_input -> H (weights stored transposed for x @ W)
    p['w_ih0'] = u(keys[0], (n_input, 3 * H))
    p['w_hh0'] = u(keys[1], (H, 3 * H))
    p['b_ih0'] = u(keys[2], (1, 3 * H))
    p['b_hh0'] = u(keys[3], (1, 3 * H))
    # stacked H -> H GRU cells: index 0 = slow cell, 1..3 = fast cells 1..3
    p['w_ih_s'] = u(keys[4], (4, H, 3 * H))
    p['w_hh_s'] = u(keys[5], (4, H, 3 * H))
    p['b_ih_s'] = u(keys[6], (4, 3 * H))
    p['b_hh_s'] = u(keys[7], (4, 3 * H))
    # h2o1 linear (H -> n_output), stored transposed
    p['w_o'] = u(keys[8], (H, n_output))
    p['b_o'] = u(keys[9], (1, n_output))
    # NOTE: h2o2 and self.W in the torch module are unused by forward; omitted.
    return p


if __name__ == "__main__":
    batch, seq, n_input, n_hidden, n_output = 2, 8, 48, 32, 4
    key = jax.random.PRNGKey(0)
    kx, kp = jax.random.split(key)
    x = jax.random.normal(kx, (batch, seq, n_input), jnp.float32)
    params = init_params(kp, n_input, n_hidden, n_output, k=4)

    out = fs_rnn_forward(x, params)
    out = jax.block_until_ready(out)

    ref = fs_rnn_reference(x, params)
    assert out.shape == (n_output, seq), out.shape
    np.testing.assert_allclose(np.asarray(out), np.asarray(ref), rtol=1e-3, atol=1e-3)
    print("KERNEL_OK")
</pallas_src>

<mosaic_0001>
module attributes {stable_mosaic.version = 11 : i64} {
  func.func @fs_rnn_kernel(%arg0: i32, %arg1: memref<8x128xf32, #tpu.memory_space<vmem>>, %arg2: memref<5x32x128xf32, #tpu.memory_space<vmem>>, %arg3: memref<2x32x128xf32, #tpu.memory_space<vmem>>, %arg4: memref<4x128xf32, #tpu.memory_space<vmem>>, %arg5: memref<4x32xf32, #tpu.memory_space<vmem>>, %arg6: memref<4x1xf32, #tpu.memory_space<vmem>>, %arg7: memref<4x8xf32, #tpu.memory_space<vmem>>, %arg8: memref<1x32xf32, #tpu.memory_space<vmem>>, %arg9: memref<1x32xf32, #tpu.memory_space<vmem>>, %arg10: memref<8x32xf32, #tpu.memory_space<vmem>>) attributes {dimension_semantics = [#tpu.dimension_semantics<arbitrary>], iteration_bounds = array<i64: 1>, scalar_prefetch = 0 : i64, scratch_operands = 3 : i64, tpu.core_type = #tpu.core_type<tc>, window_params = [{transform_indices = @transform_0, window_bounds = array<i64: 8, 128>}, {pipeline_mode = #tpu.pipeline_mode<synchronous>, transform_indices = @transform_1, window_bounds = array<i64: 5, 32, 128>}, {pipeline_mode = #tpu.pipeline_mode<synchronous>, transform_indices = @transform_2, window_bounds = array<i64: 2, 32, 128>}, {pipeline_mode = #tpu.pipeline_mode<synchronous>, transform_indices = @transform_3, window_bounds = array<i64: 4, 128>}, {pipeline_mode = #tpu.pipeline_mode<synchronous>, transform_indices = @transform_4, window_bounds = array<i64: 4, 32>}, {pipeline_mode = #tpu.pipeline_mode<synchronous>, transform_indices = @transform_5, window_bounds = array<i64: 4, 1>}, {transform_indices = @transform_6, window_bounds = array<i64: 4, 8>}]} {
    %c0_i32 = arith.constant 0 : i32
    %0 = arith.cmpi eq, %arg0, %c0_i32 : i32
    %1 = arith.extui %0 : i1 to i32
    %c0_i32_0 = arith.constant 0 : i32
    %2 = arith.cmpi ne, %1, %c0_i32_0 : i32
    scf.if %2 {
      %cst_189 = arith.constant 0.000000e+00 : f32
      %895 = vector.broadcast %cst_189 : f32 to vector<1x32xf32>
      %c0_190 = arith.constant 0 : index
      %c0_191 = arith.constant 0 : index
      %896 = vector.load %arg8[%c0_190, %c0_191] : memref<1x32xf32, #tpu.memory_space<vmem>>, vector<1x32xf32>
      tpu.vector_store %arg8[%c0_190, %c0_191], %895 {strides = array<i32>} : memref<1x32xf32, #tpu.memory_space<vmem>>, vector<1x32xf32>,
      %cst_192 = arith.constant 0.000000e+00 : f32
      %897 = vector.broadcast %cst_192 : f32 to vector<1x32xf32>
      %c0_193 = arith.constant 0 : index
      %c0_194 = arith.constant 0 : index
      %898 = vector.load %arg9[%c0_193, %c0_194] : memref<1x32xf32, #tpu.memory_space<vmem>>, vector<1x32xf32>
      tpu.vector_store %arg9[%c0_193, %c0_194], %897 {strides = array<i32>} : memref<1x32xf32, #tpu.memory_space<vmem>>, vector<1x32xf32>,
    } else {
    }
    %c0 = arith.constant 0 : index
    %c0_1 = arith.constant 0 : index
    %c0_2 = arith.constant 0 : index
    %3 = vector.load %arg2[%c0, %c0_1, %c0_2] : memref<5x32x128xf32, #tpu.memory_space<vmem>>, vector<1x32x128xf32>
    %4 = vector.shape_cast %3 : vector<1x32x128xf32> to vector<32x128xf32>
    %c0_3 = arith.constant 0 : index
    %c0_4 = arith.constant 0 : index
    %c0_5 = arith.constant 0 : index
    %5 = vector.load %arg3[%c0_3, %c0_4, %c0_5] : memref<2x32x128xf32, #tpu.memory_space<vmem>>, vector<1x32x128xf32>
    %6 = vector.shape_cast %5 : vector<1x32x128xf32> to vector<32x128xf32>
    %c1 = arith.constant 1 : index
    %c0_6 = arith.constant 0 : index
    %c0_7 = arith.constant 0 : index
    %7 = vector.load %arg2[%c1, %c0_6, %c0_7] : memref<5x32x128xf32, #tpu.memory_space<vmem>>, vector<1x32x128xf32>
    %8 = vector.shape_cast %7 : vector<1x32x128xf32> to vector<32x128xf32>
    %c0_8 = arith.constant 0 : index
    %c0_9 = arith.constant 0 : index
    %9 = vector.load %arg4[%c0_8, %c0_9] : memref<4x128xf32, #tpu.memory_space<vmem>>, vector<1x128xf32>
    %c1_10 = arith.constant 1 : index
    %c0_11 = arith.constant 0 : index
    %c0_12 = arith.constant 0 : index
    %10 = vector.load %arg3[%c1_10, %c0_11, %c0_12] : memref<2x32x128xf32, #tpu.memory_space<vmem>>, vector<1x32x128xf32>
    %11 = vector.shape_cast %10 : vector<1x32x128xf32> to vector<32x128xf32>
    %c2 = arith.constant 2 : index
    %c0_13 = arith.constant 0 : index
    %c0_14 = arith.constant 0 : index
    %12 = vector.load %arg2[%c2, %c0_13, %c0_14] : memref<5x32x128xf32, #tpu.memory_space<vmem>>, vector<1x32x128xf32>
    %13 = vector.shape_cast %12 : vector<1x32x128xf32> to vector<32x128xf32>
    %c1_15 = arith.constant 1 : index
    %c0_16 = arith.constant 0 : index
    %14 = vector.load %arg4[%c1_15, %c0_16] : memref<4x128xf32, #tpu.memory_space<vmem>>, vector<1x128xf32>
    %c3 = arith.constant 3 : index
    %c0_17 = arith.constant 0 : index
    %c0_18 = arith.constant 0 : index
    %15 = vector.load %arg2[%c3, %c0_17, %c0_18] : memref<5x32x128xf32, #tpu.memory_space<vmem>>, vector<1x32x128xf32>
    %16 = vector.shape_cast %15 : vector<1x32x128xf32> to vector<32x128xf32>
    %c2_19 = arith.constant 2 : index
    %c0_20 = arith.constant 0 : index
    %17 = vector.load %arg4[%c2_19, %c0_20] : memref<4x128xf32, #tpu.memory_space<vmem>>, vector<1x128xf32>
    %c4 = arith.constant 4 : index
    %c0_21 = arith.constant 0 : index
    %c0_22 = arith.constant 0 : index
    %18 = vector.load %arg2[%c4, %c0_21, %c0_22] : memref<5x32x128xf32, #tpu.memory_space<vmem>>, vector<1x32x128xf32>
    %19 = vector.shape_cast %18 : vector<1x32x128xf32> to vector<32x128xf32>
    %c3_23 = arith.constant 3 : index
    %c0_24 = arith.constant 0 : index
    %20 = vector.load %arg4[%c3_23, %c0_24] : memref<4x128xf32, #tpu.memory_space<vmem>>, vector<1x128xf32>
    %c0_25 = arith.constant 0 : index
    %c0_26 = arith.constant 0 : index
    %21 = vector.load %arg8[%c0_25, %c0_26] : memref<1x32xf32, #tpu.memory_space<vmem>>, vector<1x32xf32>
    %c0_27 = arith.constant 0 : index
    %c0_28 = arith.constant 0 : index
    %22 = vector.load %arg9[%c0_27, %c0_28] : memref<1x32xf32, #tpu.memory_space<vmem>>, vector<1x32xf32>
    %c0_i32_29 = arith.constant 0 : i32
    %c8_i32 = arith.constant 8 : i32
    %23 = arith.muli %c0_i32_29, %c8_i32 : i32
    %24 = tpu.assume_multiple %23, 8 : i32
    %c0_i32_30 = arith.constant 0 : i32
    %25 = arith.addi %24, %c0_i32_30 : i32
    %26 = arith.index_cast %25 : i32 to index
    %c0_31 = arith.constant 0 : index
    %27 = vector.load %arg1[%26, %c0_31] : memref<8x128xf32, #tpu.memory_space<vmem>>, vector<1x128xf32>
    %cst = arith.constant dense<0.000000e+00> : vector<1x128xf32>
    %28 = tpu.matmul %21, %4, %cst {dimension_numbers = #tpu.dot_dimension_numbers<[1], [0], [0], [1], [0, 0, 1, 1], [], []>} : vector<1x32xf32>, vector<32x128xf32>, vector<1x128xf32> -> vector<1x128xf32>
    %29 = arith.addf %27, %28 : vector<1x128xf32>
    %30 = vector.extract_strided_slice %29 {offsets = [0, 0], sizes = [1, 64], strides = [1, 1]} : vector<1x128xf32> to vector<1x64xf32>
    %31 = arith.negf %30 : vector<1x64xf32>
    %32 = math.exp %31 : vector<1x64xf32>
    %cst_32 = arith.constant 1.000000e+00 : f32
    %33 = vector.broadcast %cst_32 : f32 to vector<1x64xf32>
    %34 = arith.addf %33, %32 : vector<1x64xf32>
    %35 = arith.divf %33, %34 : vector<1x64xf32>
    %36 = vector.extract_strided_slice %35 {offsets = [0, 0], sizes = [1, 32], strides = [1, 1]} : vector<1x64xf32> to vector<1x32xf32>
    %37 = vector.extract_strided_slice %35 {offsets = [0, 32], sizes = [1, 32], strides = [1, 1]} : vector<1x64xf32> to vector<1x32xf32>
    %38 = vector.extract_strided_slice %29 {offsets = [0, 64], sizes = [1, 32], strides = [1, 1]} : vector<1x128xf32> to vector<1x32xf32>
    %39 = vector.extract_strided_slice %29 {offsets = [0, 96], sizes = [1, 32], strides = [1, 1]} : vector<1x128xf32> to vector<1x32xf32>
    %40 = arith.mulf %36, %39 : vector<1x32xf32>
    %41 = arith.addf %38, %40 : vector<1x32xf32>
    %42 = math.tanh %41 : vector<1x32xf32>
    %cst_33 = arith.constant 1.000000e+00 : f32
    %43 = vector.broadcast %cst_33 : f32 to vector<1x32xf32>
    %44 = arith.subf %43, %37 : vector<1x32xf32>
    %45 = arith.mulf %44, %42 : vector<1x32xf32>
    %46 = arith.mulf %37, %21 : vector<1x32xf32>
    %47 = arith.addf %45, %46 : vector<1x32xf32>
    %cst_34 = arith.constant dense<0.000000e+00> : vector<1x128xf32>
    %48 = tpu.matmul %47, %6, %cst_34 {dimension_numbers = #tpu.dot_dimension_numbers<[1], [0], [0], [1], [0, 0, 1, 1], [], []>} : vector<1x32xf32>, vector<32x128xf32>, vector<1x128xf32> -> vector<1x128xf32>
    %cst_35 = arith.constant dense<0.000000e+00> : vector<1x128xf32>
    %49 = tpu.matmul %22, %8, %cst_35 {dimension_numbers = #tpu.dot_dimension_numbers<[1], [0], [0], [1], [0, 0, 1, 1], [], []>} : vector<1x32xf32>, vector<32x128xf32>, vector<1x128xf32> -> vector<1x128xf32>
    %50 = arith.addf %48, %49 : vector<1x128xf32>
    %51 = arith.addf %50, %9 : vector<1x128xf32>
    %52 = vector.extract_strided_slice %51 {offsets = [0, 0], sizes = [1, 64], strides = [1, 1]} : vector<1x128xf32> to vector<1x64xf32>
    %53 = arith.negf %52 : vector<1x64xf32>
    %54 = math.exp %53 : vector<1x64xf32>
    %cst_36 = arith.constant 1.000000e+00 : f32
    %55 = vector.broadcast %cst_36 : f32 to vector<1x64xf32>
    %56 = arith.addf %55, %54 : vector<1x64xf32>
    %57 = arith.divf %55, %56 : vector<1x64xf32>
    %58 = vector.extract_strided_slice %57 {offsets = [0, 0], sizes = [1, 32], strides = [1, 1]} : vector<1x64xf32> to vector<1x32xf32>
    %59 = vector.extract_strided_slice %57 {offsets = [0, 32], sizes = [1, 32], strides = [1, 1]} : vector<1x64xf32> to vector<1x32xf32>
    %60 = vector.extract_strided_slice %51 {offsets = [0, 64], sizes = [1, 32], strides = [1, 1]} : vector<1x128xf32> to vector<1x32xf32>
    %61 = vector.extract_strided_slice %51 {offsets = [0, 96], sizes = [1, 32], strides = [1, 1]} : vector<1x128xf32> to vector<1x32xf32>
    %62 = arith.mulf %58, %61 : vector<1x32xf32>
    %63 = arith.addf %60, %62 : vector<1x32xf32>
    %64 = math.tanh %63 : vector<1x32xf32>
    %cst_37 = arith.constant 1.000000e+00 : f32
    %65 = vector.broadcast %cst_37 : f32 to vector<1x32xf32>
    %66 = arith.subf %65, %59 : vector<1x32xf32>
    %67 = arith.mulf %66, %64 : vector<1x32xf32>
    %68 = arith.mulf %59, %22 : vector<1x32xf32>
    %69 = arith.addf %67, %68 : vector<1x32xf32>
    %cst_38 = arith.constant dense<0.000000e+00> : vector<1x128xf32>
    %70 = tpu.matmul %69, %11, %cst_38 {dimension_numbers = #tpu.dot_dimension_numbers<[1], [0], [0], [1], [0, 0, 1, 1], [], []>} : vector<1x32xf32>, vector<32x128xf32>, vector<1x128xf32> -> vector<1x128xf32>
    %cst_39 = arith.constant dense<0.000000e+00> : vector<1x128xf32>
    %71 = tpu.matmul %47, %13, %cst_39 {dimension_numbers = #tpu.dot_dimension_numbers<[1], [0], [0], [1], [0, 0, 1, 1], [], []>} : vector<1x32xf32>, vector<32x128xf32>, vector<1x128xf32> -> vector<1x128xf32>
    %72 = arith.addf %70, %71 : vector<1x128xf32>
    %73 = arith.addf %72, %14 : vector<1x128xf32>
    %74 = vector.extract_strided_slice %73 {offsets = [0, 0], sizes = [1, 64], strides = [1, 1]} : vector<1x128xf32> to vector<1x64xf32>
    %75 = arith.negf %74 : vector<1x64xf32>
    %76 = math.exp %75 : vector<1x64xf32>
    %cst_40 = arith.constant 1.000000e+00 : f32
    %77 = vector.broadcast %cst_40 : f32 to vector<1x64xf32>
    %78 = arith.addf %77, %76 : vector<1x64xf32>
    %79 = arith.divf %77, %78 : vector<1x64xf32>
    %80 = vector.extract_strided_slice %79 {offsets = [0, 0], sizes = [1, 32], strides = [1, 1]} : vector<1x64xf32> to vector<1x32xf32>
    %81 = vector.extract_strided_slice %79 {offsets = [0, 32], sizes = [1, 32], strides = [1, 1]} : vector<1x64xf32> to vector<1x32xf32>
    %82 = vector.extract_strided_slice %73 {offsets = [0, 64], sizes = [1, 32], strides = [1, 1]} : vector<1x128xf32> to vector<1x32xf32>
    %83 = vector.extract_strided_slice %73 {offsets = [0, 96], sizes = [1, 32], strides = [1, 1]} : vector<1x128xf32> to vector<1x32xf32>
    %84 = arith.mulf %80, %83 : vector<1x32xf32>
    %85 = arith.addf %82, %84 : vector<1x32xf32>
    %86 = math.tanh %85 : vector<1x32xf32>
    %cst_41 = arith.constant 1.000000e+00 : f32
    %87 = vector.broadcast %cst_41 : f32 to vector<1x32xf32>
    %88 = arith.subf %87, %81 : vector<1x32xf32>
    %89 = arith.mulf %88, %86 : vector<1x32xf32>
    %90 = arith.mulf %81, %47 : vector<1x32xf32>
    %91 = arith.addf %89, %90 : vector<1x32xf32>
    %cst_42 = arith.constant dense<0.000000e+00> : vector<1x128xf32>
    %92 = tpu.matmul %91, %16, %cst_42 {dimension_numbers = #tpu.dot_dimension_numbers<[1], [0], [0], [1], [0, 0, 1, 1], [], []>} : vector<1x32xf32>, vector<32x128xf32>, vector<1x128xf32> -> vector<1x128xf32>
    %93 = arith.addf %92, %17 : vector<1x128xf32>
    %94 = vector.extract_strided_slice %93 {offsets = [0, 0], sizes = [1, 64], strides = [1, 1]} : vector<1x128xf32> to vector<1x64xf32>
    %95 = arith.negf %94 : vector<1x64xf32>
    %96 = math.exp %95 : vector<1x64xf32>
    %cst_43 = arith.constant 1.000000e+00 : f32
    %97 = vector.broadcast %cst_43 : f32 to vector<1x64xf32>
    %98 = arith.addf %97, %96 : vector<1x64xf32>
    %99 = arith.divf %97, %98 : vector<1x64xf32>
    %100 = vector.extract_strided_slice %99 {offsets = [0, 0], sizes = [1, 32], strides = [1, 1]} : vector<1x64xf32> to vector<1x32xf32>
    %101 = vector.extract_strided_slice %99 {offsets = [0, 32], sizes = [1, 32], strides = [1, 1]} : vector<1x64xf32> to vector<1x32xf32>
    %102 = vector.extract_strided_slice %93 {offsets = [0, 64], sizes = [1, 32], strides = [1, 1]} : vector<1x128xf32> to vector<1x32xf32>
    %103 = vector.extract_strided_slice %93 {offsets = [0, 96], sizes = [1, 32], strides = [1, 1]} : vector<1x128xf32> to vector<1x32xf32>
    %104 = arith.mulf %100, %103 : vector<1x32xf32>
    %105 = arith.addf %102, %104 : vector<1x32xf32>
    %106 = math.tanh %105 : vector<1x32xf32>
    %cst_44 = arith.constant 1.000000e+00 : f32
    %107 = vector.broadcast %cst_44 : f32 to vector<1x32xf32>
    %108 = arith.subf %107, %101 : vector<1x32xf32>
    %109 = arith.mulf %108, %106 : vector<1x32xf32>
    %110 = arith.mulf %101, %91 : vector<1x32xf32>
    %111 = arith.addf %109, %110 : vector<1x32xf32>
    %cst_45 = arith.constant dense<0.000000e+00> : vector<1x128xf32>
    %112 = tpu.matmul %111, %19, %cst_45 {dimension_numbers = #tpu.dot_dimension_numbers<[1], [0], [0], [1], [0, 0, 1, 1], [], []>} : vector<1x32xf32>, vector<32x128xf32>, vector<1x128xf32> -> vector<1x128xf32>
    %113 = arith.addf %112, %20 : vector<1x128xf32>
    %114 = vector.extract_strided_slice %113 {offsets = [0, 0], sizes = [1, 64], strides = [1, 1]} : vector<1x128xf32> to vector<1x64xf32>
    %115 = arith.negf %114 : vector<1x64xf32>
    %116 = math.exp %115 : vector<1x64xf32>
    %cst_46 = arith.constant 1.000000e+00 : f32
    %117 = vector.broadcast %cst_46 : f32 to vector<1x64xf32>
    %118 = arith.addf %117, %116 : vector<1x64xf32>
    %119 = arith.divf %117, %118 : vector<1x64xf32>
    %120 = vector.extract_strided_slice %119 {offsets = [0, 0], sizes = [1, 32], strides = [1, 1]} : vector<1x64xf32> to vector<1x32xf32>
    %121 = vector.extract_strided_slice %119 {offsets = [0, 32], sizes = [1, 32], strides = [1, 1]} : vector<1x64xf32> to vector<1x32xf32>
    %122 = vector.extract_strided_slice %113 {offsets = [0, 64], sizes = [1, 32], strides = [1, 1]} : vector<1x128xf32> to vector<1x32xf32>
    %123 = vector.extract_strided_slice %113 {offsets = [0, 96], sizes = [1, 32], strides = [1, 1]} : vector<1x128xf32> to vector<1x32xf32>
    %124 = arith.mulf %120, %123 : vector<1x32xf32>
    %125 = arith.addf %122, %124 : vector<1x32xf32>
    %126 = math.tanh %125 : vector<1x32xf32>
    %cst_47 = arith.constant 1.000000e+00 : f32
    %127 = vector.broadcast %cst_47 : f32 to vector<1x32xf32>
    %128 = arith.subf %127, %121 : vector<1x32xf32>
    %129 = arith.mulf %128, %126 : vector<1x32xf32>
    %130 = arith.mulf %121, %111 : vector<1x32xf32>
    %131 = arith.addf %129, %130 : vector<1x32xf32>
    %c1_i32 = arith.constant 1 : i32
    %132 = arith.addi %24, %c1_i32 : i32
    %133 = arith.index_cast %132 : i32 to index
    %c0_48 = arith.constant 0 : index
    %134 = vector.load %arg1[%133, %c0_48] : memref<8x128xf32, #tpu.memory_space<vmem>>, vector<1x128xf32>
    %cst_49 = arith.constant dense<0.000000e+00> : vector<1x128xf32>
    %135 = tpu.matmul %131, %4, %cst_49 {dimension_numbers = #tpu.dot_dimension_numbers<[1], [0], [0], [1], [0, 0, 1, 1], [], []>} : vector<1x32xf32>, vector<32x128xf32>, vector<1x128xf32> -> vector<1x128xf32>
    %136 = arith.addf %134, %135 : vector<1x128xf32>
    %137 = vector.extract_strided_slice %136 {offsets = [0, 0], sizes = [1, 64], strides = [1, 1]} : vector<1x128xf32> to vector<1x64xf32>
    %138 = arith.negf %137 : vector<1x64xf32>
    %139 = math.exp %138 : vector<1x64xf32>
    %cst_50 = arith.constant 1.000000e+00 : f32
    %140 = vector.broadcast %cst_50 : f32 to vector<1x64xf32>
    %141 = arith.addf %140, %139 : vector<1x64xf32>
    %142 = arith.divf %140, %141 : vector<1x64xf32>
    %143 = vector.extract_strided_slice %142 {offsets = [0, 0], sizes = [1, 32], strides = [1, 1]} : vector<1x64xf32> to vector<1x32xf32>
    %144 = vector.extract_strided_slice %142 {offsets = [0, 32], sizes = [1, 32], strides = [1, 1]} : vector<1x64xf32> to vector<1x32xf32>
    %145 = vector.extract_strided_slice %136 {offsets = [0, 64], sizes = [1, 32], strides = [1, 1]} : vector<1x128xf32> to vector<1x32xf32>
    %146 = vector.extract_strided_slice %136 {offsets = [0, 96], sizes = [1, 32], strides = [1, 1]} : vector<1x128xf32> to vector<1x32xf32>
    %147 = arith.mulf %143, %146 : vector<1x32xf32>
    %148 = arith.addf %145, %147 : vector<1x32xf32>
    %149 = math.tanh %148 : vector<1x32xf32>
    %cst_51 = arith.constant 1.000000e+00 : f32
    %150 = vector.broadcast %cst_51 : f32 to vector<1x32xf32>
    %151 = arith.subf %150, %144 : vector<1x32xf32>
    %152 = arith.mulf %151, %149 : vector<1x32xf32>
    %153 = arith.mulf %144, %131 : vector<1x32xf32>
    %154 = arith.addf %152, %153 : vector<1x32xf32>
    %cst_52 = arith.constant dense<0.000000e+00> : vector<1x128xf32>
    %155 = tpu.matmul %154, %6, %cst_52 {dimension_numbers = #tpu.dot_dimension_numbers<[1], [0], [0], [1], [0, 0, 1, 1], [], []>} : vector<1x32xf32>, vector<32x128xf32>, vector<1x128xf32> -> vector<1x128xf32>
    %cst_53 = arith.constant dense<0.000000e+00> : vector<1x128xf32>
    %156 = tpu.matmul %69, %8, %cst_53 {dimension_numbers = #tpu.dot_dimension_numbers<[1], [0], [0], [1], [0, 0, 1, 1], [], []>} : vector<1x32xf32>, vector<32x128xf32>, vector<1x128xf32> -> vector<1x128xf32>
    %157 = arith.addf %155, %156 : vector<1x128xf32>
    %158 = arith.addf %157, %9 : vector<1x128xf32>
    %159 = vector.extract_strided_slice %158 {offsets = [0, 0], sizes = [1, 64], strides = [1, 1]} : vector<1x128xf32> to vector<1x64xf32>
    %160 = arith.negf %159 : vector<1x64xf32>
    %161 = math.exp %160 : vector<1x64xf32>
    %cst_54 = arith.constant 1.000000e+00 : f32
    %162 = vector.broadcast %cst_54 : f32 to vector<1x64xf32>
    %163 = arith.addf %162, %161 : vector<1x64xf32>
    %164 = arith.divf %162, %163 : vector<1x64xf32>
    %165 = vector.extract_strided_slice %164 {offsets = [0, 0], sizes = [1, 32], strides = [1, 1]} : vector<1x64xf32> to vector<1x32xf32>
    %166 = vector.extract_strided_slice %164 {offsets = [0, 32], sizes = [1, 32], strides = [1, 1]} : vector<1x64xf32> to vector<1x32xf32>
    %167 = vector.extract_strided_slice %158 {offsets = [0, 64], sizes = [1, 32], strides = [1, 1]} : vector<1x128xf32> to vector<1x32xf32>
    %168 = vector.extract_strided_slice %158 {offsets = [0, 96], sizes = [1, 32], strides = [1, 1]} : vector<1x128xf32> to vector<1x32xf32>
    %169 = arith.mulf %165, %168 : vector<1x32xf32>
    %170 = arith.addf %167, %169 : vector<1x32xf32>
    %171 = math.tanh %170 : vector<1x32xf32>
    %cst_55 = arith.constant 1.000000e+00 : f32
    %172 = vector.broadcast %cst_55 : f32 to vector<1x32xf32>
    %173 = arith.subf %172, %166 : vector<1x32xf32>
    %174 = arith.mulf %173, %171 : vector<1x32xf32>
    %175 = arith.mulf %166, %69 : vector<1x32xf32>
    %176 = arith.addf %174, %175 : vector<1x32xf32>
    %cst_56 = arith.constant dense<0.000000e+00> : vector<1x128xf32>
    %177 = tpu.matmul %176, %11, %cst_56 {dimension_numbers = #tpu.dot_dimension_numbers<[1], [0], [0], [1], [0, 0, 1, 1], [], []>} : vector<1x32xf32>, vector<32x128xf32>, vector<1x128xf32> -> vector<1x128xf32>
    %cst_57 = arith.constant dense<0.000000e+00> : vector<1x128xf32>
    %178 = tpu.matmul %154, %13, %cst_57 {dimension_numbers = #tpu.dot_dimension_numbers<[1], [0], [0], [1], [0, 0, 1, 1], [], []>} : vector<1x32xf32>, vector<32x128xf32>, vector<1x128xf32> -> vector<1x128xf32>
    %179 = arith.addf %177, %178 : vector<1x128xf32>
    %180 = arith.addf %179, %14 : vector<1x128xf32>
    %181 = vector.extract_strided_slice %180 {offsets = [0, 0], sizes = [1, 64], strides = [1, 1]} : vector<1x128xf32> to vector<1x64xf32>
    %182 = arith.negf %181 : vector<1x64xf32>
    %183 = math.exp %182 : vector<1x64xf32>
    %cst_58 = arith.constant 1.000000e+00 : f32
    %184 = vector.broadcast %cst_58 : f32 to vector<1x64xf32>
    %185 = arith.addf %184, %183 : vector<1x64xf32>
    %186 = arith.divf %184, %185 : vector<1x64xf32>
    %187 = vector.extract_strided_slice %186 {offsets = [0, 0], sizes = [1, 32], strides = [1, 1]} : vector<1x64xf32> to vector<1x32xf32>
    %188 = vector.extract_strided_slice %186 {offsets = [0, 32], sizes = [1, 32], strides = [1, 1]} : vector<1x64xf32> to vector<1x32xf32>
    %189 = vector.extract_strided_slice %180 {offsets = [0, 64], sizes = [1, 32], strides = [1, 1]} : vector<1x128xf32> to vector<1x32xf32>
    %190 = vector.extract_strided_slice %180 {offsets = [0, 96], sizes = [1, 32], strides = [1, 1]} : vector<1x128xf32> to vector<1x32xf32>
    %191 = arith.mulf %187, %190 : vector<1x32xf32>
    %192 = arith.addf %189, %191 : vector<1x32xf32>
    %193 = math.tanh %192 : vector<1x32xf32>
    %cst_59 = arith.constant 1.000000e+00 : f32
    %194 = vector.broadcast %cst_59 : f32 to vector<1x32xf32>
    %195 = arith.subf %194, %188 : vector<1x32xf32>
    %196 = arith.mulf %195, %193 : vector<1x32xf32>
    %197 = arith.mulf %188, %154 : vector<1x32xf32>
    %198 = arith.addf %196, %197 : vector<1x32xf32>
    %cst_60 = arith.constant dense<0.000000e+00> : vector<1x128xf32>
    %199 = tpu.matmul %198, %16, %cst_60 {dimension_numbers = #tpu.dot_dimension_numbers<[1], [0], [0], [1], [0, 0, 1, 1], [], []>} : vector<1x32xf32>, vector<32x128xf32>, vector<1x128xf32> -> vector<1x128xf32>
    %200 = arith.addf %199, %17 : vector<1x128xf32>
    %201 = vector.extract_strided_slice %200 {offsets = [0, 0], sizes = [1, 64], strides = [1, 1]} : vector<1x128xf32> to vector<1x64xf32>
    %202 = arith.negf %201 : vector<1x64xf32>
    %203 = math.exp %202 : vector<1x64xf32>
    %cst_61 = arith.constant 1.000000e+00 : f32
    %204 = vector.broadcast %cst_61 : f32 to vector<1x64xf32>
    %205 = arith.addf %204, %203 : vector<1x64xf32>
    %206 = arith.divf %204, %205 : vector<1x64xf32>
    %207 = vector.extract_strided_slice %206 {offsets = [0, 0], sizes = [1, 32], strides = [1, 1]} : vector<1x64xf32> to vector<1x32xf32>
    %208 = vector.extract_strided_slice %206 {offsets = [0, 32], sizes = [1, 32], strides = [1, 1]} : vector<1x64xf32> to vector<1x32xf32>
    %209 = vector.extract_strided_slice %200 {offsets = [0, 64], sizes = [1, 32], strides = [1, 1]} : vector<1x128xf32> to vector<1x32xf32>
    %210 = vector.extract_strided_slice %200 {offsets = [0, 96], sizes = [1, 32], strides = [1, 1]} : vector<1x128xf32> to vector<1x32xf32>
    %211 = arith.mulf %207, %210 : vector<1x32xf32>
    %212 = arith.addf %209, %211 : vector<1x32xf32>
    %213 = math.tanh %212 : vector<1x32xf32>
    %cst_62 = arith.constant 1.000000e+00 : f32
    %214 = vector.broadcast %cst_62 : f32 to vector<1x32xf32>
    %215 = arith.subf %214, %208 : vector<1x32xf32>
    %216 = arith.mulf %215, %213 : vector<1x32xf32>
    %217 = arith.mulf %208, %198 : vector<1x32xf32>
    %218 = arith.addf %216, %217 : vector<1x32xf32>
    %cst_63 = arith.constant dense<0.000000e+00> : vector<1x128xf32>
    %219 = tpu.matmul %218, %19, %cst_63 {dimension_numbers = #tpu.dot_dimension_numbers<[1], [0], [0], [1], [0, 0, 1, 1], [], []>} : vector<1x32xf32>, vector<32x128xf32>, vector<1x128xf32> -> vector<1x128xf32>
    %220 = arith.addf %219, %20 : vector<1x128xf32>
    %221 = vector.extract_strided_slice %220 {offsets = [0, 0], sizes = [1, 64], strides = [1, 1]} : vector<1x128xf32> to vector<1x64xf32>
    %222 = arith.negf %221 : vector<1x64xf32>
    %223 = math.exp %222 : vector<1x64xf32>
    %cst_64 = arith.constant 1.000000e+00 : f32
    %224 = vector.broadcast %cst_64 : f32 to vector<1x64xf32>
    %225 = arith.addf %224, %223 : vector<1x64xf32>
    %226 = arith.divf %224, %225 : vector<1x64xf32>
    %227 = vector.extract_strided_slice %226 {offsets = [0, 0], sizes = [1, 32], strides = [1, 1]} : vector<1x64xf32> to vector<1x32xf32>
    %228 = vector.extract_strided_slice %226 {offsets = [0, 32], sizes = [1, 32], strides = [1, 1]} : vector<1x64xf32> to vector<1x32xf32>
    %229 = vector.extract_strided_slice %220 {offsets = [0, 64], sizes = [1, 32], strides = [1, 1]} : vector<1x128xf32> to vector<1x32xf32>
    %230 = vector.extract_strided_slice %220 {offsets = [0, 96], sizes = [1, 32], strides = [1, 1]} : vector<1x128xf32> to vector<1x32xf32>
    %231 = arith.mulf %227, %230 : vector<1x32xf32>
    %232 = arith.addf %229, %231 : vector<1x32xf32>
    %233 = math.tanh %232 : vector<1x32xf32>
    %cst_65 = arith.constant 1.000000e+00 : f32
    %234 = vector.broadcast %cst_65 : f32 to vector<1x32xf32>
    %235 = arith.subf %234, %228 : vector<1x32xf32>
    %236 = arith.mulf %235, %233 : vector<1x32xf32>
    %237 = arith.mulf %228, %218 : vector<1x32xf32>
    %238 = arith.addf %236, %237 : vector<1x32xf32>
    %c2_i32 = arith.constant 2 : i32
    %239 = arith.addi %24, %c2_i32 : i32
    %240 = arith.index_cast %239 : i32 to index
    %c0_66 = arith.constant 0 : index
    %241 = vector.load %arg1[%240, %c0_66] : memref<8x128xf32, #tpu.memory_space<vmem>>, vector<1x128xf32>
    %cst_67 = arith.constant dense<0.000000e+00> : vector<1x128xf32>
    %242 = tpu.matmul %238, %4, %cst_67 {dimension_numbers = #tpu.dot_dimension_numbers<[1], [0], [0], [1], [0, 0, 1, 1], [], []>} : vector<1x32xf32>, vector<32x128xf32>, vector<1x128xf32> -> vector<1x128xf32>
    %243 = arith.addf %241, %242 : vector<1x128xf32>
    %244 = vector.extract_strided_slice %243 {offsets = [0, 0], sizes = [1, 64], strides = [1, 1]} : vector<1x128xf32> to vector<1x64xf32>
    %245 = arith.negf %244 : vector<1x64xf32>
    %246 = math.exp %245 : vector<1x64xf32>
    %cst_68 = arith.constant 1.000000e+00 : f32
    %247 = vector.broadcast %cst_68 : f32 to vector<1x64xf32>
    %248 = arith.addf %247, %246 : vector<1x64xf32>
    %249 = arith.divf %247, %248 : vector<1x64xf32>
    %250 = vector.extract_strided_slice %249 {offsets = [0, 0], sizes = [1, 32], strides = [1, 1]} : vector<1x64xf32> to vector<1x32xf32>
    %251 = vector.extract_strided_slice %249 {offsets = [0, 32], sizes = [1, 32], strides = [1, 1]} : vector<1x64xf32> to vector<1x32xf32>
    %252 = vector.extract_strided_slice %243 {offsets = [0, 64], sizes = [1, 32], strides = [1, 1]} : vector<1x128xf32> to vector<1x32xf32>
    %253 = vector.extract_strided_slice %243 {offsets = [0, 96], sizes = [1, 32], strides = [1, 1]} : vector<1x128xf32> to vector<1x32xf32>
    %254 = arith.mulf %250, %253 : vector<1x32xf32>
    %255 = arith.addf %252, %254 : vector<1x32xf32>
    %256 = math.tanh %255 : vector<1x32xf32>
    %cst_69 = arith.constant 1.000000e+00 : f32
    %257 = vector.broadcast %cst_69 : f32 to vector<1x32xf32>
    %258 = arith.subf %257, %251 : vector<1x32xf32>
    %259 = arith.mulf %258, %256 : vector<1x32xf32>
    %260 = arith.mulf %251, %238 : vector<1x32xf32>
    %261 = arith.addf %259, %260 : vector<1x32xf32>
    %cst_70 = arith.constant dense<0.000000e+00> : vector<1x128xf32>
    %262 = tpu.matmul %261, %6, %cst_70 {dimension_numbers = #tpu.dot_dimension_numbers<[1], [0], [0], [1], [0, 0, 1, 1], [], []>} : vector<1x32xf32>, vector<32x128xf32>, vector<1x128xf32> -> vector<1x128xf32>
    %cst_71 = arith.constant dense<0.000000e+00> : vector<1x128xf32>
    %263 = tpu.matmul %176, %8, %cst_71 {dimension_numbers = #tpu.dot_dimension_numbers<[1], [0], [0], [1], [0, 0, 1, 1], [], []>} : vector<1x32xf32>, vector<32x128xf32>, vector<1x128xf32> -> vector<1x128xf32>
    %264 = arith.addf %262, %263 : vector<1x128xf32>
    %265 = arith.addf %264, %9 : vector<1x128xf32>
    %266 = vector.extract_strided_slice %265 {offsets = [0, 0], sizes = [1, 64], strides = [1, 1]} : vector<1x128xf32> to vector<1x64xf32>
    %267 = arith.negf %266 : vector<1x64xf32>
    %268 = math.exp %267 : vector<1x64xf32>
    %cst_72 = arith.constant 1.000000e+00 : f32
    %269 = vector.broadcast %cst_72 : f32 to vector<1x64xf32>
    %270 = arith.addf %269, %268 : vector<1x64xf32>
    %271 = arith.divf %269, %270 : vector<1x64xf32>
    %272 = vector.extract_strided_slice %271 {offsets = [0, 0], sizes = [1, 32], strides = [1, 1]} : vector<1x64xf32> to vector<1x32xf32>
    %273 = vector.extract_strided_slice %271 {offsets = [0, 32], sizes = [1, 32], strides = [1, 1]} : vector<1x64xf32> to vector<1x32xf32>
    %274 = vector.extract_strided_slice %265 {offsets = [0, 64], sizes = [1, 32], strides = [1, 1]} : vector<1x128xf32> to vector<1x32xf32>
    %275 = vector.extract_strided_slice %265 {offsets = [0, 96], sizes = [1, 32], strides = [1, 1]} : vector<1x128xf32> to vector<1x32xf32>
    %276 = arith.mulf %272, %275 : vector<1x32xf32>
    %277 = arith.addf %274, %276 : vector<1x32xf32>
    %278 = math.tanh %277 : vector<1x32xf32>
    %cst_73 = arith.constant 1.000000e+00 : f32
    %279 = vector.broadcast %cst_73 : f32 to vector<1x32xf32>
    %280 = arith.subf %279, %273 : vector<1x32xf32>
    %281 = arith.mulf %280, %278 : vector<1x32xf32>
    %282 = arith.mulf %273, %176 : vector<1x32xf32>
    %283 = arith.addf %281, %282 : vector<1x32xf32>
    %cst_74 = arith.constant dense<0.000000e+00> : vector<1x128xf32>
    %284 = tpu.matmul %283, %11, %cst_74 {dimension_numbers = #tpu.dot_dimension_numbers<[1], [0], [0], [1], [0, 0, 1, 1], [], []>} : vector<1x32xf32>, vector<32x128xf32>, vector<1x128xf32> -> vector<1x128xf32>
    %cst_75 = arith.constant dense<0.000000e+00> : vector<1x128xf32>
    %285 = tpu.matmul %261, %13, %cst_75 {dimension_numbers = #tpu.dot_dimension_numbers<[1], [0], [0], [1], [0, 0, 1, 1], [], []>} : vector<1x32xf32>, vector<32x128xf32>, vector<1x128xf32> -> vector<1x128xf32>
    %286 = arith.addf %284, %285 : vector<1x128xf32>
    %287 = arith.addf %286, %14 : vector<1x128xf32>
    %288 = vector.extract_strided_slice %287 {offsets = [0, 0], sizes = [1, 64], strides = [1, 1]} : vector<1x128xf32> to vector<1x64xf32>
    %289 = arith.negf %288 : vector<1x64xf32>
    %290 = math.exp %289 : vector<1x64xf32>
    %cst_76 = arith.constant 1.000000e+00 : f32
    %291 = vector.broadcast %cst_76 : f32 to vector<1x64xf32>
    %292 = arith.addf %291, %290 : vector<1x64xf32>
    %293 = arith.divf %291, %292 : vector<1x64xf32>
    %294 = vector.extract_strided_slice %293 {offsets = [0, 0], sizes = [1, 32], strides = [1, 1]} : vector<1x64xf32> to vector<1x32xf32>
    %295 = vector.extract_strided_slice %293 {offsets = [0, 32], sizes = [1, 32], strides = [1, 1]} : vector<1x64xf32> to vector<1x32xf32>
    %296 = vector.extract_strided_slice %287 {offsets = [0, 64], sizes = [1, 32], strides = [1, 1]} : vector<1x128xf32> to vector<1x32xf32>
    %297 = vector.extract_strided_slice %287 {offsets = [0, 96], sizes = [1, 32], strides = [1, 1]} : vector<1x128xf32> to vector<1x32xf32>
    %298 = arith.mulf %294, %297 : vector<1x32xf32>
    %299 = arith.addf %296, %298 : vector<1x32xf32>
    %300 = math.tanh %299 : vector<1x32xf32>
    %cst_77 = arith.constant 1.000000e+00 : f32
    %301 = vector.broadcast %cst_77 : f32 to vector<1x32xf32>
    %302 = arith.subf %301, %295 : vector<1x32xf32>
    %303 = arith.mulf %302, %300 : vector<1x32xf32>
    %304 = arith.mulf %295, %261 : vector<1x32xf32>
    %305 = arith.addf %303, %304 : vector<1x32xf32>
    %cst_78 = arith.constant dense<0.000000e+00> : vector<1x128xf32>
    %306 = tpu.matmul %305, %16, %cst_78 {dimension_numbers = #tpu.dot_dimension_numbers<[1], [0], [0], [1], [0, 0, 1, 1], [], []>} : vector<1x32xf32>, vector<32x128xf32>, vector<1x128xf32> -> vector<1x128xf32>
    %307 = arith.addf %306, %17 : vector<1x128xf32>
    %308 = vector.extract_strided_slice %307 {offsets = [0, 0], sizes = [1, 64], strides = [1, 1]} : vector<1x128xf32> to vector<1x64xf32>
    %309 = arith.negf %308 : vector<1x64xf32>
    %310 = math.exp %309 : vector<1x64xf32>
    %cst_79 = arith.constant 1.000000e+00 : f32
    %311 = vector.broadcast %cst_79 : f32 to vector<1x64xf32>
    %312 = arith.addf %311, %310 : vector<1x64xf32>
    %313 = arith.divf %311, %312 : vector<1x64xf32>
    %314 = vector.extract_strided_slice %313 {offsets = [0, 0], sizes = [1, 32], strides = [1, 1]} : vector<1x64xf32> to vector<1x32xf32>
    %315 = vector.extract_strided_slice %313 {offsets = [0, 32], sizes = [1, 32], strides = [1, 1]} : vector<1x64xf32> to vector<1x32xf32>
    %316 = vector.extract_strided_slice %307 {offsets = [0, 64], sizes = [1, 32], strides = [1, 1]} : vector<1x128xf32> to vector<1x32xf32>
    %317 = vector.extract_strided_slice %307 {offsets = [0, 96], sizes = [1, 32], strides = [1, 1]} : vector<1x128xf32> to vector<1x32xf32>
    %318 = arith.mulf %314, %317 : vector<1x32xf32>
    %319 = arith.addf %316, %318 : vector<1x32xf32>
    %320 = math.tanh %319 : vector<1x32xf32>
    %cst_80 = arith.constant 1.000000e+00 : f32
    %321 = vector.broadcast %cst_80 : f32 to vector<1x32xf32>
    %322 = arith.subf %321, %315 : vector<1x32xf32>
    %323 = arith.mulf %322, %320 : vector<1x32xf32>
    %324 = arith.mulf %315, %305 : vector<1x32xf32>
    %325 = arith.addf %323, %324 : vector<1x32xf32>
    %cst_81 = arith.constant dense<0.000000e+00> : vector<1x128xf32>
    %326 = tpu.matmul %325, %19, %cst_81 {dimension_numbers = #tpu.dot_dimension_numbers<[1], [0], [0], [1], [0, 0, 1, 1], [], []>} : vector<1x32xf32>, vector<32x128xf32>, vector<1x128xf32> -> vector<1x128xf32>
    %327 = arith.addf %326, %20 : vector<1x128xf32>
    %328 = vector.extract_strided_slice %327 {offsets = [0, 0], sizes = [1, 64], strides = [1, 1]} : vector<1x128xf32> to vector<1x64xf32>
    %329 = arith.negf %328 : vector<1x64xf32>
    %330 = math.exp %329 : vector<1x64xf32>
    %cst_82 = arith.constant 1.000000e+00 : f32
    %331 = vector.broadcast %cst_82 : f32 to vector<1x64xf32>
    %332 = arith.addf %331, %330 : vector<1x64xf32>
    %333 = arith.divf %331, %332 : vector<1x64xf32>
    %334 = vector.extract_strided_slice %333 {offsets = [0, 0], sizes = [1, 32], strides = [1, 1]} : vector<1x64xf32> to vector<1x32xf32>
    %335 = vector.extract_strided_slice %333 {offsets = [0, 32], sizes = [1, 32], strides = [1, 1]} : vector<1x64xf32> to vector<1x32xf32>
    %336 = vector.extract_strided_slice %327 {offsets = [0, 64], sizes = [1, 32], strides = [1, 1]} : vector<1x128xf32> to vector<1x32xf32>
    %337 = vector.extract_strided_slice %327 {offsets = [0, 96], sizes = [1, 32], strides = [1, 1]} : vector<1x128xf32> to vector<1x32xf32>
    %338 = arith.mulf %334, %337 : vector<1x32xf32>
    %339 = arith.addf %336, %338 : vector<1x32xf32>
    %340 = math.tanh %339 : vector<1x32xf32>
    %cst_83 = arith.constant 1.000000e+00 : f32
    %341 = vector.broadcast %cst_83 : f32 to vector<1x32xf32>
    %342 = arith.subf %341, %335 : vector<1x32xf32>
    %343 = arith.mulf %342, %340 : vector<1x32xf32>
    %344 = arith.mulf %335, %325 : vector<1x32xf32>
    %345 = arith.addf %343, %344 : vector<1x32xf32>
    %c3_i32 = arith.constant 3 : i32
    %346 = arith.addi %24, %c3_i32 : i32
    %347 = arith.index_cast %346 : i32 to index
    %c0_84 = arith.constant 0 : index
    %348 = vector.load %arg1[%347, %c0_84] : memref<8x128xf32, #tpu.memory_space<vmem>>, vector<1x128xf32>
    %cst_85 = arith.constant dense<0.000000e+00> : vector<1x128xf32>
    %349 = tpu.matmul %345, %4, %cst_85 {dimension_numbers = #tpu.dot_dimension_numbers<[1], [0], [0], [1], [0, 0, 1, 1], [], []>} : vector<1x32xf32>, vector<32x128xf32>, vector<1x128xf32> -> vector<1x128xf32>
    %350 = arith.addf %348, %349 : vector<1x128xf32>
    %351 = vector.extract_strided_slice %350 {offsets = [0, 0], sizes = [1, 64], strides = [1, 1]} : vector<1x128xf32> to vector<1x64xf32>
    %352 = arith.negf %351 : vector<1x64xf32>
    %353 = math.exp %352 : vector<1x64xf32>
    %cst_86 = arith.constant 1.000000e+00 : f32
    %354 = vector.broadcast %cst_86 : f32 to vector<1x64xf32>
    %355 = arith.addf %354, %353 : vector<1x64xf32>
    %356 = arith.divf %354, %355 : vector<1x64xf32>
    %357 = vector.extract_strided_slice %356 {offsets = [0, 0], sizes = [1, 32], strides = [1, 1]} : vector<1x64xf32> to vector<1x32xf32>
    %358 = vector.extract_strided_slice %356 {offsets = [0, 32], sizes = [1, 32], strides = [1, 1]} : vector<1x64xf32> to vector<1x32xf32>
    %359 = vector.extract_strided_slice %350 {offsets = [0, 64], sizes = [1, 32], strides = [1, 1]} : vector<1x128xf32> to vector<1x32xf32>
    %360 = vector.extract_strided_slice %350 {offsets = [0, 96], sizes = [1, 32], strides = [1, 1]} : vector<1x128xf32> to vector<1x32xf32>
    %361 = arith.mulf %357, %360 : vector<1x32xf32>
    %362 = arith.addf %359, %361 : vector<1x32xf32>
    %363 = math.tanh %362 : vector<1x32xf32>
    %cst_87 = arith.constant 1.000000e+00 : f32
    %364 = vector.broadcast %cst_87 : f32 to vector<1x32xf32>
    %365 = arith.subf %364, %358 : vector<1x32xf32>
    %366 = arith.mulf %365, %363 : vector<1x32xf32>
    %367 = arith.mulf %358, %345 : vector<1x32xf32>
    %368 = arith.addf %366, %367 : vector<1x32xf32>
    %cst_88 = arith.constant dense<0.000000e+00> : vector<1x128xf32>
    %369 = tpu.matmul %368, %6, %cst_88 {dimension_numbers = #tpu.dot_dimension_numbers<[1], [0], [0], [1], [0, 0, 1, 1], [], []>} : vector<1x32xf32>, vector<32x128xf32>, vector<1x128xf32> -> vector<1x128xf32>
    %cst_89 = arith.constant dense<0.000000e+00> : vector<1x128xf32>
    %370 = tpu.matmul %283, %8, %cst_89 {dimension_numbers = #tpu.dot_dimension_numbers<[1], [0], [0], [1], [0, 0, 1, 1], [], []>} : vector<1x32xf32>, vector<32x128xf32>, vector<1x128xf32> -> vector<1x128xf32>
    %371 = arith.addf %369, %370 : vector<1x128xf32>
    %372 = arith.addf %371, %9 : vector<1x128xf32>
    %373 = vector.extract_strided_slice %372 {offsets = [0, 0], sizes = [1, 64], strides = [1, 1]} : vector<1x128xf32> to vector<1x64xf32>
    %374 = arith.negf %373 : vector<1x64xf32>
    %375 = math.exp %374 : vector<1x64xf32>
    %cst_90 = arith.constant 1.000000e+00 : f32
    %376 = vector.broadcast %cst_90 : f32 to vector<1x64xf32>
    %377 = arith.addf %376, %375 : vector<1x64xf32>
    %378 = arith.divf %376, %377 : vector<1x64xf32>
    %379 = vector.extract_strided_slice %378 {offsets = [0, 0], sizes = [1, 32], strides = [1, 1]} : vector<1x64xf32> to vector<1x32xf32>
    %380 = vector.extract_strided_slice %378 {offsets = [0, 32], sizes = [1, 32], strides = [1, 1]} : vector<1x64xf32> to vector<1x32xf32>
    %381 = vector.extract_strided_slice %372 {offsets = [0, 64], sizes = [1, 32], strides = [1, 1]} : vector<1x128xf32> to vector<1x32xf32>
    %382 = vector.extract_strided_slice %372 {offsets = [0, 96], sizes = [1, 32], strides = [1, 1]} : vector<1x128xf32> to vector<1x32xf32>
    %383 = arith.mulf %379, %382 : vector<1x32xf32>
    %384 = arith.addf %381, %383 : vector<1x32xf32>
    %385 = math.tanh %384 : vector<1x32xf32>
    %cst_91 = arith.constant 1.000000e+00 : f32
    %386 = vector.broadcast %cst_91 : f32 to vector<1x32xf32>
    %387 = arith.subf %386, %380 : vector<1x32xf32>
    %388 = arith.mulf %387, %385 : vector<1x32xf32>
    %389 = arith.mulf %380, %283 : vector<1x32xf32>
    %390 = arith.addf %388, %389 : vector<1x32xf32>
    %cst_92 = arith.constant dense<0.000000e+00> : vector<1x128xf32>
    %391 = tpu.matmul %390, %11, %cst_92 {dimension_numbers = #tpu.dot_dimension_numbers<[1], [0], [0], [1], [0, 0, 1, 1], [], []>} : vector<1x32xf32>, vector<32x128xf32>, vector<1x128xf32> -> vector<1x128xf32>
    %cst_93 = arith.constant dense<0.000000e+00> : vector<1x128xf32>
    %392 = tpu.matmul %368, %13, %cst_93 {dimension_numbers = #tpu.dot_dimension_numbers<[1], [0], [0], [1], [0, 0, 1, 1], [], []>} : vector<1x32xf32>, vector<32x128xf32>, vector<1x128xf32> -> vector<1x128xf32>
    %393 = arith.addf %391, %392 : vector<1x128xf32>
    %394 = arith.addf %393, %14 : vector<1x128xf32>
    %395 = vector.extract_strided_slice %394 {offsets = [0, 0], sizes = [1, 64], strides = [1, 1]} : vector<1x128xf32> to vector<1x64xf32>
    %396 = arith.negf %395 : vector<1x64xf32>
    %397 = math.exp %396 : vector<1x64xf32>
    %cst_94 = arith.constant 1.000000e+00 : f32
    %398 = vector.broadcast %cst_94 : f32 to vector<1x64xf32>
    %399 = arith.addf %398, %397 : vector<1x64xf32>
    %400 = arith.divf %398, %399 : vector<1x64xf32>
    %401 = vector.extract_strided_slice %400 {offsets = [0, 0], sizes = [1, 32], strides = [1, 1]} : vector<1x64xf32> to vector<1x32xf32>
    %402 = vector.extract_strided_slice %400 {offsets = [0, 32], sizes = [1, 32], strides = [1, 1]} : vector<1x64xf32> to vector<1x32xf32>
    %403 = vector.extract_strided_slice %394 {offsets = [0, 64], sizes = [1, 32], strides = [1, 1]} : vector<1x128xf32> to vector<1x32xf32>
    %404 = vector.extract_strided_slice %394 {offsets = [0, 96], sizes = [1, 32], strides = [1, 1]} : vector<1x128xf32> to vector<1x32xf32>
    %405 = arith.mulf %401, %404 : vector<1x32xf32>
    %406 = arith.addf %403, %405 : vector<1x32xf32>
    %407 = math.tanh %406 : vector<1x32xf32>
    %cst_95 = arith.constant 1.000000e+00 : f32
    %408 = vector.broadcast %cst_95 : f32 to vector<1x32xf32>
    %409 = arith.subf %408, %402 : vector<1x32xf32>
    %410 = arith.mulf %409, %407 : vector<1x32xf32>
    %411 = arith.mulf %402, %368 : vector<1x32xf32>
    %412 = arith.addf %410, %411 : vector<1x32xf32>
    %cst_96 = arith.constant dense<0.000000e+00> : vector<1x128xf32>
    %413 = tpu.matmul %412, %16, %cst_96 {dimension_numbers = #tpu.dot_dimension_numbers<[1], [0], [0], [1], [0, 0, 1, 1], [], []>} : vector<1x32xf32>, vector<32x128xf32>, vector<1x128xf32> -> vector<1x128xf32>
    %414 = arith.addf %413, %17 : vector<1x128xf32>
    %415 = vector.extract_strided_slice %414 {offsets = [0, 0], sizes = [1, 64], strides = [1, 1]} : vector<1x128xf32> to vector<1x64xf32>
    %416 = arith.negf %415 : vector<1x64xf32>
    %417 = math.exp %416 : vector<1x64xf32>
    %cst_97 = arith.constant 1.000000e+00 : f32
    %418 = vector.broadcast %cst_97 : f32 to vector<1x64xf32>
    %419 = arith.addf %418, %417 : vector<1x64xf32>
    %420 = arith.divf %418, %419 : vector<1x64xf32>
    %421 = vector.extract_strided_slice %420 {offsets = [0, 0], sizes = [1, 32], strides = [1, 1]} : vector<1x64xf32> to vector<1x32xf32>
    %422 = vector.extract_strided_slice %420 {offsets = [0, 32], sizes = [1, 32], strides = [1, 1]} : vector<1x64xf32> to vector<1x32xf32>
    %423 = vector.extract_strided_slice %414 {offsets = [0, 64], sizes = [1, 32], strides = [1, 1]} : vector<1x128xf32> to vector<1x32xf32>
    %424 = vector.extract_strided_slice %414 {offsets = [0, 96], sizes = [1, 32], strides = [1, 1]} : vector<1x128xf32> to vector<1x32xf32>
    %425 = arith.mulf %421, %424 : vector<1x32xf32>
    %426 = arith.addf %423, %425 : vector<1x32xf32>
    %427 = math.tanh %426 : vector<1x32xf32>
    %cst_98 = arith.constant 1.000000e+00 : f32
    %428 = vector.broadcast %cst_98 : f32 to vector<1x32xf32>
    %429 = arith.subf %428, %422 : vector<1x32xf32>
    %430 = arith.mulf %429, %427 : vector<1x32xf32>
    %431 = arith.mulf %422, %412 : vector<1x32xf32>
    %432 = arith.addf %430, %431 : vector<1x32xf32>
    %cst_99 = arith.constant dense<0.000000e+00> : vector<1x128xf32>
    %433 = tpu.matmul %432, %19, %cst_99 {dimension_numbers = #tpu.dot_dimension_numbers<[1], [0], [0], [1], [0, 0, 1, 1], [], []>} : vector<1x32xf32>, vector<32x128xf32>, vector<1x128xf32> -> vector<1x128xf32>
    %434 = arith.addf %433, %20 : vector<1x128xf32>
    %435 = vector.extract_strided_slice %434 {offsets = [0, 0], sizes = [1, 64], strides = [1, 1]} : vector<1x128xf32> to vector<1x64xf32>
    %436 = arith.negf %435 : vector<1x64xf32>
    %437 = math.exp %436 : vector<1x64xf32>
    %cst_100 = arith.constant 1.000000e+00 : f32
    %438 = vector.broadcast %cst_100 : f32 to vector<1x64xf32>
    %439 = arith.addf %438, %437 : vector<1x64xf32>
    %440 = arith.divf %438, %439 : vector<1x64xf32>
    %441 = vector.extract_strided_slice %440 {offsets = [0, 0], sizes = [1, 32], strides = [1, 1]} : vector<1x64xf32> to vector<1x32xf32>
    %442 = vector.extract_strided_slice %440 {offsets = [0, 32], sizes = [1, 32], strides = [1, 1]} : vector<1x64xf32> to vector<1x32xf32>
    %443 = vector.extract_strided_slice %434 {offsets = [0, 64], sizes = [1, 32], strides = [1, 1]} : vector<1x128xf32> to vector<1x32xf32>
    %444 = vector.extract_strided_slice %434 {offsets = [0, 96], sizes = [1, 32], strides = [1, 1]} : vector<1x128xf32> to vector<1x32xf32>
    %445 = arith.mulf %441, %444 : vector<1x32xf32>
    %446 = arith.addf %443, %445 : vector<1x32xf32>
    %447 = math.tanh %446 : vector<1x32xf32>
    %cst_101 = arith.constant 1.000000e+00 : f32
    %448 = vector.broadcast %cst_101 : f32 to vector<1x32xf32>
    %449 = arith.subf %448, %442 : vector<1x32xf32>
    %450 = arith.mulf %449, %447 : vector<1x32xf32>
    %451 = arith.mulf %442, %432 : vector<1x32xf32>
    %452 = arith.addf %450, %451 : vector<1x32xf32>
    %c4_i32 = arith.constant 4 : i32
    %453 = arith.addi %24, %c4_i32 : i32
    %454 = arith.index_cast %453 : i32 to index
    %c0_102 = arith.constant 0 : index
    %455 = vector.load %arg1[%454, %c0_102] : memref<8x128xf32, #tpu.memory_space<vmem>>, vector<1x128xf32>
    %cst_103 = arith.constant dense<0.000000e+00> : vector<1x128xf32>
    %456 = tpu.matmul %452, %4, %cst_103 {dimension_numbers = #tpu.dot_dimension_numbers<[1], [0], [0], [1], [0, 0, 1, 1], [], []>} : vector<1x32xf32>, vector<32x128xf32>, vector<1x128xf32> -> vector<1x128xf32>
    %457 = arith.addf %455, %456 : vector<1x128xf32>
    %458 = vector.extract_strided_slice %457 {offsets = [0, 0], sizes = [1, 64], strides = [1, 1]} : vector<1x128xf32> to vector<1x64xf32>
    %459 = arith.negf %458 : vector<1x64xf32>
    %460 = math.exp %459 : vector<1x64xf32>
    %cst_104 = arith.constant 1.000000e+00 : f32
    %461 = vector.broadcast %cst_104 : f32 to vector<1x64xf32>
    %462 = arith.addf %461, %460 : vector<1x64xf32>
    %463 = arith.divf %461, %462 : vector<1x64xf32>
    %464 = vector.extract_strided_slice %463 {offsets = [0, 0], sizes = [1, 32], strides = [1, 1]} : vector<1x64xf32> to vector<1x32xf32>
    %465 = vector.extract_strided_slice %463 {offsets = [0, 32], sizes = [1, 32], strides = [1, 1]} : vector<1x64xf32> to vector<1x32xf32>
    %466 = vector.extract_strided_slice %457 {offsets = [0, 64], sizes = [1, 32], strides = [1, 1]} : vector<1x128xf32> to vector<1x32xf32>
    %467 = vector.extract_strided_slice %457 {offsets = [0, 96], sizes = [1, 32], strides = [1, 1]} : vector<1x128xf32> to vector<1x32xf32>
    %468 = arith.mulf %464, %467 : vector<1x32xf32>
    %469 = arith.addf %466, %468 : vector<1x32xf32>
    %470 = math.tanh %469 : vector<1x32xf32>
    %cst_105 = arith.constant 1.000000e+00 : f32
    %471 = vector.broadcast %cst_105 : f32 to vector<1x32xf32>
    %472 = arith.subf %471, %465 : vector<1x32xf32>
    %473 = arith.mulf %472, %470 : vector<1x32xf32>
    %474 = arith.mulf %465, %452 : vector<1x32xf32>
    %475 = arith.addf %473, %474 : vector<1x32xf32>
    %cst_106 = arith.constant dense<0.000000e+00> : vector<1x128xf32>
    %476 = tpu.matmul %475, %6, %cst_106 {dimension_numbers = #tpu.dot_dimension_numbers<[1], [0], [0], [1], [0, 0, 1, 1], [], []>} : vector<1x32xf32>, vector<32x128xf32>, vector<1x128xf32> -> vector<1x128xf32>
    %cst_107 = arith.constant dense<0.000000e+00> : vector<1x128xf32>
    %477 = tpu.matmul %390, %8, %cst_107 {dimension_numbers = #tpu.dot_dimension_numbers<[1], [0], [0], [1], [0, 0, 1, 1], [], []>} : vector<1x32xf32>, vector<32x128xf32>, vector<1x128xf32> -> vector<1x128xf32>
    %478 = arith.addf %476, %477 : vector<1x128xf32>
    %479 = arith.addf %478, %9 : vector<1x128xf32>
    %480 = vector.extract_strided_slice %479 {offsets = [0, 0], sizes = [1, 64], strides = [1, 1]} : vector<1x128xf32> to vector<1x64xf32>
    %481 = arith.negf %480 : vector<1x64xf32>
    %482 = math.exp %481 : vector<1x64xf32>
    %cst_108 = arith.constant 1.000000e+00 : f32
    %483 = vector.broadcast %cst_108 : f32 to vector<1x64xf32>
    %484 = arith.addf %483, %482 : vector<1x64xf32>
    %485 = arith.divf %483, %484 : vector<1x64xf32>
    %486 = vector.extract_strided_slice %485 {offsets = [0, 0], sizes = [1, 32], strides = [1, 1]} : vector<1x64xf32> to vector<1x32xf32>
    %487 = vector.extract_strided_slice %485 {offsets = [0, 32], sizes = [1, 32], strides = [1, 1]} : vector<1x64xf32> to vector<1x32xf32>
    %488 = vector.extract_strided_slice %479 {offsets = [0, 64], sizes = [1, 32], strides = [1, 1]} : vector<1x128xf32> to vector<1x32xf32>
    %489 = vector.extract_strided_slice %479 {offsets = [0, 96], sizes = [1, 32], strides = [1, 1]} : vector<1x128xf32> to vector<1x32xf32>
    %490 = arith.mulf %486, %489 : vector<1x32xf32>
    %491 = arith.addf %488, %490 : vector<1x32xf32>
    %492 = math.tanh %491 : vector<1x32xf32>
    %cst_109 = arith.constant 1.000000e+00 : f32
    %493 = vector.broadcast %cst_109 : f32 to vector<1x32xf32>
    %494 = arith.subf %493, %487 : vector<1x32xf32>
    %495 = arith.mulf %494, %492 : vector<1x32xf32>
    %496 = arith.mulf %487, %390 : vector<1x32xf32>
    %497 = arith.addf %495, %496 : vector<1x32xf32>
    %cst_110 = arith.constant dense<0.000000e+00> : vector<1x128xf32>
    %498 = tpu.matmul %497, %11, %cst_110 {dimension_numbers = #tpu.dot_dimension_numbers<[1], [0], [0], [1], [0, 0, 1, 1], [], []>} : vector<1x32xf32>, vector<32x128xf32>, vector<1x128xf32> -> vector<1x128xf32>
    %cst_111 = arith.constant dense<0.000000e+00> : vector<1x128xf32>
    %499 = tpu.matmul %475, %13, %cst_111 {dimension_numbers = #tpu.dot_dimension_numbers<[1], [0], [0], [1], [0, 0, 1, 1], [], []>} : vector<1x32xf32>, vector<32x128xf32>, vector<1x128xf32> -> vector<1x128xf32>
    %500 = arith.addf %498, %499 : vector<1x128xf32>
    %501 = arith.addf %500, %14 : vector<1x128xf32>
    %502 = vector.extract_strided_slice %501 {offsets = [0, 0], sizes = [1, 64], strides = [1, 1]} : vector<1x128xf32> to vector<1x64xf32>
    %503 = arith.negf %502 : vector<1x64xf32>
    %504 = math.exp %503 : vector<1x64xf32>
    %cst_112 = arith.constant 1.000000e+00 : f32
    %505 = vector.broadcast %cst_112 : f32 to vector<1x64xf32>
    %506 = arith.addf %505, %504 : vector<1x64xf32>
    %507 = arith.divf %505, %506 : vector<1x64xf32>
    %508 = vector.extract_strided_slice %507 {offsets = [0, 0], sizes = [1, 32], strides = [1, 1]} : vector<1x64xf32> to vector<1x32xf32>
    %509 = vector.extract_strided_slice %507 {offsets = [0, 32], sizes = [1, 32], strides = [1, 1]} : vector<1x64xf32> to vector<1x32xf32>
    %510 = vector.extract_strided_slice %501 {offsets = [0, 64], sizes = [1, 32], strides = [1, 1]} : vector<1x128xf32> to vector<1x32xf32>
    %511 = vector.extract_strided_slice %501 {offsets = [0, 96], sizes = [1, 32], strides = [1, 1]} : vector<1x128xf32> to vector<1x32xf32>
    %512 = arith.mulf %508, %511 : vector<1x32xf32>
    %513 = arith.addf %510, %512 : vector<1x32xf32>
    %514 = math.tanh %513 : vector<1x32xf32>
    %cst_113 = arith.constant 1.000000e+00 : f32
    %515 = vector.broadcast %cst_113 : f32 to vector<1x32xf32>
    %516 = arith.subf %515, %509 : vector<1x32xf32>
    %517 = arith.mulf %516, %514 : vector<1x32xf32>
    %518 = arith.mulf %509, %475 : vector<1x32xf32>
    %519 = arith.addf %517, %518 : vector<1x32xf32>
    %cst_114 = arith.constant dense<0.000000e+00> : vector<1x128xf32>
    %520 = tpu.matmul %519, %16, %cst_114 {dimension_numbers = #tpu.dot_dimension_numbers<[1], [0], [0], [1], [0, 0, 1, 1], [], []>} : vector<1x32xf32>, vector<32x128xf32>, vector<1x128xf32> -> vector<1x128xf32>
    %521 = arith.addf %520, %17 : vector<1x128xf32>
    %522 = vector.extract_strided_slice %521 {offsets = [0, 0], sizes = [1, 64], strides = [1, 1]} : vector<1x128xf32> to vector<1x64xf32>
    %523 = arith.negf %522 : vector<1x64xf32>
    %524 = math.exp %523 : vector<1x64xf32>
    %cst_115 = arith.constant 1.000000e+00 : f32
    %525 = vector.broadcast %cst_115 : f32 to vector<1x64xf32>
    %526 = arith.addf %525, %524 : vector<1x64xf32>
    %527 = arith.divf %525, %526 : vector<1x64xf32>
    %528 = vector.extract_strided_slice %527 {offsets = [0, 0], sizes = [1, 32], strides = [1, 1]} : vector<1x64xf32> to vector<1x32xf32>
    %529 = vector.extract_strided_slice %527 {offsets = [0, 32], sizes = [1, 32], strides = [1, 1]} : vector<1x64xf32> to vector<1x32xf32>
    %530 = vector.extract_strided_slice %521 {offsets = [0, 64], sizes = [1, 32], strides = [1, 1]} : vector<1x128xf32> to vector<1x32xf32>
    %531 = vector.extract_strided_slice %521 {offsets = [0, 96], sizes = [1, 32], strides = [1, 1]} : vector<1x128xf32> to vector<1x32xf32>
    %532 = arith.mulf %528, %531 : vector<1x32xf32>
    %533 = arith.addf %530, %532 : vector<1x32xf32>
    %534 = math.tanh %533 : vector<1x32xf32>
    %cst_116 = arith.constant 1.000000e+00 : f32
    %535 = vector.broadcast %cst_116 : f32 to vector<1x32xf32>
    %536 = arith.subf %535, %529 : vector<1x32xf32>
    %537 = arith.mulf %536, %534 : vector<1x32xf32>
    %538 = arith.mulf %529, %519 : vector<1x32xf32>
    %539 = arith.addf %537, %538 : vector<1x32xf32>
    %cst_117 = arith.constant dense<0.000000e+00> : vector<1x128xf32>
    %540 = tpu.matmul %539, %19, %cst_117 {dimension_numbers = #tpu.dot_dimension_numbers<[1], [0], [0], [1], [0, 0, 1, 1], [], []>} : vector<1x32xf32>, vector<32x128xf32>, vector<1x128xf32> -> vector<1x128xf32>
    %541 = arith.addf %540, %20 : vector<1x128xf32>
    %542 = vector.extract_strided_slice %541 {offsets = [0, 0], sizes = [1, 64], strides = [1, 1]} : vector<1x128xf32> to vector<1x64xf32>
    %543 = arith.negf %542 : vector<1x64xf32>
    %544 = math.exp %543 : vector<1x64xf32>
    %cst_118 = arith.constant 1.000000e+00 : f32
    %545 = vector.broadcast %cst_118 : f32 to vector<1x64xf32>
    %546 = arith.addf %545, %544 : vector<1x64xf32>
    %547 = arith.divf %545, %546 : vector<1x64xf32>
    %548 = vector.extract_strided_slice %547 {offsets = [0, 0], sizes = [1, 32], strides = [1, 1]} : vector<1x64xf32> to vector<1x32xf32>
    %549 = vector.extract_strided_slice %547 {offsets = [0, 32], sizes = [1, 32], strides = [1, 1]} : vector<1x64xf32> to vector<1x32xf32>
    %550 = vector.extract_strided_slice %541 {offsets = [0, 64], sizes = [1, 32], strides = [1, 1]} : vector<1x128xf32> to vector<1x32xf32>
    %551 = vector.extract_strided_slice %541 {offsets = [0, 96], sizes = [1, 32], strides = [1, 1]} : vector<1x128xf32> to vector<1x32xf32>
    %552 = arith.mulf %548, %551 : vector<1x32xf32>
    %553 = arith.addf %550, %552 : vector<1x32xf32>
    %554 = math.tanh %553 : vector<1x32xf32>
    %cst_119 = arith.constant 1.000000e+00 : f32
    %555 = vector.broadcast %cst_119 : f32 to vector<1x32xf32>
    %556 = arith.subf %555, %549 : vector<1x32xf32>
    %557 = arith.mulf %556, %554 : vector<1x32xf32>
    %558 = arith.mulf %549, %539 : vector<1x32xf32>
    %559 = arith.addf %557, %558 : vector<1x32xf32>
    %c5_i32 = arith.constant 5 : i32
    %560 = arith.addi %24, %c5_i32 : i32
    %561 = arith.index_cast %560 : i32 to index
    %c0_120 = arith.constant 0 : index
    %562 = vector.load %arg1[%561, %c0_120] : memref<8x128xf32, #tpu.memory_space<vmem>>, vector<1x128xf32>
    %cst_121 = arith.constant dense<0.000000e+00> : vector<1x128xf32>
    %563 = tpu.matmul %559, %4, %cst_121 {dimension_numbers = #tpu.dot_dimension_numbers<[1], [0], [0], [1], [0, 0, 1, 1], [], []>} : vector<1x32xf32>, vector<32x128xf32>, vector<1x128xf32> -> vector<1x128xf32>
    %564 = arith.addf %562, %563 : vector<1x128xf32>
    %565 = vector.extract_strided_slice %564 {offsets = [0, 0], sizes = [1, 64], strides = [1, 1]} : vector<1x128xf32> to vector<1x64xf32>
    %566 = arith.negf %565 : vector<1x64xf32>
    %567 = math.exp %566 : vector<1x64xf32>
    %cst_122 = arith.constant 1.000000e+00 : f32
    %568 = vector.broadcast %cst_122 : f32 to vector<1x64xf32>
    %569 = arith.addf %568, %567 : vector<1x64xf32>
    %570 = arith.divf %568, %569 : vector<1x64xf32>
    %571 = vector.extract_strided_slice %570 {offsets = [0, 0], sizes = [1, 32], strides = [1, 1]} : vector<1x64xf32> to vector<1x32xf32>
    %572 = vector.extract_strided_slice %570 {offsets = [0, 32], sizes = [1, 32], strides = [1, 1]} : vector<1x64xf32> to vector<1x32xf32>
    %573 = vector.extract_strided_slice %564 {offsets = [0, 64], sizes = [1, 32], strides = [1, 1]} : vector<1x128xf32> to vector<1x32xf32>
    %574 = vector.extract_strided_slice %564 {offsets = [0, 96], sizes = [1, 32], strides = [1, 1]} : vector<1x128xf32> to vector<1x32xf32>
    %575 = arith.mulf %571, %574 : vector<1x32xf32>
    %576 = arith.addf %573, %575 : vector<1x32xf32>
    %577 = math.tanh %576 : vector<1x32xf32>
    %cst_123 = arith.constant 1.000000e+00 : f32
    %578 = vector.broadcast %cst_123 : f32 to vector<1x32xf32>
    %579 = arith.subf %578, %572 : vector<1x32xf32>
    %580 = arith.mulf %579, %577 : vector<1x32xf32>
    %581 = arith.mulf %572, %559 : vector<1x32xf32>
    %582 = arith.addf %580, %581 : vector<1x32xf32>
    %cst_124 = arith.constant dense<0.000000e+00> : vector<1x128xf32>
    %583 = tpu.matmul %582, %6, %cst_124 {dimension_numbers = #tpu.dot_dimension_numbers<[1], [0], [0], [1], [0, 0, 1, 1], [], []>} : vector<1x32xf32>, vector<32x128xf32>, vector<1x128xf32> -> vector<1x128xf32>
    %cst_125 = arith.constant dense<0.000000e+00> : vector<1x128xf32>
    %584 = tpu.matmul %497, %8, %cst_125 {dimension_numbers = #tpu.dot_dimension_numbers<[1], [0], [0], [1], [0, 0, 1, 1], [], []>} : vector<1x32xf32>, vector<32x128xf32>, vector<1x128xf32> -> vector<1x128xf32>
    %585 = arith.addf %583, %584 : vector<1x128xf32>
    %586 = arith.addf %585, %9 : vector<1x128xf32>
    %587 = vector.extract_strided_slice %586 {offsets = [0, 0], sizes = [1, 64], strides = [1, 1]} : vector<1x128xf32> to vector<1x64xf32>
    %588 = arith.negf %587 : vector<1x64xf32>
    %589 = math.exp %588 : vector<1x64xf32>
    %cst_126 = arith.constant 1.000000e+00 : f32
    %590 = vector.broadcast %cst_126 : f32 to vector<1x64xf32>
    %591 = arith.addf %590, %589 : vector<1x64xf32>
    %592 = arith.divf %590, %591 : vector<1x64xf32>
    %593 = vector.extract_strided_slice %592 {offsets = [0, 0], sizes = [1, 32], strides = [1, 1]} : vector<1x64xf32> to vector<1x32xf32>
    %594 = vector.extract_strided_slice %592 {offsets = [0, 32], sizes = [1, 32], strides = [1, 1]} : vector<1x64xf32> to vector<1x32xf32>
    %595 = vector.extract_strided_slice %586 {offsets = [0, 64], sizes = [1, 32], strides = [1, 1]} : vector<1x128xf32> to vector<1x32xf32>
    %596 = vector.extract_strided_slice %586 {offsets = [0, 96], sizes = [1, 32], strides = [1, 1]} : vector<1x128xf32> to vector<1x32xf32>
    %597 = arith.mulf %593, %596 : vector<1x32xf32>
    %598 = arith.addf %595, %597 : vector<1x32xf32>
    %599 = math.tanh %598 : vector<1x32xf32>
    %cst_127 = arith.constant 1.000000e+00 : f32
    %600 = vector.broadcast %cst_127 : f32 to vector<1x32xf32>
    %601 = arith.subf %600, %594 : vector<1x32xf32>
    %602 = arith.mulf %601, %599 : vector<1x32xf32>
    %603 = arith.mulf %594, %497 : vector<1x32xf32>
    %604 = arith.addf %602, %603 : vector<1x32xf32>
    %cst_128 = arith.constant dense<0.000000e+00> : vector<1x128xf32>
    %605 = tpu.matmul %604, %11, %cst_128 {dimension_numbers = #tpu.dot_dimension_numbers<[1], [0], [0], [1], [0, 0, 1, 1], [], []>} : vector<1x32xf32>, vector<32x128xf32>, vector<1x128xf32> -> vector<1x128xf32>
    %cst_129 = arith.constant dense<0.000000e+00> : vector<1x128xf32>
    %606 = tpu.matmul %582, %13, %cst_129 {dimension_numbers = #tpu.dot_dimension_numbers<[1], [0], [0], [1], [0, 0, 1, 1], [], []>} : vector<1x32xf32>, vector<32x128xf32>, vector<1x128xf32> -> vector<1x128xf32>
    %607 = arith.addf %605, %606 : vector<1x128xf32>
    %608 = arith.addf %607, %14 : vector<1x128xf32>
    %609 = vector.extract_strided_slice %608 {offsets = [0, 0], sizes = [1, 64], strides = [1, 1]} : vector<1x128xf32> to vector<1x64xf32>
    %610 = arith.negf %609 : vector<1x64xf32>
    %611 = math.exp %610 : vector<1x64xf32>
    %cst_130 = arith.constant 1.000000e+00 : f32
    %612 = vector.broadcast %cst_130 : f32 to vector<1x64xf32>
    %613 = arith.addf %612, %611 : vector<1x64xf32>
    %614 = arith.divf %612, %613 : vector<1x64xf32>
    %615 = vector.extract_strided_slice %614 {offsets = [0, 0], sizes = [1, 32], strides = [1, 1]} : vector<1x64xf32> to vector<1x32xf32>
    %616 = vector.extract_strided_slice %614 {offsets = [0, 32], sizes = [1, 32], strides = [1, 1]} : vector<1x64xf32> to vector<1x32xf32>
    %617 = vector.extract_strided_slice %608 {offsets = [0, 64], sizes = [1, 32], strides = [1, 1]} : vector<1x128xf32> to vector<1x32xf32>
    %618 = vector.extract_strided_slice %608 {offsets = [0, 96], sizes = [1, 32], strides = [1, 1]} : vector<1x128xf32> to vector<1x32xf32>
    %619 = arith.mulf %615, %618 : vector<1x32xf32>
    %620 = arith.addf %617, %619 : vector<1x32xf32>
    %621 = math.tanh %620 : vector<1x32xf32>
    %cst_131 = arith.constant 1.000000e+00 : f32
    %622 = vector.broadcast %cst_131 : f32 to vector<1x32xf32>
    %623 = arith.subf %622, %616 : vector<1x32xf32>
    %624 = arith.mulf %623, %621 : vector<1x32xf32>
    %625 = arith.mulf %616, %582 : vector<1x32xf32>
    %626 = arith.addf %624, %625 : vector<1x32xf32>
    %cst_132 = arith.constant dense<0.000000e+00> : vector<1x128xf32>
    %627 = tpu.matmul %626, %16, %cst_132 {dimension_numbers = #tpu.dot_dimension_numbers<[1], [0], [0], [1], [0, 0, 1, 1], [], []>} : vector<1x32xf32>, vector<32x128xf32>, vector<1x128xf32> -> vector<1x128xf32>
    %628 = arith.addf %627, %17 : vector<1x128xf32>
    %629 = vector.extract_strided_slice %628 {offsets = [0, 0], sizes = [1, 64], strides = [1, 1]} : vector<1x128xf32> to vector<1x64xf32>
    %630 = arith.negf %629 : vector<1x64xf32>
    %631 = math.exp %630 : vector<1x64xf32>
    %cst_133 = arith.constant 1.000000e+00 : f32
    %632 = vector.broadcast %cst_133 : f32 to vector<1x64xf32>
    %633 = arith.addf %632, %631 : vector<1x64xf32>
    %634 = arith.divf %632, %633 : vector<1x64xf32>
    %635 = vector.extract_strided_slice %634 {offsets = [0, 0], sizes = [1, 32], strides = [1, 1]} : vector<1x64xf32> to vector<1x32xf32>
    %636 = vector.extract_strided_slice %634 {offsets = [0, 32], sizes = [1, 32], strides = [1, 1]} : vector<1x64xf32> to vector<1x32xf32>
    %637 = vector.extract_strided_slice %628 {offsets = [0, 64], sizes = [1, 32], strides = [1, 1]} : vector<1x128xf32> to vector<1x32xf32>
    %638 = vector.extract_strided_slice %628 {offsets = [0, 96], sizes = [1, 32], strides = [1, 1]} : vector<1x128xf32> to vector<1x32xf32>
    %639 = arith.mulf %635, %638 : vector<1x32xf32>
    %640 = arith.addf %637, %639 : vector<1x32xf32>
    %641 = math.tanh %640 : vector<1x32xf32>
    %cst_134 = arith.constant 1.000000e+00 : f32
    %642 = vector.broadcast %cst_134 : f32 to vector<1x32xf32>
    %643 = arith.subf %642, %636 : vector<1x32xf32>
    %644 = arith.mulf %643, %641 : vector<1x32xf32>
    %645 = arith.mulf %636, %626 : vector<1x32xf32>
    %646 = arith.addf %644, %645 : vector<1x32xf32>
    %cst_135 = arith.constant dense<0.000000e+00> : vector<1x128xf32>
    %647 = tpu.matmul %646, %19, %cst_135 {dimension_numbers = #tpu.dot_dimension_numbers<[1], [0], [0], [1], [0, 0, 1, 1], [], []>} : vector<1x32xf32>, vector<32x128xf32>, vector<1x128xf32> -> vector<1x128xf32>
    %648 = arith.addf %647, %20 : vector<1x128xf32>
    %649 = vector.extract_strided_slice %648 {offsets = [0, 0], sizes = [1, 64], strides = [1, 1]} : vector<1x128xf32> to vector<1x64xf32>
    %650 = arith.negf %649 : vector<1x64xf32>
    %651 = math.exp %650 : vector<1x64xf32>
    %cst_136 = arith.constant 1.000000e+00 : f32
    %652 = vector.broadcast %cst_136 : f32 to vector<1x64xf32>
    %653 = arith.addf %652, %651 : vector<1x64xf32>
    %654 = arith.divf %652, %653 : vector<1x64xf32>
    %655 = vector.extract_strided_slice %654 {offsets = [0, 0], sizes = [1, 32], strides = [1, 1]} : vector<1x64xf32> to vector<1x32xf32>
    %656 = vector.extract_strided_slice %654 {offsets = [0, 32], sizes = [1, 32], strides = [1, 1]} : vector<1x64xf32> to vector<1x32xf32>
    %657 = vector.extract_strided_slice %648 {offsets = [0, 64], sizes = [1, 32], strides = [1, 1]} : vector<1x128xf32> to vector<1x32xf32>
    %658 = vector.extract_strided_slice %648 {offsets = [0, 96], sizes = [1, 32], strides = [1, 1]} : vector<1x128xf32> to vector<1x32xf32>
    %659 = arith.mulf %655, %658 : vector<1x32xf32>
    %660 = arith.addf %657, %659 : vector<1x32xf32>
    %661 = math.tanh %660 : vector<1x32xf32>
    %cst_137 = arith.constant 1.000000e+00 : f32
    %662 = vector.broadcast %cst_137 : f32 to vector<1x32xf32>
    %663 = arith.subf %662, %656 : vector<1x32xf32>
    %664 = arith.mulf %663, %661 : vector<1x32xf32>
    %665 = arith.mulf %656, %646 : vector<1x32xf32>
    %666 = arith.addf %664, %665 : vector<1x32xf32>
    %c6_i32 = arith.constant 6 : i32
    %667 = arith.addi %24, %c6_i32 : i32
    %668 = arith.index_cast %667 : i32 to index
    %c0_138 = arith.constant 0 : index
    %669 = vector.load %arg1[%668, %c0_138] : memref<8x128xf32, #tpu.memory_space<vmem>>, vector<1x128xf32>
    %cst_139 = arith.constant dense<0.000000e+00> : vector<1x128xf32>
    %670 = tpu.matmul %666, %4, %cst_139 {dimension_numbers = #tpu.dot_dimension_numbers<[1], [0], [0], [1], [0, 0, 1, 1], [], []>} : vector<1x32xf32>, vector<32x128xf32>, vector<1x128xf32> -> vector<1x128xf32>
    %671 = arith.addf %669, %670 : vector<1x128xf32>
    %672 = vector.extract_strided_slice %671 {offsets = [0, 0], sizes = [1, 64], strides = [1, 1]} : vector<1x128xf32> to vector<1x64xf32>
    %673 = arith.negf %672 : vector<1x64xf32>
    %674 = math.exp %673 : vector<1x64xf32>
    %cst_140 = arith.constant 1.000000e+00 : f32
    %675 = vector.broadcast %cst_140 : f32 to vector<1x64xf32>
    %676 = arith.addf %675, %674 : vector<1x64xf32>
    %677 = arith.divf %675, %676 : vector<1x64xf32>
    %678 = vector.extract_strided_slice %677 {offsets = [0, 0], sizes = [1, 32], strides = [1, 1]} : vector<1x64xf32> to vector<1x32xf32>
    %679 = vector.extract_strided_slice %677 {offsets = [0, 32], sizes = [1, 32], strides = [1, 1]} : vector<1x64xf32> to vector<1x32xf32>
    %680 = vector.extract_strided_slice %671 {offsets = [0, 64], sizes = [1, 32], strides = [1, 1]} : vector<1x128xf32> to vector<1x32xf32>
    %681 = vector.extract_strided_slice %671 {offsets = [0, 96], sizes = [1, 32], strides = [1, 1]} : vector<1x128xf32> to vector<1x32xf32>
    %682 = arith.mulf %678, %681 : vector<1x32xf32>
    %683 = arith.addf %680, %682 : vector<1x32xf32>
    %684 = math.tanh %683 : vector<1x32xf32>
    %cst_141 = arith.constant 1.000000e+00 : f32
    %685 = vector.broadcast %cst_141 : f32 to vector<1x32xf32>
    %686 = arith.subf %685, %679 : vector<1x32xf32>
    %687 = arith.mulf %686, %684 : vector<1x32xf32>
    %688 = arith.mulf %679, %666 : vector<1x32xf32>
    %689 = arith.addf %687, %688 : vector<1x32xf32>
    %cst_142 = arith.constant dense<0.000000e+00> : vector<1x128xf32>
    %690 = tpu.matmul %689, %6, %cst_142 {dimension_numbers = #tpu.dot_dimension_numbers<[1], [0], [0], [1], [0, 0, 1, 1], [], []>} : vector<1x32xf32>, vector<32x128xf32>, vector<1x128xf32> -> vector<1x128xf32>
    %cst_143 = arith.constant dense<0.000000e+00> : vector<1x128xf32>
    %691 = tpu.matmul %604, %8, %cst_143 {dimension_numbers = #tpu.dot_dimension_numbers<[1], [0], [0], [1], [0, 0, 1, 1], [], []>} : vector<1x32xf32>, vector<32x128xf32>, vector<1x128xf32> -> vector<1x128xf32>
    %692 = arith.addf %690, %691 : vector<1x128xf32>
    %693 = arith.addf %692, %9 : vector<1x128xf32>
    %694 = vector.extract_strided_slice %693 {offsets = [0, 0], sizes = [1, 64], strides = [1, 1]} : vector<1x128xf32> to vector<1x64xf32>
    %695 = arith.negf %694 : vector<1x64xf32>
    %696 = math.exp %695 : vector<1x64xf32>
    %cst_144 = arith.constant 1.000000e+00 : f32
    %697 = vector.broadcast %cst_144 : f32 to vector<1x64xf32>
    %698 = arith.addf %697, %696 : vector<1x64xf32>
    %699 = arith.divf %697, %698 : vector<1x64xf32>
    %700 = vector.extract_strided_slice %699 {offsets = [0, 0], sizes = [1, 32], strides = [1, 1]} : vector<1x64xf32> to vector<1x32xf32>
    %701 = vector.extract_strided_slice %699 {offsets = [0, 32], sizes = [1, 32], strides = [1, 1]} : vector<1x64xf32> to vector<1x32xf32>
    %702 = vector.extract_strided_slice %693 {offsets = [0, 64], sizes = [1, 32], strides = [1, 1]} : vector<1x128xf32> to vector<1x32xf32>
    %703 = vector.extract_strided_slice %693 {offsets = [0, 96], sizes = [1, 32], strides = [1, 1]} : vector<1x128xf32> to vector<1x32xf32>
    %704 = arith.mulf %700, %703 : vector<1x32xf32>
    %705 = arith.addf %702, %704 : vector<1x32xf32>
    %706 = math.tanh %705 : vector<1x32xf32>
    %cst_145 = arith.constant 1.000000e+00 : f32
    %707 = vector.broadcast %cst_145 : f32 to vector<1x32xf32>
    %708 = arith.subf %707, %701 : vector<1x32xf32>
    %709 = arith.mulf %708, %706 : vector<1x32xf32>
    %710 = arith.mulf %701, %604 : vector<1x32xf32>
    %711 = arith.addf %709, %710 : vector<1x32xf32>
    %cst_146 = arith.constant dense<0.000000e+00> : vector<1x128xf32>
    %712 = tpu.matmul %711, %11, %cst_146 {dimension_numbers = #tpu.dot_dimension_numbers<[1], [0], [0], [1], [0, 0, 1, 1], [], []>} : vector<1x32xf32>, vector<32x128xf32>, vector<1x128xf32> -> vector<1x128xf32>
    %cst_147 = arith.constant dense<0.000000e+00> : vector<1x128xf32>
    %713 = tpu.matmul %689, %13, %cst_147 {dimension_numbers = #tpu.dot_dimension_numbers<[1], [0], [0], [1], [0, 0, 1, 1], [], []>} : vector<1x32xf32>, vector<32x128xf32>, vector<1x128xf32> -> vector<1x128xf32>
    %714 = arith.addf %712, %713 : vector<1x128xf32>
    %715 = arith.addf %714, %14 : vector<1x128xf32>
    %716 = vector.extract_strided_slice %715 {offsets = [0, 0], sizes = [1, 64], strides = [1, 1]} : vector<1x128xf32> to vector<1x64xf32>
    %717 = arith.negf %716 : vector<1x64xf32>
    %718 = math.exp %717 : vector<1x64xf32>
    %cst_148 = arith.constant 1.000000e+00 : f32
    %719 = vector.broadcast %cst_148 : f32 to vector<1x64xf32>
    %720 = arith.addf %719, %718 : vector<1x64xf32>
    %721 = arith.divf %719, %720 : vector<1x64xf32>
    %722 = vector.extract_strided_slice %721 {offsets = [0, 0], sizes = [1, 32], strides = [1, 1]} : vector<1x64xf32> to vector<1x32xf32>
    %723 = vector.extract_strided_slice %721 {offsets = [0, 32], sizes = [1, 32], strides = [1, 1]} : vector<1x64xf32> to vector<1x32xf32>
    %724 = vector.extract_strided_slice %715 {offsets = [0, 64], sizes = [1, 32], strides = [1, 1]} : vector<1x128xf32> to vector<1x32xf32>
    %725 = vector.extract_strided_slice %715 {offsets = [0, 96], sizes = [1, 32], strides = [1, 1]} : vector<1x128xf32> to vector<1x32xf32>
    %726 = arith.mulf %722, %725 : vector<1x32xf32>
    %727 = arith.addf %724, %726 : vector<1x32xf32>
    %728 = math.tanh %727 : vector<1x32xf32>
    %cst_149 = arith.constant 1.000000e+00 : f32
    %729 = vector.broadcast %cst_149 : f32 to vector<1x32xf32>
    %730 = arith.subf %729, %723 : vector<1x32xf32>
    %731 = arith.mulf %730, %728 : vector<1x32xf32>
    %732 = arith.mulf %723, %689 : vector<1x32xf32>
    %733 = arith.addf %731, %732 : vector<1x32xf32>
    %cst_150 = arith.constant dense<0.000000e+00> : vector<1x128xf32>
    %734 = tpu.matmul %733, %16, %cst_150 {dimension_numbers = #tpu.dot_dimension_numbers<[1], [0], [0], [1], [0, 0, 1, 1], [], []>} : vector<1x32xf32>, vector<32x128xf32>, vector<1x128xf32> -> vector<1x128xf32>
    %735 = arith.addf %734, %17 : vector<1x128xf32>
    %736 = vector.extract_strided_slice %735 {offsets = [0, 0], sizes = [1, 64], strides = [1, 1]} : vector<1x128xf32> to vector<1x64xf32>
    %737 = arith.negf %736 : vector<1x64xf32>
    %738 = math.exp %737 : vector<1x64xf32>
    %cst_151 = arith.constant 1.000000e+00 : f32
    %739 = vector.broadcast %cst_151 : f32 to vector<1x64xf32>
    %740 = arith.addf %739, %738 : vector<1x64xf32>
    %741 = arith.divf %739, %740 : vector<1x64xf32>
    %742 = vector.extract_strided_slice %741 {offsets = [0, 0], sizes = [1, 32], strides = [1, 1]} : vector<1x64xf32> to vector<1x32xf32>
    %743 = vector.extract_strided_slice %741 {offsets = [0, 32], sizes = [1, 32], strides = [1, 1]} : vector<1x64xf32> to vector<1x32xf32>
    %744 = vector.extract_strided_slice %735 {offsets = [0, 64], sizes = [1, 32], strides = [1, 1]} : vector<1x128xf32> to vector<1x32xf32>
    %745 = vector.extract_strided_slice %735 {offsets = [0, 96], sizes = [1, 32], strides = [1, 1]} : vector<1x128xf32> to vector<1x32xf32>
    %746 = arith.mulf %742, %745 : vector<1x32xf32>
    %747 = arith.addf %744, %746 : vector<1x32xf32>
    %748 = math.tanh %747 : vector<1x32xf32>
    %cst_152 = arith.constant 1.000000e+00 : f32
    %749 = vector.broadcast %cst_152 : f32 to vector<1x32xf32>
    %750 = arith.subf %749, %743 : vector<1x32xf32>
    %751 = arith.mulf %750, %748 : vector<1x32xf32>
    %752 = arith.mulf %743, %733 : vector<1x32xf32>
    %753 = arith.addf %751, %752 : vector<1x32xf32>
    %cst_153 = arith.constant dense<0.000000e+00> : vector<1x128xf32>
    %754 = tpu.matmul %753, %19, %cst_153 {dimension_numbers = #tpu.dot_dimension_numbers<[1], [0], [0], [1], [0, 0, 1, 1], [], []>} : vector<1x32xf32>, vector<32x128xf32>, vector<1x128xf32> -> vector<1x128xf32>
    %755 = arith.addf %754, %20 : vector<1x128xf32>
    %756 = vector.extract_strided_slice %755 {offsets = [0, 0], sizes = [1, 64], strides = [1, 1]} : vector<1x128xf32> to vector<1x64xf32>
    %757 = arith.negf %756 : vector<1x64xf32>
    %758 = math.exp %757 : vector<1x64xf32>
    %cst_154 = arith.constant 1.000000e+00 : f32
    %759 = vector.broadcast %cst_154 : f32 to vector<1x64xf32>
    %760 = arith.addf %759, %758 : vector<1x64xf32>
    %761 = arith.divf %759, %760 : vector<1x64xf32>
    %762 = vector.extract_strided_slice %761 {offsets = [0, 0], sizes = [1, 32], strides = [1, 1]} : vector<1x64xf32> to vector<1x32xf32>
    %763 = vector.extract_strided_slice %761 {offsets = [0, 32], sizes = [1, 32], strides = [1, 1]} : vector<1x64xf32> to vector<1x32xf32>
    %764 = vector.extract_strided_slice %755 {offsets = [0, 64], sizes = [1, 32], strides = [1, 1]} : vector<1x128xf32> to vector<1x32xf32>
    %765 = vector.extract_strided_slice %755 {offsets = [0, 96], sizes = [1, 32], strides = [1, 1]} : vector<1x128xf32> to vector<1x32xf32>
    %766 = arith.mulf %762, %765 : vector<1x32xf32>
    %767 = arith.addf %764, %766 : vector<1x32xf32>
    %768 = math.tanh %767 : vector<1x32xf32>
    %cst_155 = arith.constant 1.000000e+00 : f32
    %769 = vector.broadcast %cst_155 : f32 to vector<1x32xf32>
    %770 = arith.subf %769, %763 : vector<1x32xf32>
    %771 = arith.mulf %770, %768 : vector<1x32xf32>
    %772 = arith.mulf %763, %753 : vector<1x32xf32>
    %773 = arith.addf %771, %772 : vector<1x32xf32>
    %c7_i32 = arith.constant 7 : i32
    %774 = arith.addi %24, %c7_i32 : i32
    %775 = arith.index_cast %774 : i32 to index
    %c0_156 = arith.constant 0 : index
    %776 = vector.load %arg1[%775, %c0_156] : memref<8x128xf32, #tpu.memory_space<vmem>>, vector<1x128xf32>
    %cst_157 = arith.constant dense<0.000000e+00> : vector<1x128xf32>
    %777 = tpu.matmul %773, %4, %cst_157 {dimension_numbers = #tpu.dot_dimension_numbers<[1], [0], [0], [1], [0, 0, 1, 1], [], []>} : vector<1x32xf32>, vector<32x128xf32>, vector<1x128xf32> -> vector<1x128xf32>
    %778 = arith.addf %776, %777 : vector<1x128xf32>
    %779 = vector.extract_strided_slice %778 {offsets = [0, 0], sizes = [1, 64], strides = [1, 1]} : vector<1x128xf32> to vector<1x64xf32>
    %780 = arith.negf %779 : vector<1x64xf32>
    %781 = math.exp %780 : vector<1x64xf32>
    %cst_158 = arith.constant 1.000000e+00 : f32
    %782 = vector.broadcast %cst_158 : f32 to vector<1x64xf32>
    %783 = arith.addf %782, %781 : vector<1x64xf32>
    %784 = arith.divf %782, %783 : vector<1x64xf32>
    %785 = vector.extract_strided_slice %784 {offsets = [0, 0], sizes = [1, 32], strides = [1, 1]} : vector<1x64xf32> to vector<1x32xf32>
    %786 = vector.extract_strided_slice %784 {offsets = [0, 32], sizes = [1, 32], strides = [1, 1]} : vector<1x64xf32> to vector<1x32xf32>
    %787 = vector.extract_strided_slice %778 {offsets = [0, 64], sizes = [1, 32], strides = [1, 1]} : vector<1x128xf32> to vector<1x32xf32>
    %788 = vector.extract_strided_slice %778 {offsets = [0, 96], sizes = [1, 32], strides = [1, 1]} : vector<1x128xf32> to vector<1x32xf32>
    %789 = arith.mulf %785, %788 : vector<1x32xf32>
    %790 = arith.addf %787, %789 : vector<1x32xf32>
    %791 = math.tanh %790 : vector<1x32xf32>
    %cst_159 = arith.constant 1.000000e+00 : f32
    %792 = vector.broadcast %cst_159 : f32 to vector<1x32xf32>
    %793 = arith.subf %792, %786 : vector<1x32xf32>
    %794 = arith.mulf %793, %791 : vector<1x32xf32>
    %795 = arith.mulf %786, %773 : vector<1x32xf32>
    %796 = arith.addf %794, %795 : vector<1x32xf32>
    %cst_160 = arith.constant dense<0.000000e+00> : vector<1x128xf32>
    %797 = tpu.matmul %796, %6, %cst_160 {dimension_numbers = #tpu.dot_dimension_numbers<[1], [0], [0], [1], [0, 0, 1, 1], [], []>} : vector<1x32xf32>, vector<32x128xf32>, vector<1x128xf32> -> vector<1x128xf32>
    %cst_161 = arith.constant dense<0.000000e+00> : vector<1x128xf32>
    %798 = tpu.matmul %711, %8, %cst_161 {dimension_numbers = #tpu.dot_dimension_numbers<[1], [0], [0], [1], [0, 0, 1, 1], [], []>} : vector<1x32xf32>, vector<32x128xf32>, vector<1x128xf32> -> vector<1x128xf32>
    %799 = arith.addf %797, %798 : vector<1x128xf32>
    %800 = arith.addf %799, %9 : vector<1x128xf32>
    %801 = vector.extract_strided_slice %800 {offsets = [0, 0], sizes = [1, 64], strides = [1, 1]} : vector<1x128xf32> to vector<1x64xf32>
    %802 = arith.negf %801 : vector<1x64xf32>
    %803 = math.exp %802 : vector<1x64xf32>
    %cst_162 = arith.constant 1.000000e+00 : f32
    %804 = vector.broadcast %cst_162 : f32 to vector<1x64xf32>
    %805 = arith.addf %804, %803 : vector<1x64xf32>
    %806 = arith.divf %804, %805 : vector<1x64xf32>
    %807 = vector.extract_strided_slice %806 {offsets = [0, 0], sizes = [1, 32], strides = [1, 1]} : vector<1x64xf32> to vector<1x32xf32>
    %808 = vector.extract_strided_slice %806 {offsets = [0, 32], sizes = [1, 32], strides = [1, 1]} : vector<1x64xf32> to vector<1x32xf32>
    %809 = vector.extract_strided_slice %800 {offsets = [0, 64], sizes = [1, 32], strides = [1, 1]} : vector<1x128xf32> to vector<1x32xf32>
    %810 = vector.extract_strided_slice %800 {offsets = [0, 96], sizes = [1, 32], strides = [1, 1]} : vector<1x128xf32> to vector<1x32xf32>
    %811 = arith.mulf %807, %810 : vector<1x32xf32>
    %812 = arith.addf %809, %811 : vector<1x32xf32>
    %813 = math.tanh %812 : vector<1x32xf32>
    %cst_163 = arith.constant 1.000000e+00 : f32
    %814 = vector.broadcast %cst_163 : f32 to vector<1x32xf32>
    %815 = arith.subf %814, %808 : vector<1x32xf32>
    %816 = arith.mulf %815, %813 : vector<1x32xf32>
    %817 = arith.mulf %808, %711 : vector<1x32xf32>
    %818 = arith.addf %816, %817 : vector<1x32xf32>
    %cst_164 = arith.constant dense<0.000000e+00> : vector<1x128xf32>
    %819 = tpu.matmul %818, %11, %cst_164 {dimension_numbers = #tpu.dot_dimension_numbers<[1], [0], [0], [1], [0, 0, 1, 1], [], []>} : vector<1x32xf32>, vector<32x128xf32>, vector<1x128xf32> -> vector<1x128xf32>
    %cst_165 = arith.constant dense<0.000000e+00> : vector<1x128xf32>
    %820 = tpu.matmul %796, %13, %cst_165 {dimension_numbers = #tpu.dot_dimension_numbers<[1], [0], [0], [1], [0, 0, 1, 1], [], []>} : vector<1x32xf32>, vector<32x128xf32>, vector<1x128xf32> -> vector<1x128xf32>
    %821 = arith.addf %819, %820 : vector<1x128xf32>
    %822 = arith.addf %821, %14 : vector<1x128xf32>
    %823 = vector.extract_strided_slice %822 {offsets = [0, 0], sizes = [1, 64], strides = [1, 1]} : vector<1x128xf32> to vector<1x64xf32>
    %824 = arith.negf %823 : vector<1x64xf32>
    %825 = math.exp %824 : vector<1x64xf32>
    %cst_166 = arith.constant 1.000000e+00 : f32
    %826 = vector.broadcast %cst_166 : f32 to vector<1x64xf32>
    %827 = arith.addf %826, %825 : vector<1x64xf32>
    %828 = arith.divf %826, %827 : vector<1x64xf32>
    %829 = vector.extract_strided_slice %828 {offsets = [0, 0], sizes = [1, 32], strides = [1, 1]} : vector<1x64xf32> to vector<1x32xf32>
    %830 = vector.extract_strided_slice %828 {offsets = [0, 32], sizes = [1, 32], strides = [1, 1]} : vector<1x64xf32> to vector<1x32xf32>
    %831 = vector.extract_strided_slice %822 {offsets = [0, 64], sizes = [1, 32], strides = [1, 1]} : vector<1x128xf32> to vector<1x32xf32>
    %832 = vector.extract_strided_slice %822 {offsets = [0, 96], sizes = [1, 32], strides = [1, 1]} : vector<1x128xf32> to vector<1x32xf32>
    %833 = arith.mulf %829, %832 : vector<1x32xf32>
    %834 = arith.addf %831, %833 : vector<1x32xf32>
    %835 = math.tanh %834 : vector<1x32xf32>
    %cst_167 = arith.constant 1.000000e+00 : f32
    %836 = vector.broadcast %cst_167 : f32 to vector<1x32xf32>
    %837 = arith.subf %836, %830 : vector<1x32xf32>
    %838 = arith.mulf %837, %835 : vector<1x32xf32>
    %839 = arith.mulf %830, %796 : vector<1x32xf32>
    %840 = arith.addf %838, %839 : vector<1x32xf32>
    %cst_168 = arith.constant dense<0.000000e+00> : vector<1x128xf32>
    %841 = tpu.matmul %840, %16, %cst_168 {dimension_numbers = #tpu.dot_dimension_numbers<[1], [0], [0], [1], [0, 0, 1, 1], [], []>} : vector<1x32xf32>, vector<32x128xf32>, vector<1x128xf32> -> vector<1x128xf32>
    %842 = arith.addf %841, %17 : vector<1x128xf32>
    %843 = vector.extract_strided_slice %842 {offsets = [0, 0], sizes = [1, 64], strides = [1, 1]} : vector<1x128xf32> to vector<1x64xf32>
    %844 = arith.negf %843 : vector<1x64xf32>
    %845 = math.exp %844 : vector<1x64xf32>
    %cst_169 = arith.constant 1.000000e+00 : f32
    %846 = vector.broadcast %cst_169 : f32 to vector<1x64xf32>
    %847 = arith.addf %846, %845 : vector<1x64xf32>
    %848 = arith.divf %846, %847 : vector<1x64xf32>
    %849 = vector.extract_strided_slice %848 {offsets = [0, 0], sizes = [1, 32], strides = [1, 1]} : vector<1x64xf32> to vector<1x32xf32>
    %850 = vector.extract_strided_slice %848 {offsets = [0, 32], sizes = [1, 32], strides = [1, 1]} : vector<1x64xf32> to vector<1x32xf32>
    %851 = vector.extract_strided_slice %842 {offsets = [0, 64], sizes = [1, 32], strides = [1, 1]} : vector<1x128xf32> to vector<1x32xf32>
    %852 = vector.extract_strided_slice %842 {offsets = [0, 96], sizes = [1, 32], strides = [1, 1]} : vector<1x128xf32> to vector<1x32xf32>
    %853 = arith.mulf %849, %852 : vector<1x32xf32>
    %854 = arith.addf %851, %853 : vector<1x32xf32>
    %855 = math.tanh %854 : vector<1x32xf32>
    %cst_170 = arith.constant 1.000000e+00 : f32
    %856 = vector.broadcast %cst_170 : f32 to vector<1x32xf32>
    %857 = arith.subf %856, %850 : vector<1x32xf32>
    %858 = arith.mulf %857, %855 : vector<1x32xf32>
    %859 = arith.mulf %850, %840 : vector<1x32xf32>
    %860 = arith.addf %858, %859 : vector<1x32xf32>
    %cst_171 = arith.constant dense<0.000000e+00> : vector<1x128xf32>
    %861 = tpu.matmul %860, %19, %cst_171 {dimension_numbers = #tpu.dot_dimension_numbers<[1], [0], [0], [1], [0, 0, 1, 1], [], []>} : vector<1x32xf32>, vector<32x128xf32>, vector<1x128xf32> -> vector<1x128xf32>
    %862 = arith.addf %861, %20 : vector<1x128xf32>
    %863 = vector.extract_strided_slice %862 {offsets = [0, 0], sizes = [1, 64], strides = [1, 1]} : vector<1x128xf32> to vector<1x64xf32>
    %864 = arith.negf %863 : vector<1x64xf32>
    %865 = math.exp %864 : vector<1x64xf32>
    %cst_172 = arith.constant 1.000000e+00 : f32
    %866 = vector.broadcast %cst_172 : f32 to vector<1x64xf32>
    %867 = arith.addf %866, %865 : vector<1x64xf32>
    %868 = arith.divf %866, %867 : vector<1x64xf32>
    %869 = vector.extract_strided_slice %868 {offsets = [0, 0], sizes = [1, 32], strides = [1, 1]} : vector<1x64xf32> to vector<1x32xf32>
    %870 = vector.extract_strided_slice %868 {offsets = [0, 32], sizes = [1, 32], strides = [1, 1]} : vector<1x64xf32> to vector<1x32xf32>
    %871 = vector.extract_strided_slice %862 {offsets = [0, 64], sizes = [1, 32], strides = [1, 1]} : vector<1x128xf32> to vector<1x32xf32>
    %872 = vector.extract_strided_slice %862 {offsets = [0, 96], sizes = [1, 32], strides = [1, 1]} : vector<1x128xf32> to vector<1x32xf32>
    %873 = arith.mulf %869, %872 : vector<1x32xf32>
    %874 = arith.addf %871, %873 : vector<1x32xf32>
    %875 = math.tanh %874 : vector<1x32xf32>
    %cst_173 = arith.constant 1.000000e+00 : f32
    %876 = vector.broadcast %cst_173 : f32 to vector<1x32xf32>
    %877 = arith.subf %876, %870 : vector<1x32xf32>
    %878 = arith.mulf %877, %875 : vector<1x32xf32>
    %879 = arith.mulf %870, %860 : vector<1x32xf32>
    %880 = arith.addf %878, %879 : vector<1x32xf32>
    %881 = tpu.concatenate %131, %238, %345, %452, %559, %666, %773, %880 in 0 : vector<1x32xf32>, vector<1x32xf32>, vector<1x32xf32>, vector<1x32xf32>, vector<1x32xf32>, vector<1x32xf32>, vector<1x32xf32>, vector<1x32xf32> -> vector<8x32xf32>
    %882 = arith.index_cast %24 : i32 to index
    %c0_174 = arith.constant 0 : index
    %883 = vector.load %arg10[%882, %c0_174] : memref<8x32xf32, #tpu.memory_space<vmem>>, vector<8x32xf32>
    tpu.vector_store %arg10[%882, %c0_174], %881 {strides = array<i32>} : memref<8x32xf32, #tpu.memory_space<vmem>>, vector<8x32xf32>,
    %c1_i32_175 = arith.constant 1 : i32
    %c0_176 = arith.constant 0 : index
    %c0_177 = arith.constant 0 : index
    %884 = vector.load %arg8[%c0_176, %c0_177] : memref<1x32xf32, #tpu.memory_space<vmem>>, vector<1x32xf32>
    tpu.vector_store %arg8[%c0_176, %c0_177], %880 {strides = array<i32>} : memref<1x32xf32, #tpu.memory_space<vmem>>, vector<1x32xf32>,
    %c0_178 = arith.constant 0 : index
    %c0_179 = arith.constant 0 : index
    %885 = vector.load %arg9[%c0_178, %c0_179] : memref<1x32xf32, #tpu.memory_space<vmem>>, vector<1x32xf32>
    tpu.vector_store %arg9[%c0_178, %c0_179], %818 {strides = array<i32>} : memref<1x32xf32, #tpu.memory_space<vmem>>, vector<1x32xf32>,
    %c0_180 = arith.constant 0 : index
    %c0_181 = arith.constant 0 : index
    %886 = vector.load %arg5[%c0_180, %c0_181] : memref<4x32xf32, #tpu.memory_space<vmem>>, vector<4x32xf32>
    %c0_182 = arith.constant 0 : index
    %c0_183 = arith.constant 0 : index
    %887 = vector.load %arg10[%c0_182, %c0_183] : memref<8x32xf32, #tpu.memory_space<vmem>>, vector<8x32xf32>
    %888 = tpu.transpose %887, [1, 0] : vector<8x32xf32> -> vector<32x8xf32>
    %cst_184 = arith.constant dense<0.000000e+00> : vector<4x8xf32>
    %889 = tpu.matmul %886, %888, %cst_184 {dimension_numbers = #tpu.dot_dimension_numbers<[1], [0], [0], [1], [0, 0, 1, 1], [], []>} : vector<4x32xf32>, vector<32x8xf32>, vector<4x8xf32> -> vector<4x8xf32>
    %c0_185 = arith.constant 0 : index
    %c0_186 = arith.constant 0 : index
    %890 = vector.load %arg6[%c0_185, %c0_186] : memref<4x1xf32, #tpu.memory_space<vmem>>, vector<4x1xf32>
    %891 = vector.broadcast %890 : vector<4x1xf32> to vector<4x8xf32>
    %892 = arith.addf %889, %891 : vector<4x8xf32>
    %893 = math.tanh %892 : vector<4x8xf32>
    %c0_187 = arith.constant 0 : index
    %c0_188 = arith.constant 0 : index
    %894 = vector.load %arg7[%c0_187, %c0_188] : memref<4x8xf32, #tpu.memory_space<vmem>>, vector<4x8xf32>
    tpu.vector_store %arg7[%c0_187, %c0_188], %893 {strides = array<i32>} : memref<4x8xf32, #tpu.memory_space<vmem>>, vector<4x8xf32>,
    return
  }
  func.func @transform_0(%arg0: i32) -> (i32, i32) {
    %c0_i32 = arith.constant 0 : i32
    %c0_i32_0 = arith.constant 0 : i32
    return %arg0, %c0_i32 : i32, i32
  }
  func.func @transform_1(%arg0: i32) -> (i32, i32, i32) {
    %c0_i32 = arith.constant 0 : i32
    %c0_i32_0 = arith.constant 0 : i32
    %c0_i32_1 = arith.constant 0 : i32
    %c0_i32_2 = arith.constant 0 : i32
    return %c0_i32, %c0_i32_0, %c0_i32_1 : i32, i32, i32
  }
  func.func @transform_2(%arg0: i32) -> (i32, i32, i32) {
    %c0_i32 = arith.constant 0 : i32
    %c0_i32_0 = arith.constant 0 : i32
    %c0_i32_1 = arith.constant 0 : i32
    %c0_i32_2 = arith.constant 0 : i32
    return %c0_i32, %c0_i32_0, %c0_i32_1 : i32, i32, i32
  }
  func.func @transform_3(%arg0: i32) -> (i32, i32) {
    %c0_i32 = arith.constant 0 : i32
    %c0_i32_0 = arith.constant 0 : i32
    %c0_i32_1 = arith.constant 0 : i32
    return %c0_i32, %c0_i32_0 : i32, i32
  }
  func.func @transform_4(%arg0: i32) -> (i32, i32) {
    %c0_i32 = arith.constant 0 : i32
    %c0_i32_0 = arith.constant 0 : i32
    %c0_i32_1 = arith.constant 0 : i32
    return %c0_i32, %c0_i32_0 : i32, i32
  }
  func.func @transform_5(%arg0: i32) -> (i32, i32) {
    %c0_i32 = arith.constant 0 : i32
    %c0_i32_0 = arith.constant 0 : i32
    %c0_i32_1 = arith.constant 0 : i32
    return %c0_i32, %c0_i32_0 : i32, i32
  }
  func.func @transform_6(%arg0: i32) -> (i32, i32) {
    %c0_i32 = arith.constant 0 : i32
    %c0_i32_0 = arith.constant 0 : i32
    return %c0_i32, %arg0 : i32, i32
  }
}

</mosaic_0001>

<bundles_post_ra>
// kernel: tpu_custom_call.1
= control target key start
LH: loop header
LB: loop body
LE: loop exit
PB: predicated region body
PF: predicated region fallthrough
CT: control target
= control target key end

     0   :  { %11 = vsyncpa [#allocation6], 0  ;;  %s8115_s0 = inlined_call_operand.hbm [shape: f32[8,128], index: 0, kind: input, shape index: {}]   ;;  %s8116_s1 = inlined_call_operand.hbm [shape: f32[5,32,128], index: 1, kind: input, shape index: {}]   ;;  %s8117_s2 = inlined_call_operand.hbm [shape: f32[2,32,128], index: 2, kind: input, shape index: {}]   ;;  %s8118_s3 = inlined_call_operand.vmem [shape: f32[4,128], index: 3, kind: input, shape index: {}]   ;;  %s8119_s4 = inlined_call_operand.vmem [shape: f32[4,32], index: 4, kind: input, shape index: {}]   ;;  %s8120_s5 = inlined_call_operand.vmem [shape: f32[4,1], index: 5, kind: input, shape index: {}]   ;;  %s8121_s6 = inlined_call_operand.hbm [shape: f32[4,8], index: 6, kind: output, shape index: {}]  }
   0x1   :  { %12 = vsyncpa [#allocation9], 0 }
   0x2   :  { %13 = vsyncpa [#allocation7], 0  ;;  %s6848_s21 = smov [#allocation8]  }
   0x3   :  { %s29_s22 = sshll.u32 %s6848_s21, 4  ;;  %s30_s22 = int_to_ptr.vmem [resolvable:$true] %s29_s22 }
   0x4   :  { %s6770_s23 = scalar_lea.vmem %s30_s22, 2560  ;;  %p6775_p1 = scmp.lt.s32.totalorder %s30_s22, %s30_s22 }
   0x5   :  { %p6771_p0 = scmp.ne.s32.totalorder %s30_s22, %s6770_s23  ;;  %p6776_p2 = scmp.lt.s32.totalorder %s6770_s23, %s6770_s23 }
   0x7   :  { %p6777_p3 = por %p6776_p2, %p6775_p1 }
   0x9   :  { %p6778_p4 = pnand %p6777_p3, %p6771_p0 }
   0xb   :  { %6781 = shalt.err (!%p6778_p4)
}
   0xc   :  { %s6849_s24 = smov 128   ;;  %s6850_s25 = smov 8  }
   0xd   :  { %35 = dma.hbm_to_vmem [thread:$0]  %s8116_s1, 2560, %s30_s22, [#allocation9], %s6849_s24, %s6849_s24, %s6850_s25  }
   0xe   :  { %s6851_s28 = smov [#allocation5]   ;;  %s6852_s30 = smov [#allocation10]  }
   0xf   :  { %s20_s29 = sshll.u32 %s6851_s28, 4  ;;  %s41_s7 = sshll.u32 %s6852_s30, 4  ;;  %s21_s29 = int_to_ptr.vmem [resolvable:$true] %s20_s29  ;;  %s42_s7 = int_to_ptr.vmem [resolvable:$true] %s41_s7 }
  0x10   :  { %s6790_s8 = scalar_lea.vmem %s21_s29, 128  ;;  %p6795_p6 = scmp.lt.s32.totalorder %s21_s29, %s21_s29 }
  0x11   :  { %p6791_p5 = scmp.ne.s32.totalorder %s21_s29, %s6790_s8  ;;  %p6796_p7 = scmp.lt.s32.totalorder %s6790_s8, %s6790_s8 }
  0x13   :  { %p6797_p8 = por %p6796_p7, %p6795_p6 }
  0x15   :  { %p6798_p9 = pnand %p6797_p8, %p6791_p5 }
  0x17   :  { %6801 = shalt.err (!%p6798_p9)
}
  0x18   :  { %23 = dma.hbm_to_vmem [thread:$0]  %s8115_s0, 128, %s21_s29, [#allocation6]  }
  0x19   :  { %s6810_s11 = scalar_lea.vmem %s42_s7, 1024  ;;  %p6815_p11 = scmp.lt.s32.totalorder %s42_s7, %s42_s7 }
  0x1a   :  { %p6811_p10 = scmp.ne.s32.totalorder %s42_s7, %s6810_s11  ;;  %p6816_p12 = scmp.lt.s32.totalorder %s6810_s11, %s6810_s11 }
  0x1c   :  { %p6817_p13 = por %p6816_p12, %p6815_p11 }
  0x1e   :  { %p6818_p0 = pnand %p6817_p13, %p6811_p10 }
  0x20   :  { %6821 = shalt.err (!%p6818_p0)
}
  0x21   :  { %47 = dma.hbm_to_vmem [thread:$0]  %s8117_s2, 1024, %s42_s7, [#allocation9], %s6849_s24, %s6849_s24, %s6850_s25  }
  0x22   :  { %6842 = dma.done.wait [#allocation6], 128  }
  0x23   :  { %6843 = vsyncadd [#allocation6], 4294967168 }
  0x24   :  { %6844 = dma.done.wait [#allocation9], 3584  }
  0x25   :  { %6845 = vsyncadd [#allocation9], 4294963712  ;;  %vm67_vm0 = vcmask 253952   ;;  %v6853_v0 = vmov 0.0   ;;  %vm6854_vm1 = vmmov 0   ;;  %v6914_v1 = vld [vmem:[#allocation8 + $0x18] sm:$0xff]  ;;  %v208_v18 = vlaneseq }
  0x26   :  { %5822 = vmatprep.subr.mxu0 %v6853_v0  ;;  %5830 = vmatprep.mubr.msk.f32.mxu0 %vm6854_vm1, %v6853_v0  ;;  %68 = vst.msk [vmem:[#allocation2] sm:$0x1] %vm67_vm0, %v6853_v0  ;;  %69 = vst.msk [vmem:[#allocation3] sm:$0x1] %vm67_vm0, %v6853_v0  ;;  %v6916_v2 = vld [vmem:[#allocation8 + $0x10] sm:$0xff]  ;;  %v6920_v3 = vld [vmem:[#allocation8 + $0x8] sm:$0xff] }
  0x27   :  { %5833 = vmatprep.subr.mxu1 %v6853_v0  ;;  %5841 = vmatprep.mubr.msk.f32.mxu1 %vm6854_vm1, %v6853_v0  ;;  %v6924_v4 = vld [vmem:[#allocation8] sm:$0xff]  ;;  %vm110_vm2 = vcmask 261120   ;;  %v109_v6 = vld [vmem:[#allocation5] sm:$0x1]  ;;  %s6855_s0 = smov 32   ;;  %s6856_s2 = smov 64  }
  0x28   :  { %5823 = vmatpush3.msra.mxu0 %v6914_v1  ;;  %v6935_v19 = vshrl.u32 %v208_v18, 7  ;;  %v6937_v20 = vld [vmem:[#allocation8 + $0x38] sm:$0xff]  ;;  %v6939_v21 = vld [vmem:[#allocation8 + $0x30] sm:$0xff]  ;;  %v6946_v24 = vld [vmem:[#allocation8 + $0x28] sm:$0xff]  ;;  %s6857_s13 = smov 96   ;;  %vm5306_vm3 = vcmask 1040384  }
  0x29   :  { %5824 = vmatprep.subr.mxu0 %v6853_v0  ;;  %5834 = vmatpush3.msra.mxu1 %v6937_v20  ;;  %v6943_v23 = vld [vmem:[#allocation10 + $0x18] sm:$0xff]  ;;  %v6949_v25 = vld [vmem:[#allocation10 + $0x10] sm:$0xff]  ;;  %v6954_v27 = vld [vmem:[#allocation8 + $0x20] sm:$0xff]  ;;  %vm5308_vm4 = vcmask 1041408   ;;  %vm5310_vm5 = vcmask 1042432   ;;  %vm5312_vm6 = vcmask 1043456  }
  0x2a   :  { %5825 = vmatpush3.msra.mxu0 %v6916_v2  ;;  %v210_v22 = vsub.s32 0, %v6935_v19  ;;  %5835 = vmatprep.subr.mxu1 %v6853_v0  ;;  %v6957_v28 = vld [vmem:[#allocation10 + $0x8] sm:$0xff]  ;;  %v6964_v31 = vld [vmem:[#allocation8 + $0x58] sm:$0xff]  ;;  %v6971_v32 = vld [vmem:[#allocation8 + $0x50] sm:$0xff]  ;;  %vm5314_vm7 = vcmask 1044480   ;;  %vm5316_vm8 = vcmask 1045504  }
  0x2b   :  { %5826 = vmatprep.subr.mxu0 %v6853_v0  ;;  %5836 = vmatpush3.msra.mxu1 %v6939_v21  ;;  %v6973_v33 = vld [vmem:[#allocation10] sm:$0xff]  ;;  %v6978_v34 = vld [vmem:[#allocation8 + $0x48] sm:$0xff]  ;;  %v7014_v61 = vld [vmem:[#allocation10 + $0x38] sm:$0xff]  ;;  %vm5318_vm9 = vcmask 1046528   ;;  %vm5417_vm10 = vcmask 60416  }
  0x2c   :  { %5827 = vmatpush3.msra.mxu0 %v6920_v3  ;;  %5837 = vmatprep.subr.mxu1 %v6853_v0  ;;  %v6984_v35 = vld [vmem:[#allocation8 + $0x40] sm:$0xff]  ;;  %v7006_v45 = vld [vmem:[%s8118_s3] sm:$0x1]  ;;  %v7016_v62 = vld [vmem:[#allocation10 + $0x30] sm:$0xff] }
  0x2d   :  { %v107_v5 = vld [vmem:[#allocation2] sm:$0x1]  ;;  %5828 = vmatprep.subr.mxu0 %v6853_v0  ;;  %5838 = vmatpush3.msra.mxu1 %v6946_v24  ;;  %v108_v30 = vld [vmem:[#allocation3] sm:$0x1] }
  0x2e   :  { %5829 = vmatpush3.msra.mxu0 %v6924_v4  ;;  %v211_v29 = vrot.slane %v107_v5, %v210_v22  ;;  %5839 = vmatprep.subr.mxu1 %v6853_v0  ;;  %v392_v58 = vrot.slane %v108_v30, %v210_v22  ;;  %v7020_v63 = vld [vmem:[#allocation10 + $0x28] sm:$0xff] }
  0x2f   :  { %5831 = vmatmul.mubr.msk.f32.vlgmr.msra.gmra.mxu0 %vm110_vm2, %v107_v5  ;;  %5844 = vmatprep.subr.mxu0 %v6853_v0  ;;  %v7024_v5 = vld [vmem:[#allocation10 + $0x20] sm:$0xff] }
  0x30   :  { %5852 = vmatprep.mubr.msk.f32.mxu0 %vm6854_vm1, %v6853_v0  ;;  %5845 = vmatpush3.msra.mxu0 %v6943_v23 }
  0x31   :  { %5846 = vmatprep.subr.mxu0 %v6853_v0  ;;  %5840 = vmatpush3.msra.mxu1 %v6954_v27 }
  0x32   :  { %5847 = vmatpush3.msra.mxu0 %v6949_v25  ;;  %5855 = vmatprep.subr.mxu1 %v6853_v0 }
  0x33   :  { %5848 = vmatprep.subr.mxu0 %v6853_v0  ;;  %5842 = vmatmul.mubr.msk.f32.vlgmr.msra.gmra.mxu1 %vm110_vm2, %v108_v30 }
  0x34   :  { %5849 = vmatpush3.msra.mxu0 %v6957_v28  ;;  %5856 = vmatpush3.msra.mxu1 %v6964_v31 }
  0x35   :  { %5857 = vmatprep.subr.mxu1 %v6853_v0  ;;  %5850 = vmatprep.subr.mxu0 %v6853_v0 }
  0x36   :  { %5858 = vmatpush3.msra.mxu1 %v6971_v32  ;;  %5851 = vmatpush3.msra.mxu0 %v6973_v33 }
  0x37   :  { %5859 = vmatprep.subr.mxu1 %v6853_v0  ;;  %5863 = vmatprep.mubr.msk.f32.mxu1 %vm6854_vm1, %v6853_v0 }
  0x38   :  { %5860 = vmatpush3.msra.mxu1 %v6978_v34  ;;  %5866 = vmatprep.subr.mxu0 %v6853_v0 }
  0x39   :  { %5861 = vmatprep.subr.mxu1 %v6853_v0 }
  0x3a   :  { %5862 = vmatpush3.msra.mxu1 %v6984_v35 }
  0x3b   :  { %5877 = vmatprep.subr.mxu1 %v6853_v0 }
  0xef   :  { %v180_v7 = vpop.f32.mrf.mxu0 }
  0xf0   :  { %v184_v8 = vadd.f32 %v180_v7, %v109_v6 }
  0xf1   :  { %v5832_v9 = vpop.f32.mrf.mxu0 }
  0xf2   :  { %192 = vrot.lane.b32.xlu0 %v184_v8, %s6855_s0  ;;  %v5443_v10 = vmul.f32 -1.442695, %v184_v8 }
  0xf3   :  { %v286_v42 = vpop.f32.mrf.mxu1 }
  0xf4   :  { %6456 = vpow2.f32 %v5443_v10 }
  0xf5   :  { %v5843_v43 = vpop.f32.mrf.mxu1 }
  0xf6   :  { %v7059_v43 = vld [vmem:[#allocation8 + $0x60] sm:$0xff] }
 0x101   :  { %v6457_v11 = vpop.eup %6456 }
 0x102   :  { %v188_v12 = vadd.f32 1.0, %v6457_v11 }
 0x104   :  { %6458 = vrcp.f32 %v188_v12 }
 0x111   :  { %v6459_v13 = vpop.eup %6458 }
 0x112   :  { %v202_v37 = vsub.f32 1.0, %v6459_v13 }
 0x164   :  { %v193_v14 = vpop.permute.xlu0 %192 }
 0x165   :  { %v195_v15 = vmul.f32 %v6459_v13, %v193_v14  ;;  %v7044_v14 = vld [vmem:[%s8118_s3 + $0x1] sm:$0x1] }
 0x167   :  { %197 = vrot.lane.b32.xlu0 %v195_v15, %s6856_s2 }
 0x1d9   :  { %v198_v16 = vpop.permute.xlu0 %197 }
 0x1da   :  { %v200_v17 = vadd.f32 %v198_v16, %v184_v8 }
 0x1dc   :  { %6460 = vtanh.f32 %v200_v17 }
 0x1e9   :  { %v6461_v26 = vpop.eup %6460 }
 0x1ea   :  { %204 = vrot.lane.b32.xlu1 %v6461_v26, %s6857_s13 }
 0x1ee   :  { %212 = vrot.lane.b32.xlu1 %v211_v29, %s6855_s0 }
 0x25c   :  { %v205_v36 = vpop.permute.xlu1 %204 }
 0x25d   :  { %v207_v39 = vmul.f32 %v205_v36, %v202_v37 }
 0x260   :  { %v213_v38 = vpop.permute.xlu1 %212 }
 0x261   :  { %v215_v40 = vmul.f32 %v6459_v13, %v213_v38 }
 0x263   :  { %v6993_v41 = vadd.f32 %v215_v40, %v207_v39  ;;  %v7049_v39 = vld [vmem:[#allocation8 + $0x78] sm:$0xff]  ;;  %v7051_v40 = vld [vmem:[#allocation8 + $0x70] sm:$0xff] }
 0x265   :  { %291 = vrot.lane.b32.xlu0 %v6993_v41, %s6857_s13 }
 0x2d7   :  { %v292_v44 = vpop.permute.xlu0 %291 }
 0x2d8   :  { %5853 = vmatmul.mubr.msk.f32.vlgmr.msra.gmra.mxu0 %vm110_vm2, %v292_v44  ;;  %5864 = vmatmul.mubr.msk.f32.vlgmr.msra.gmra.mxu1 %vm110_vm2, %v292_v44 }
 0x2d9   :  { %5874 = vmatprep.mubr.msk.f32.mxu0 %vm6854_vm1, %v6853_v0  ;;  %5885 = vmatprep.mubr.msk.f32.mxu1 %vm6854_vm1, %v6853_v0 }
 0x2da   :  { %5867 = vmatpush3.msra.mxu0 %v7014_v61  ;;  %5878 = vmatpush3.msra.mxu1 %v7049_v39 }
 0x2db   :  { %5868 = vmatprep.subr.mxu0 %v6853_v0  ;;  %5879 = vmatprep.subr.mxu1 %v6853_v0 }
 0x2dc   :  { %5869 = vmatpush3.msra.mxu0 %v7016_v62  ;;  %5880 = vmatpush3.msra.mxu1 %v7051_v40 }
 0x2dd   :  { %5870 = vmatprep.subr.mxu0 %v6853_v0  ;;  %5881 = vmatprep.subr.mxu1 %v6853_v0 }
 0x2de   :  { %5871 = vmatpush3.msra.mxu0 %v7020_v63 }
 0x2df   :  { %5872 = vmatprep.subr.mxu0 %v6853_v0 }
 0x2e0   :  { %5873 = vmatpush3.msra.mxu0 %v7024_v5 }
 0x2e1   :  { %5888 = vmatprep.subr.mxu0 %v6853_v0 }
 0x398   :  { %v361_v46 = vpop.f32.mrf.mxu0  ;;  %v464_v47 = vpop.f32.mrf.mxu1 }
 0x399   :  { %v362_v48 = vadd.f32 %v361_v46, %v286_v42  ;;  %v7055_v42 = vld [vmem:[#allocation8 + $0x68] sm:$0xff] }
 0x39a   :  { %v5854_v49 = vpop.f32.mrf.mxu0  ;;  %v5865_v50 = vpop.f32.mrf.mxu1  ;;  %5882 = vmatpush3.msra.mxu1 %v7055_v42 }
 0x39b   :  { %v365_v51 = vadd.f32 %v362_v48, %v7006_v45  ;;  %5883 = vmatprep.subr.mxu1 %v6853_v0 }
 0x39c   :  { %5884 = vmatpush3.msra.mxu1 %v7059_v43 }
 0x39d   :  { %373 = vrot.lane.b32.xlu1 %v365_v51, %s6855_s0  ;;  %v5446_v52 = vmul.f32 -1.442695, %v365_v51  ;;  %5899 = vmatprep.subr.mxu1 %v6853_v0 }
 0x39f   :  { %6462 = vpow2.f32 %v5446_v52 }
 0x3ac   :  { %v6463_v53 = vpop.eup %6462 }
 0x3ad   :  { %v369_v54 = vadd.f32 1.0, %v6463_v53 }
 0x3af   :  { %6464 = vrcp.f32 %v369_v54 }
 0x3bc   :  { %v6465_v55 = vpop.eup %6464 }
 0x3bd   :  { %v383_v8 = vsub.f32 1.0, %v6465_v55 }
 0x40f   :  { %v374_v56 = vpop.permute.xlu1 %373 }
 0x410   :  { %v376_v57 = vmul.f32 %v6465_v55, %v374_v56 }
 0x412   :  { %378 = vrot.lane.b32.xlu0 %v376_v57, %s6856_s2 }
 0x416   :  { %393 = vrot.lane.b32.xlu0 %v392_v58, %s6855_s0 }
 0x484   :  { %v379_v59 = vpop.permute.xlu0 %378 }
 0x485   :  { %v381_v60 = vadd.f32 %v379_v59, %v365_v51 }
 0x487   :  { %6466 = vtanh.f32 %v381_v60 }
 0x488   :  { %v394_v7 = vpop.permute.xlu0 %393 }
 0x489   :  { %v396_v10 = vmul.f32 %v6465_v55, %v394_v7 }
 0x494   :  { %v6467_v6 = vpop.eup %6466 }
 0x495   :  { %385 = vrot.lane.b32.xlu1 %v6467_v6, %s6857_s13 }
 0x507   :  { %v386_v9 = vpop.permute.xlu1 %385 }
 0x508   :  { %v388_v11 = vmul.f32 %v386_v9, %v383_v8  ;;  %v7087_v8 = vld [vmem:[#allocation8 + $0x98] sm:$0xff]  ;;  %v7089_v9 = vld [vmem:[#allocation8 + $0x90] sm:$0xff] }
 0x50a   :  { %v7031_v12 = vadd.f32 %v396_v10, %v388_v11  ;;  %v7093_v10 = vld [vmem:[#allocation8 + $0x88] sm:$0xff]  ;;  %v7097_v11 = vld [vmem:[#allocation8 + $0x80] sm:$0xff] }
 0x50c   :  { %469 = vrot.lane.b32.xlu1 %v7031_v12, %s6857_s13 }
 0x57e   :  { %v7035_v13 = vpop.permute.xlu1 %469 }
 0x57f   :  { %5875 = vmatmul.mubr.msk.f32.vlgmr.msra.gmra.mxu0 %vm110_vm2, %v7035_v13 }
 0x580   :  { %5896 = vmatprep.mubr.msk.f32.mxu0 %vm6854_vm1, %v6853_v0  ;;  %5889 = vmatpush3.msra.mxu0 %v7087_v8 }
 0x581   :  { %5890 = vmatprep.subr.mxu0 %v6853_v0 }
 0x582   :  { %5891 = vmatpush3.msra.mxu0 %v7089_v9 }
 0x583   :  { %5892 = vmatprep.subr.mxu0 %v6853_v0 }
 0x584   :  { %5893 = vmatpush3.msra.mxu0 %v7093_v10 }
 0x585   :  { %5894 = vmatprep.subr.mxu0 %v6853_v0 }
 0x586   :  { %5895 = vmatpush3.msra.mxu0 %v7097_v11 }
 0x587   :  { %5910 = vmatprep.subr.mxu0 %v6853_v0 }
 0x63f   :  { %v539_v15 = vpop.f32.mrf.mxu0 }
 0x640   :  { %v540_v16 = vadd.f32 %v539_v15, %v464_v47 }
 0x641   :  { %v5876_v17 = vpop.f32.mrf.mxu0 }
 0x642   :  { %v543_v18 = vadd.f32 %v540_v16, %v7044_v14 }
 0x644   :  { %551 = vrot.lane.b32.xlu0 %v543_v18, %s6855_s0  ;;  %v5449_v19 = vmul.f32 -1.442695, %v543_v18 }
 0x646   :  { %6468 = vpow2.f32 %v5449_v19 }
 0x653   :  { %v6469_v22 = vpop.eup %6468 }
 0x654   :  { %v547_v26 = vadd.f32 1.0, %v6469_v22 }
 0x656   :  { %6470 = vrcp.f32 %v547_v26 }
 0x663   :  { %v6471_v29 = vpop.eup %6470 }
 0x664   :  { %v561_v46 = vsub.f32 1.0, %v6471_v29  ;;  %v567_v48 = vmul.f32 %v6471_v29, %v6993_v41  ;;  %v7082_v41 = vld [vmem:[%s8118_s3 + $0x2] sm:$0x1] }
 0x6b6   :  { %v552_v30 = vpop.permute.xlu0 %551 }
 0x6b7   :  { %v554_v36 = vmul.f32 %v6471_v29, %v552_v30 }
 0x6b9   :  { %556 = vrot.lane.b32.xlu1 %v554_v36, %s6856_s2 }
 0x72b   :  { %v557_v37 = vpop.permute.xlu1 %556 }
 0x72c   :  { %v559_v38 = vadd.f32 %v557_v37, %v543_v18 }
 0x72e   :  { %6472 = vtanh.f32 %v559_v38 }
 0x73b   :  { %v6473_v44 = vpop.eup %6472 }
 0x73c   :  { %563 = vrot.lane.b32.xlu0 %v6473_v44, %s6857_s13 }
 0x7ae   :  { %v564_v47 = vpop.permute.xlu0 %563 }
 0x7af   :  { %v566_v49 = vmul.f32 %v564_v47, %v561_v46 }
 0x7b1   :  { %v568_v50 = vadd.f32 %v567_v48, %v566_v49 }
 0x7b3   :  { %570 = vrot.lane.b32.xlu1 %v568_v50, %s6857_s13 }
 0x825   :  { %v571_v51 = vpop.permute.xlu1 %570 }
 0x826   :  { %5886 = vmatmul.mubr.msk.f32.vlgmr.msra.gmra.mxu1 %vm110_vm2, %v571_v51 }
 0x827   :  { %5900 = vmatpush3.msra.mxu1 %v6914_v1  ;;  %5907 = vmatprep.mubr.msk.f32.mxu1 %vm6854_vm1, %v6853_v0 }
 0x828   :  { %5901 = vmatprep.subr.mxu1 %v6853_v0 }
 0x829   :  { %5902 = vmatpush3.msra.mxu1 %v6916_v2 }
 0x82a   :  { %5903 = vmatprep.subr.mxu1 %v6853_v0 }
 0x82b   :  { %5904 = vmatpush3.msra.mxu1 %v6920_v3 }
 0x82c   :  { %5905 = vmatprep.subr.mxu1 %v6853_v0 }
 0x82d   :  { %5906 = vmatpush3.msra.mxu1 %v6924_v4 }
 0x82e   :  { %5921 = vmatprep.subr.mxu1 %v6853_v0 }
 0x8e6   :  { %v640_v52 = vpop.f32.mrf.mxu1 }
 0x8e7   :  { %v641_v53 = vadd.f32 %v640_v52, %v7082_v41 }
 0x8e8   :  { %v5887_v54 = vpop.f32.mrf.mxu1 }
 0x8e9   :  { %651 = vrot.lane.b32.xlu0 %v641_v53, %s6855_s0  ;;  %v5451_v55 = vmul.f32 -1.442695, %v641_v53 }
 0x8eb   :  { %6474 = vpow2.f32 %v5451_v55 }
 0x8f8   :  { %v6475_v56 = vpop.eup %6474 }
 0x8f9   :  { %v647_v57 = vadd.f32 1.0, %v6475_v56 }
 0x8fb   :  { %6476 = vrcp.f32 %v647_v57 }
 0x908   :  { %v6477_v58 = vpop.eup %6476 }
 0x909   :  { %v661_v16 = vsub.f32 1.0, %v6477_v58  ;;  %v667_v18 = vmul.f32 %v6477_v58, %v568_v50 }
 0x95b   :  { %v652_v59 = vpop.permute.xlu0 %651 }
 0x95c   :  { %v654_v60 = vmul.f32 %v6477_v58, %v652_v59 }
 0x95e   :  { %656 = vrot.lane.b32.xlu1 %v654_v60, %s6856_s2  ;;  %v771_v60 = vld [vmem:[#allocation5 + $0x1] sm:$0x1] }
 0x9d0   :  { %v657_v6 = vpop.permute.xlu1 %656 }
 0x9d1   :  { %v659_v7 = vadd.f32 %v657_v6, %v641_v53 }
 0x9d3   :  { %6478 = vtanh.f32 %v659_v7 }
 0x9e0   :  { %v6479_v15 = vpop.eup %6478 }
 0x9e1   :  { %663 = vrot.lane.b32.xlu0 %v6479_v15, %s6857_s13 }
 0xa53   :  { %v664_v17 = vpop.permute.xlu0 %663 }
 0xa54   :  { %v666_v19 = vmul.f32 %v664_v17, %v661_v16 }
 0xa56   :  { %v668_v22 = vadd.f32 %v667_v18, %v666_v19 }
 0xa58   :  { %670 = vrot.lane.b32.xlu1 %v668_v22, %s6857_s13 }
 0xaca   :  { %v671_v26 = vpop.permute.xlu1 %670 }
 0xacb   :  { %5897 = vmatmul.mubr.msk.f32.vlgmr.msra.gmra.mxu0 %vm110_vm2, %v671_v26 }
 0xacc   :  { %5911 = vmatpush3.msra.mxu0 %v6937_v20  ;;  %5918 = vmatprep.mubr.msk.f32.mxu0 %vm6854_vm1, %v6853_v0 }
 0xacd   :  { %5912 = vmatprep.subr.mxu0 %v6853_v0 }
 0xace   :  { %5913 = vmatpush3.msra.mxu0 %v6939_v21 }
 0xacf   :  { %5914 = vmatprep.subr.mxu0 %v6853_v0 }
 0xad0   :  { %5915 = vmatpush3.msra.mxu0 %v6946_v24 }
 0xad1   :  { %5916 = vmatprep.subr.mxu0 %v6853_v0 }
 0xad2   :  { %5917 = vmatpush3.msra.mxu0 %v6954_v27 }
 0xad3   :  { %5919 = vmatmul.mubr.msk.f32.vlgmr.msra.gmra.mxu0 %vm110_vm2, %v7035_v13  ;;  %5932 = vmatprep.subr.mxu0 %v6853_v0  ;;  %v7131_v13 = vld [vmem:[%s8118_s3 + $0x3] sm:$0x1] }
 0xad4   :  { %5933 = vmatpush3.msra.mxu0 %v6964_v31  ;;  %5940 = vmatprep.mubr.msk.f32.mxu0 %vm6854_vm1, %v6853_v0 }
 0xad5   :  { %5934 = vmatprep.subr.mxu0 %v6853_v0 }
 0xad6   :  { %5935 = vmatpush3.msra.mxu0 %v6971_v32 }
 0xad7   :  { %5936 = vmatprep.subr.mxu0 %v6853_v0 }
 0xad8   :  { %5937 = vmatpush3.msra.mxu0 %v6978_v34 }
 0xad9   :  { %5938 = vmatprep.subr.mxu0 %v6853_v0 }
 0xada   :  { %5939 = vmatpush3.msra.mxu0 %v6984_v35 }
 0xadb   :  { %5954 = vmatprep.subr.mxu0 %v6853_v0 }
 0xb8b   :  { %v740_v29 = vpop.f32.mrf.mxu0 }
 0xb8c   :  { %v741_v30 = vadd.f32 %v740_v29, %v7131_v13 }
 0xb8d   :  { %v5898_v36 = vpop.f32.mrf.mxu0 }
 0xb8e   :  { %751 = vrot.lane.b32.xlu0 %v741_v30, %s6855_s0  ;;  %v5453_v44 = vmul.f32 -1.442695, %v741_v30 }
 0xb90   :  { %6480 = vpow2.f32 %v5453_v44 }
 0xb93   :  { %v7135_v37 = vpop.f32.mrf.mxu0 }
 0xb95   :  { %v5920_v38 = vpop.f32.mrf.mxu0 }
 0xb9d   :  { %v6481_v46 = vpop.eup %6480 }
 0xb9e   :  { %v747_v47 = vadd.f32 1.0, %v6481_v46 }
 0xba0   :  { %6482 = vrcp.f32 %v747_v47 }
 0xbad   :  { %v6483_v48 = vpop.eup %6482 }
 0xbae   :  { %v761_v54 = vsub.f32 1.0, %v6483_v48  ;;  %v767_v56 = vmul.f32 %v6483_v48, %v668_v22 }
 0xc00   :  { %v752_v49 = vpop.permute.xlu0 %751 }
 0xc01   :  { %v754_v50 = vmul.f32 %v6483_v48, %v752_v49 }
 0xc03   :  { %756 = vrot.lane.b32.xlu1 %v754_v50, %s6856_s2 }
 0xc75   :  { %v757_v51 = vpop.permute.xlu1 %756 }
 0xc76   :  { %v759_v52 = vadd.f32 %v757_v51, %v741_v30 }
 0xc78   :  { %6484 = vtanh.f32 %v759_v52 }
 0xc85   :  { %v6485_v53 = vpop.eup %6484 }
 0xc86   :  { %763 = vrot.lane.b32.xlu0 %v6485_v53, %s6857_s13 }
 0xcf8   :  { %v764_v55 = vpop.permute.xlu0 %763 }
 0xcf9   :  { %v766_v57 = vmul.f32 %v764_v55, %v761_v54 }
 0xcfb   :  { %v7139_v58 = vadd.f32 %v767_v56, %v766_v57 }
 0xcfd   :  { %773 = vrot.lane.b32.xlu1 %v7139_v58, %s6857_s13 }
 0xd6f   :  { %v774_v59 = vpop.permute.xlu1 %773 }
 0xd70   :  { %5908 = vmatmul.mubr.msk.f32.vlgmr.msra.gmra.mxu1 %vm110_vm2, %v774_v59 }
 0xd71   :  { %5922 = vmatpush3.msra.mxu1 %v6943_v23  ;;  %5929 = vmatprep.mubr.msk.f32.mxu1 %vm6854_vm1, %v6853_v0 }
 0xd72   :  { %5923 = vmatprep.subr.mxu1 %v6853_v0 }
 0xd73   :  { %5924 = vmatpush3.msra.mxu1 %v6949_v25 }
 0xd74   :  { %5925 = vmatprep.subr.mxu1 %v6853_v0 }
 0xd75   :  { %5926 = vmatpush3.msra.mxu1 %v6957_v28 }
 0xd76   :  { %5927 = vmatprep.subr.mxu1 %v6853_v0 }
 0xd77   :  { %5928 = vmatpush3.msra.mxu1 %v6973_v33 }
 0xd78   :  { %5943 = vmatprep.subr.mxu1 %v6853_v0 }
 0xe30   :  { %v843_v6 = vpop.f32.mrf.mxu1 }
 0xe31   :  { %v847_v7 = vadd.f32 %v843_v6, %v771_v60 }
 0xe32   :  { %v5909_v15 = vpop.f32.mrf.mxu1 }
 0xe33   :  { %855 = vrot.lane.b32.xlu0 %v847_v7, %s6855_s0  ;;  %v5455_v16 = vmul.f32 -1.442695, %v847_v7 }
 0xe35   :  { %6486 = vpow2.f32 %v5455_v16 }
 0xe42   :  { %v6487_v17 = vpop.eup %6486 }
 0xe43   :  { %v851_v18 = vadd.f32 1.0, %v6487_v17 }
 0xe45   :  { %6488 = vrcp.f32 %v851_v18 }
 0xe52   :  { %v6489_v19 = vpop.eup %6488 }
 0xe53   :  { %v865_v38 = vsub.f32 1.0, %v6489_v19  ;;  %v871_v46 = vmul.f32 %v6489_v19, %v7139_v58 }
 0xea5   :  { %v856_v22 = vpop.permute.xlu0 %855 }
 0xea6   :  { %v858_v26 = vmul.f32 %v6489_v19, %v856_v22 }
 0xea8   :  { %860 = vrot.lane.b32.xlu1 %v858_v26, %s6856_s2 }
 0xf1a   :  { %v861_v29 = vpop.permute.xlu1 %860 }
 0xf1b   :  { %v863_v30 = vadd.f32 %v861_v29, %v847_v7 }
 0xf1d   :  { %6490 = vtanh.f32 %v863_v30 }
 0xf2a   :  { %v6491_v36 = vpop.eup %6490 }
 0xf2b   :  { %867 = vrot.lane.b32.xlu0 %v6491_v36, %s6857_s13 }
 0xf9d   :  { %v868_v44 = vpop.permute.xlu0 %867 }
 0xf9e   :  { %v870_v47 = vmul.f32 %v868_v44, %v865_v38 }
 0xfa0   :  { %v7158_v48 = vadd.f32 %v871_v46, %v870_v47 }
 0xfa2   :  { %944 = vrot.lane.b32.xlu1 %v7158_v48, %s6857_s13 }
0x1014   :  { %v945_v49 = vpop.permute.xlu1 %944 }
0x1015   :  { %5930 = vmatmul.mubr.msk.f32.vlgmr.msra.gmra.mxu1 %vm110_vm2, %v945_v49  ;;  %5941 = vmatmul.mubr.msk.f32.vlgmr.msra.gmra.mxu0 %vm110_vm2, %v945_v49 }
0x1016   :  { %5944 = vmatpush3.msra.mxu1 %v7014_v61  ;;  %5951 = vmatprep.mubr.msk.f32.mxu1 %vm6854_vm1, %v6853_v0 }
0x1017   :  { %5945 = vmatprep.subr.mxu1 %v6853_v0  ;;  %5955 = vmatpush3.msra.mxu0 %v7049_v39 }
0x1018   :  { %5946 = vmatpush3.msra.mxu1 %v7016_v62  ;;  %5956 = vmatprep.subr.mxu0 %v6853_v0 }
0x1019   :  { %5947 = vmatprep.subr.mxu1 %v6853_v0  ;;  %5957 = vmatpush3.msra.mxu0 %v7051_v40 }
0x101a   :  { %5948 = vmatpush3.msra.mxu1 %v7020_v63  ;;  %5958 = vmatprep.subr.mxu0 %v6853_v0 }
0x101b   :  { %5949 = vmatprep.subr.mxu1 %v6853_v0  ;;  %5959 = vmatpush3.msra.mxu0 %v7055_v42 }
0x101c   :  { %5950 = vmatpush3.msra.mxu1 %v7024_v5  ;;  %5960 = vmatprep.subr.mxu0 %v6853_v0 }
0x101d   :  { %5961 = vmatpush3.msra.mxu0 %v7059_v43  ;;  %5962 = vmatprep.mubr.msk.f32.mxu0 %vm6854_vm1, %v6853_v0 }
0x101e   :  { %5965 = vmatprep.subr.mxu1 %v6853_v0  ;;  %5976 = vmatprep.subr.mxu0 %v6853_v0 }
0x10d5   :  { %v1014_v50 = vpop.f32.mrf.mxu1  ;;  %v1110_v51 = vpop.f32.mrf.mxu0 }
0x10d6   :  { %v1015_v52 = vadd.f32 %v1014_v50, %v7135_v37 }
0x10d7   :  { %v5931_v53 = vpop.f32.mrf.mxu1  ;;  %v5942_v54 = vpop.f32.mrf.mxu0 }
0x10d8   :  { %v1018_v55 = vadd.f32 %v1015_v52, %v7006_v45 }
0x10da   :  { %1026 = vrot.lane.b32.xlu0 %v1018_v55, %s6855_s0  ;;  %v5458_v56 = vmul.f32 -1.442695, %v1018_v55 }
0x10dc   :  { %6492 = vpow2.f32 %v5458_v56 }
0x10e9   :  { %v6493_v57 = vpop.eup %6492 }
0x10ea   :  { %v1022_v59 = vadd.f32 1.0, %v6493_v57 }
0x10ec   :  { %6494 = vrcp.f32 %v1022_v59 }
0x10f9   :  { %v6495_v60 = vpop.eup %6494 }
0x10fa   :  { %v1036_v17 = vsub.f32 1.0, %v6495_v60  ;;  %v1042_v19 = vmul.f32 %v6495_v60, %v7031_v12 }
0x114c   :  { %v1027_v6 = vpop.permute.xlu0 %1026 }
0x114d   :  { %v1029_v7 = vmul.f32 %v6495_v60, %v1027_v6 }
0x114f   :  { %1031 = vrot.lane.b32.xlu1 %v1029_v7, %s6856_s2 }
0x11c1   :  { %v1032_v15 = vpop.permute.xlu1 %1031 }
0x11c2   :  { %v1034_v16 = vadd.f32 %v1032_v15, %v1018_v55 }
0x11c4   :  { %6496 = vtanh.f32 %v1034_v16 }
0x11d1   :  { %v6497_v37 = vpop.eup %6496 }
0x11d2   :  { %1038 = vrot.lane.b32.xlu0 %v6497_v37, %s6857_s13 }
0x1244   :  { %v1039_v18 = vpop.permute.xlu0 %1038 }
0x1245   :  { %v1041_v22 = vmul.f32 %v1039_v18, %v1036_v17 }
0x1247   :  { %v7190_v26 = vadd.f32 %v1042_v19, %v1041_v22 }
0x1249   :  { %1115 = vrot.lane.b32.xlu1 %v7190_v26, %s6857_s13 }
0x12bb   :  { %v7194_v29 = vpop.permute.xlu1 %1115 }
0x12bc   :  { %5952 = vmatmul.mubr.msk.f32.vlgmr.msra.gmra.mxu1 %vm110_vm2, %v7194_v29 }
0x12bd   :  { %5966 = vmatpush3.msra.mxu1 %v7087_v8  ;;  %5973 = vmatprep.mubr.msk.f32.mxu1 %vm6854_vm1, %v6853_v0 }
0x12be   :  { %5967 = vmatprep.subr.mxu1 %v6853_v0 }
0x12bf   :  { %5968 = vmatpush3.msra.mxu1 %v7089_v9 }
0x12c0   :  { %5969 = vmatprep.subr.mxu1 %v6853_v0 }
0x12c1   :  { %5970 = vmatpush3.msra.mxu1 %v7093_v10 }
0x12c2   :  { %5971 = vmatprep.subr.mxu1 %v6853_v0 }
0x12c3   :  { %5972 = vmatpush3.msra.mxu1 %v7097_v11 }
0x12c4   :  { %5987 = vmatprep.subr.mxu1 %v6853_v0 }
0x137c   :  { %v1185_v12 = vpop.f32.mrf.mxu1 }
0x137d   :  { %v1186_v30 = vadd.f32 %v1185_v12, %v1110_v51 }
0x137e   :  { %v5953_v36 = vpop.f32.mrf.mxu1 }
0x137f   :  { %v1189_v38 = vadd.f32 %v1186_v30, %v7044_v14 }
0x1381   :  { %1197 = vrot.lane.b32.xlu0 %v1189_v38, %s6855_s0  ;;  %v5461_v44 = vmul.f32 -1.442695, %v1189_v38 }
0x1383   :  { %6498 = vpow2.f32 %v5461_v44 }
0x1390   :  { %v6499_v46 = vpop.eup %6498 }
0x1391   :  { %v1193_v47 = vadd.f32 1.0, %v6499_v46 }
0x1393   :  { %6500 = vrcp.f32 %v1193_v47 }
0x13a0   :  { %v6501_v49 = vpop.eup %6500 }
0x13a1   :  { %v1207_v51 = vsub.f32 1.0, %v6501_v49  ;;  %v1213_v57 = vmul.f32 %v6501_v49, %v7158_v48 }
0x13f3   :  { %v1198_v50 = vpop.permute.xlu0 %1197 }
0x13f4   :  { %v1200_v52 = vmul.f32 %v6501_v49, %v1198_v50 }
0x13f6   :  { %1202 = vrot.lane.b32.xlu1 %v1200_v52, %s6856_s2 }
0x1468   :  { %v1203_v53 = vpop.permute.xlu1 %1202 }
0x1469   :  { %v1205_v54 = vadd.f32 %v1203_v53, %v1189_v38 }
0x146b   :  { %6502 = vtanh.f32 %v1205_v54 }
0x1478   :  { %v6503_v55 = vpop.eup %6502 }
0x1479   :  { %1209 = vrot.lane.b32.xlu0 %v6503_v55, %s6857_s13 }
0x14eb   :  { %v1210_v56 = vpop.permute.xlu0 %1209 }
0x14ec   :  { %v1212_v59 = vmul.f32 %v1210_v56, %v1207_v51 }
0x14ee   :  { %v1214_v60 = vadd.f32 %v1213_v57, %v1212_v59  ;;  %v1417_v59 = vld [vmem:[#allocation5 + $0x2] sm:$0x1] }
0x14f0   :  { %1216 = vrot.lane.b32.xlu1 %v1214_v60, %s6857_s13 }
0x1562   :  { %v1217_v6 = vpop.permute.xlu1 %1216 }
0x1563   :  { %5963 = vmatmul.mubr.msk.f32.vlgmr.msra.gmra.mxu0 %vm110_vm2, %v1217_v6 }
0x1564   :  { %5977 = vmatpush3.msra.mxu0 %v6914_v1  ;;  %5984 = vmatprep.mubr.msk.f32.mxu0 %vm6854_vm1, %v6853_v0 }
0x1565   :  { %5978 = vmatprep.subr.mxu0 %v6853_v0 }
0x1566   :  { %5979 = vmatpush3.msra.mxu0 %v6916_v2 }
0x1567   :  { %5980 = vmatprep.subr.mxu0 %v6853_v0 }
0x1568   :  { %5981 = vmatpush3.msra.mxu0 %v6920_v3 }
0x1569   :  { %5982 = vmatprep.subr.mxu0 %v6853_v0 }
0x156a   :  { %5983 = vmatpush3.msra.mxu0 %v6924_v4 }
0x156b   :  { %5998 = vmatprep.subr.mxu0 %v6853_v0 }
0x1623   :  { %v1286_v48 = vpop.f32.mrf.mxu0 }
0x1624   :  { %v1287_v1 = vadd.f32 %v1286_v48, %v7082_v41 }
0x1625   :  { %v5964_v7 = vpop.f32.mrf.mxu0 }
0x1626   :  { %1297 = vrot.lane.b32.xlu0 %v1287_v1, %s6855_s0  ;;  %v5463_v15 = vmul.f32 -1.442695, %v1287_v1 }
0x1628   :  { %6504 = vpow2.f32 %v5463_v15 }
0x1635   :  { %v6505_v16 = vpop.eup %6504 }
0x1636   :  { %v1293_v2 = vadd.f32 1.0, %v6505_v16 }
0x1638   :  { %6506 = vrcp.f32 %v1293_v2 }
0x1645   :  { %v6507_v37 = vpop.eup %6506 }
0x1646   :  { %v1307_v22 = vsub.f32 1.0, %v6507_v37  ;;  %v1313_v30 = vmul.f32 %v6507_v37, %v1214_v60 }
0x1698   :  { %v1298_v17 = vpop.permute.xlu0 %1297 }
0x1699   :  { %v1300_v3 = vmul.f32 %v6507_v37, %v1298_v17 }
0x169b   :  { %1302 = vrot.lane.b32.xlu1 %v1300_v3, %s6856_s2 }
0x170d   :  { %v1303_v18 = vpop.permute.xlu1 %1302 }
0x170e   :  { %v1305_v4 = vadd.f32 %v1303_v18, %v1287_v1 }
0x1710   :  { %6508 = vtanh.f32 %v1305_v4 }
0x171d   :  { %v6509_v19 = vpop.eup %6508 }
0x171e   :  { %1309 = vrot.lane.b32.xlu0 %v6509_v19, %s6857_s13 }
0x1790   :  { %v1310_v12 = vpop.permute.xlu0 %1309 }
0x1791   :  { %v1312_v36 = vmul.f32 %v1310_v12, %v1307_v22 }
0x1793   :  { %v1314_v38 = vadd.f32 %v1313_v30, %v1312_v36 }
0x1795   :  { %1316 = vrot.lane.b32.xlu1 %v1314_v38, %s6857_s13 }
0x1807   :  { %v1317_v44 = vpop.permute.xlu1 %1316 }
0x1808   :  { %5974 = vmatmul.mubr.msk.f32.vlgmr.msra.gmra.mxu1 %vm110_vm2, %v1317_v44 }
0x1809   :  { %5988 = vmatpush3.msra.mxu1 %v6937_v20  ;;  %5995 = vmatprep.mubr.msk.f32.mxu1 %vm6854_vm1, %v6853_v0 }
0x180a   :  { %5989 = vmatprep.subr.mxu1 %v6853_v0 }
0x180b   :  { %5990 = vmatpush3.msra.mxu1 %v6939_v21 }
0x180c   :  { %5991 = vmatprep.subr.mxu1 %v6853_v0 }
0x180d   :  { %5992 = vmatpush3.msra.mxu1 %v6946_v24 }
0x180e   :  { %5993 = vmatprep.subr.mxu1 %v6853_v0 }
0x180f   :  { %5994 = vmatpush3.msra.mxu1 %v6954_v27 }
0x1810   :  { %5996 = vmatmul.mubr.msk.f32.vlgmr.msra.gmra.mxu1 %vm110_vm2, %v7194_v29  ;;  %6009 = vmatprep.subr.mxu1 %v6853_v0 }
0x1811   :  { %6010 = vmatpush3.msra.mxu1 %v6964_v31  ;;  %6017 = vmatprep.mubr.msk.f32.mxu1 %vm6854_vm1, %v6853_v0 }
0x1812   :  { %6011 = vmatprep.subr.mxu1 %v6853_v0 }
0x1813   :  { %6012 = vmatpush3.msra.mxu1 %v6971_v32 }
0x1814   :  { %6013 = vmatprep.subr.mxu1 %v6853_v0 }
0x1815   :  { %6014 = vmatpush3.msra.mxu1 %v6978_v34 }
0x1816   :  { %6015 = vmatprep.subr.mxu1 %v6853_v0 }
0x1817   :  { %6016 = vmatpush3.msra.mxu1 %v6984_v35 }
0x1818   :  { %6031 = vmatprep.subr.mxu1 %v6853_v0 }
0x18c8   :  { %v1386_v20 = vpop.f32.mrf.mxu1 }
0x18c9   :  { %v1387_v21 = vadd.f32 %v1386_v20, %v7131_v13 }
0x18ca   :  { %v5975_v24 = vpop.f32.mrf.mxu1 }
0x18cb   :  { %1397 = vrot.lane.b32.xlu0 %v1387_v21, %s6855_s0  ;;  %v5465_v32 = vmul.f32 -1.442695, %v1387_v21 }
0x18cd   :  { %6510 = vpow2.f32 %v5465_v32 }
0x18d0   :  { %v7255_v27 = vpop.f32.mrf.mxu1 }
0x18d2   :  { %v5997_v31 = vpop.f32.mrf.mxu1 }
0x18da   :  { %v6511_v29 = vpop.eup %6510 }
0x18db   :  { %v1393_v46 = vadd.f32 1.0, %v6511_v29 }
0x18dd   :  { %6512 = vrcp.f32 %v1393_v46 }
0x18ea   :  { %v6513_v34 = vpop.eup %6512 }
0x18eb   :  { %v1407_v53 = vsub.f32 1.0, %v6513_v34  ;;  %v1413_v55 = vmul.f32 %v6513_v34, %v1314_v38 }
0x193d   :  { %v1398_v47 = vpop.permute.xlu0 %1397 }
0x193e   :  { %v1400_v49 = vmul.f32 %v6513_v34, %v1398_v47 }
0x1940   :  { %1402 = vrot.lane.b32.xlu1 %v1400_v49, %s6856_s2 }
0x19b2   :  { %v1403_v35 = vpop.permute.xlu1 %1402 }
0x19b3   :  { %v1405_v50 = vadd.f32 %v1403_v35, %v1387_v21 }
0x19b5   :  { %6514 = vtanh.f32 %v1405_v50 }
0x19c2   :  { %v6515_v52 = vpop.eup %6514 }
0x19c3   :  { %1409 = vrot.lane.b32.xlu0 %v6515_v52, %s6857_s13 }
0x1a35   :  { %v1410_v54 = vpop.permute.xlu0 %1409 }
0x1a36   :  { %v1412_v51 = vmul.f32 %v1410_v54, %v1407_v53 }
0x1a38   :  { %v7259_v56 = vadd.f32 %v1413_v55, %v1412_v51 }
0x1a3a   :  { %1419 = vrot.lane.b32.xlu1 %v7259_v56, %s6857_s13 }
0x1aac   :  { %v1420_v57 = vpop.permute.xlu1 %1419 }
0x1aad   :  { %5985 = vmatmul.mubr.msk.f32.vlgmr.msra.gmra.mxu0 %vm110_vm2, %v1420_v57 }
0x1aae   :  { %5999 = vmatpush3.msra.mxu0 %v6943_v23  ;;  %6006 = vmatprep.mubr.msk.f32.mxu0 %vm6854_vm1, %v6853_v0 }
0x1aaf   :  { %6000 = vmatprep.subr.mxu0 %v6853_v0 }
0x1ab0   :  { %6001 = vmatpush3.msra.mxu0 %v6949_v25 }
0x1ab1   :  { %6002 = vmatprep.subr.mxu0 %v6853_v0 }
0x1ab2   :  { %6003 = vmatpush3.msra.mxu0 %v6957_v28 }
0x1ab3   :  { %6004 = vmatprep.subr.mxu0 %v6853_v0 }
0x1ab4   :  { %6005 = vmatpush3.msra.mxu0 %v6973_v33 }
0x1ab5   :  { %6020 = vmatprep.subr.mxu0 %v6853_v0 }
0x1b6d   :  { %v1489_v60 = vpop.f32.mrf.mxu0 }
0x1b6e   :  { %v1493_v23 = vadd.f32 %v1489_v60, %v1417_v59  ;;  %v7335_v59 = vld [vmem:[#allocation8 + $0x18] sm:$0xff]  ;;  %v7341_v60 = vld [vmem:[#allocation8 + $0x10] sm:$0xff] }
0x1b6f   :  { %v5986_v6 = vpop.f32.mrf.mxu0 }
0x1b70   :  { %1501 = vrot.lane.b32.xlu0 %v1493_v23, %s6855_s0  ;;  %v5467_v48 = vmul.f32 -1.442695, %v1493_v23  ;;  %v7349_v6 = vld [vmem:[#allocation8] sm:$0xff] }
0x1b72   :  { %6516 = vpow2.f32 %v5467_v48 }
0x1b7f   :  { %v6517_v1 = vpop.eup %6516 }
0x1b80   :  { %v1497_v25 = vadd.f32 1.0, %v6517_v1 }
0x1b82   :  { %6518 = vrcp.f32 %v1497_v25 }
0x1b8f   :  { %v6519_v7 = vpop.eup %6518 }
0x1b90   :  { %v1511_v37 = vsub.f32 1.0, %v6519_v7  ;;  %v1517_v3 = vmul.f32 %v6519_v7, %v7259_v56 }
0x1be2   :  { %v1502_v15 = vpop.permute.xlu0 %1501 }
0x1be3   :  { %v1504_v28 = vmul.f32 %v6519_v7, %v1502_v15 }
0x1be5   :  { %1506 = vrot.lane.b32.xlu1 %v1504_v28, %s6856_s2 }
0x1c57   :  { %v1507_v16 = vpop.permute.xlu1 %1506 }
0x1c58   :  { %v1509_v33 = vadd.f32 %v1507_v16, %v1493_v23  ;;  %v7345_v23 = vld [vmem:[#allocation8 + $0x8] sm:$0xff] }
0x1c5a   :  { %6520 = vtanh.f32 %v1509_v33 }
0x1c67   :  { %v6521_v2 = vpop.eup %6520 }
0x1c68   :  { %1513 = vrot.lane.b32.xlu0 %v6521_v2, %s6857_s13 }
0x1cda   :  { %v1514_v17 = vpop.permute.xlu0 %1513 }
0x1cdb   :  { %v1516_v18 = vmul.f32 %v1514_v17, %v1511_v37 }
0x1cdd   :  { %v7278_v4 = vadd.f32 %v1517_v3, %v1516_v18 }
0x1cdf   :  { %1590 = vrot.lane.b32.xlu1 %v7278_v4, %s6857_s13 }
0x1d51   :  { %v1591_v19 = vpop.permute.xlu1 %1590 }
0x1d52   :  { %6007 = vmatmul.mubr.msk.f32.vlgmr.msra.gmra.mxu0 %vm110_vm2, %v1591_v19  ;;  %6018 = vmatmul.mubr.msk.f32.vlgmr.msra.gmra.mxu1 %vm110_vm2, %v1591_v19 }
0x1d53   :  { %6021 = vmatpush3.msra.mxu0 %v7014_v61  ;;  %6028 = vmatprep.mubr.msk.f32.mxu0 %vm6854_vm1, %v6853_v0 }
0x1d54   :  { %6022 = vmatprep.subr.mxu0 %v6853_v0  ;;  %6032 = vmatpush3.msra.mxu1 %v7049_v39 }
0x1d55   :  { %6023 = vmatpush3.msra.mxu0 %v7016_v62  ;;  %6033 = vmatprep.subr.mxu1 %v6853_v0 }
0x1d56   :  { %6024 = vmatprep.subr.mxu0 %v6853_v0  ;;  %6034 = vmatpush3.msra.mxu1 %v7051_v40 }
0x1d57   :  { %6025 = vmatpush3.msra.mxu0 %v7020_v63  ;;  %6035 = vmatprep.subr.mxu1 %v6853_v0 }
0x1d58   :  { %6026 = vmatprep.subr.mxu0 %v6853_v0  ;;  %6036 = vmatpush3.msra.mxu1 %v7055_v42 }
0x1d59   :  { %6027 = vmatpush3.msra.mxu0 %v7024_v5  ;;  %6037 = vmatprep.subr.mxu1 %v6853_v0 }
0x1d5a   :  { %6038 = vmatpush3.msra.mxu1 %v7059_v43  ;;  %6039 = vmatprep.mubr.msk.f32.mxu1 %vm6854_vm1, %v6853_v0 }
0x1d5b   :  { %6042 = vmatprep.subr.mxu0 %v6853_v0  ;;  %6053 = vmatprep.subr.mxu1 %v6853_v0 }
0x1e12   :  { %v1660_v61 = vpop.f32.mrf.mxu0  ;;  %v1756_v62 = vpop.f32.mrf.mxu1 }
0x1e13   :  { %v1661_v63 = vadd.f32 %v1660_v61, %v7255_v27 }
0x1e14   :  { %v6008_v39 = vpop.f32.mrf.mxu0  ;;  %v6019_v40 = vpop.f32.mrf.mxu1 }
0x1e15   :  { %v1664_v42 = vadd.f32 %v1661_v63, %v7006_v45  ;;  %v7359_v63 = vld [vmem:[#allocation8 + $0x38] sm:$0xff]  ;;  %v7365_v39 = vld [vmem:[#allocation8 + $0x30] sm:$0xff]  ;;  %v7369_v40 = vld [vmem:[#allocation8 + $0x28] sm:$0xff] }
0x1e17   :  { %1672 = vrot.lane.b32.xlu0 %v1664_v42, %s6855_s0  ;;  %v5470_v5 = vmul.f32 -1.442695, %v1664_v42 }
0x1e19   :  { %6522 = vpow2.f32 %v5470_v5  ;;  %v7379_v5 = vld [vmem:[#allocation8 + $0x58] sm:$0xff] }
0x1e26   :  { %v6523_v43 = vpop.eup %6522 }
0x1e27   :  { %v1668_v22 = vadd.f32 1.0, %v6523_v43  ;;  %v7385_v43 = vld [vmem:[#allocation8 + $0x50] sm:$0xff] }
0x1e29   :  { %6524 = vrcp.f32 %v1668_v22  ;;  %v7389_v22 = vld [vmem:[#allocation8 + $0x48] sm:$0xff] }
0x1e36   :  { %v6525_v12 = vpop.eup %6524 }
0x1e37   :  { %v1682_v21 = vsub.f32 1.0, %v6525_v12  ;;  %v1688_v24 = vmul.f32 %v6525_v12, %v7190_v26 }
0x1e89   :  { %v1673_v30 = vpop.permute.xlu0 %1672 }
0x1e8a   :  { %v1675_v36 = vmul.f32 %v6525_v12, %v1673_v30  ;;  %v7393_v12 = vld [vmem:[#allocation8 + $0x40] sm:$0xff] }
0x1e8c   :  { %1677 = vrot.lane.b32.xlu1 %v1675_v36, %s6856_s2 }
0x1efe   :  { %v1678_v38 = vpop.permute.xlu1 %1677 }
0x1eff   :  { %v1680_v44 = vadd.f32 %v1678_v38, %v1664_v42  ;;  %v7373_v42 = vld [vmem:[#allocation8 + $0x20] sm:$0xff] }
0x1f01   :  { %6526 = vtanh.f32 %v1680_v44 }
0x1f0e   :  { %v6527_v20 = vpop.eup %6526 }
0x1f0f   :  { %1684 = vrot.lane.b32.xlu0 %v6527_v20, %s6857_s13 }
0x1f81   :  { %v1685_v45 = vpop.permute.xlu0 %1684 }
0x1f82   :  { %v1687_v27 = vmul.f32 %v1685_v45, %v1682_v21 }
0x1f84   :  { %v7310_v31 = vadd.f32 %v1688_v24, %v1687_v27 }
0x1f86   :  { %1761 = vrot.lane.b32.xlu1 %v7310_v31, %s6857_s13 }
0x1ff8   :  { %v7314_v32 = vpop.permute.xlu1 %1761 }
0x1ff9   :  { %6029 = vmatmul.mubr.msk.f32.vlgmr.msra.gmra.mxu0 %vm110_vm2, %v7314_v32 }
0x1ffa   :  { %6043 = vmatpush3.msra.mxu0 %v7087_v8  ;;  %6050 = vmatprep.mubr.msk.f32.mxu0 %vm6854_vm1, %v6853_v0 }
0x1ffb   :  { %6044 = vmatprep.subr.mxu0 %v6853_v0 }
0x1ffc   :  { %6045 = vmatpush3.msra.mxu0 %v7089_v9 }
0x1ffd   :  { %6046 = vmatprep.subr.mxu0 %v6853_v0 }
0x1ffe   :  { %6047 = vmatpush3.msra.mxu0 %v7093_v10 }
0x1fff   :  { %6048 = vmatprep.subr.mxu0 %v6853_v0 }
0x2000   :  { %6049 = vmatpush3.msra.mxu0 %v7097_v11 }
0x2001   :  { %6064 = vmatprep.subr.mxu0 %v6853_v0 }
0x20b9   :  { %v1831_v26 = vpop.f32.mrf.mxu0 }
0x20ba   :  { %v1832_v29 = vadd.f32 %v1831_v26, %v1756_v62 }
0x20bb   :  { %v6030_v8 = vpop.f32.mrf.mxu0 }
0x20bc   :  { %v1835_v46 = vadd.f32 %v1832_v29, %v7044_v14 }
0x20be   :  { %1843 = vrot.lane.b32.xlu0 %v1835_v46, %s6855_s0  ;;  %v5473_v34 = vmul.f32 -1.442695, %v1835_v46 }
0x20c0   :  { %6528 = vpow2.f32 %v5473_v34 }
0x20cd   :  { %v6529_v9 = vpop.eup %6528 }
0x20ce   :  { %v1839_v47 = vadd.f32 1.0, %v6529_v9 }
0x20d0   :  { %6530 = vrcp.f32 %v1839_v47 }
0x20dd   :  { %v6531_v49 = vpop.eup %6530 }
0x20de   :  { %v1853_v53 = vsub.f32 1.0, %v6531_v49  ;;  %v1859_v54 = vmul.f32 %v6531_v49, %v7278_v4 }
0x2130   :  { %v1844_v10 = vpop.permute.xlu0 %1843 }
0x2131   :  { %v1846_v35 = vmul.f32 %v6531_v49, %v1844_v10 }
0x2133   :  { %1848 = vrot.lane.b32.xlu1 %v1846_v35, %s6856_s2  ;;  %v7408_v35 = vld [vmem:[#allocation10 + $0x18] sm:$0xff] }
0x21a5   :  { %v1849_v11 = vpop.permute.xlu1 %1848 }
0x21a6   :  { %v1851_v50 = vadd.f32 %v1849_v11, %v1835_v46  ;;  %v7414_v11 = vld [vmem:[#allocation10 + $0x10] sm:$0xff] }
0x21a8   :  { %6532 = vtanh.f32 %v1851_v50  ;;  %v7418_v50 = vld [vmem:[#allocation10 + $0x8] sm:$0xff] }
0x21b5   :  { %v6533_v52 = vpop.eup %6532 }
0x21b6   :  { %1855 = vrot.lane.b32.xlu0 %v6533_v52, %s6857_s13  ;;  %v7422_v52 = vld [vmem:[#allocation10] sm:$0xff] }
0x2228   :  { %v1856_v14 = vpop.permute.xlu0 %1855 }
0x2229   :  { %v1858_v55 = vmul.f32 %v1856_v14, %v1853_v53  ;;  %v2063_v53 = vld [vmem:[#allocation5 + $0x3] sm:$0x1] }
0x222b   :  { %v1860_v51 = vadd.f32 %v1859_v54, %v1858_v55 }
0x222d   :  { %1862 = vrot.lane.b32.xlu1 %v1860_v51, %s6857_s13 }
0x229f   :  { %v1863_v57 = vpop.permute.xlu1 %1862 }
0x22a0   :  { %6040 = vmatmul.mubr.msk.f32.vlgmr.msra.gmra.mxu1 %vm110_vm2, %v1863_v57 }
0x22a1   :  { %6054 = vmatpush3.msra.mxu1 %v7335_v59  ;;  %6061 = vmatprep.mubr.msk.f32.mxu1 %vm6854_vm1, %v6853_v0 }
0x22a2   :  { %6055 = vmatprep.subr.mxu1 %v6853_v0 }
0x22a3   :  { %6056 = vmatpush3.msra.mxu1 %v7341_v60 }
0x22a4   :  { %6057 = vmatprep.subr.mxu1 %v6853_v0 }
0x22a5   :  { %6058 = vmatpush3.msra.mxu1 %v7345_v23 }
0x22a6   :  { %6059 = vmatprep.subr.mxu1 %v6853_v0 }
0x22a7   :  { %6060 = vmatpush3.msra.mxu1 %v7349_v6 }
0x22a8   :  { %6075 = vmatprep.subr.mxu1 %v6853_v0 }
0x2360   :  { %v1932_v48 = vpop.f32.mrf.mxu1 }
0x2361   :  { %v1933_v1 = vadd.f32 %v1932_v48, %v7082_v41 }
0x2362   :  { %v6041_v25 = vpop.f32.mrf.mxu1 }
0x2363   :  { %1943 = vrot.lane.b32.xlu0 %v1933_v1, %s6855_s0  ;;  %v5475_v7 = vmul.f32 -1.442695, %v1933_v1 }
0x2365   :  { %6534 = vpow2.f32 %v5475_v7 }
0x2372   :  { %v6535_v15 = vpop.eup %6534 }
0x2373   :  { %v1939_v28 = vadd.f32 1.0, %v6535_v15 }
0x2375   :  { %6536 = vrcp.f32 %v1939_v28 }
0x2382   :  { %v6537_v16 = vpop.eup %6536 }
0x2383   :  { %v1953_v41 = vsub.f32 1.0, %v6537_v16  ;;  %v1959_v4 = vmul.f32 %v6537_v16, %v1860_v51 }
0x23d5   :  { %v1944_v33 = vpop.permute.xlu0 %1943 }
0x23d6   :  { %v1946_v2 = vmul.f32 %v6537_v16, %v1944_v33 }
0x23d8   :  { %1948 = vrot.lane.b32.xlu1 %v1946_v2, %s6856_s2 }
0x244a   :  { %v1949_v37 = vpop.permute.xlu1 %1948 }
0x244b   :  { %v1951_v17 = vadd.f32 %v1949_v37, %v1933_v1 }
0x244d   :  { %6538 = vtanh.f32 %v1951_v17 }
0x245a   :  { %v6539_v3 = vpop.eup %6538 }
0x245b   :  { %1955 = vrot.lane.b32.xlu0 %v6539_v3, %s6857_s13 }
0x24cd   :  { %v1956_v18 = vpop.permute.xlu0 %1955 }
0x24ce   :  { %v1958_v19 = vmul.f32 %v1956_v18, %v1953_v41  ;;  %v7436_v18 = vld [vmem:[#allocation10 + $0x38] sm:$0xff] }
0x24d0   :  { %v1960_v61 = vadd.f32 %v1959_v4, %v1958_v19  ;;  %v7442_v4 = vld [vmem:[#allocation8 + $0x78] sm:$0xff]  ;;  %v7445_v19 = vld [vmem:[#allocation10 + $0x30] sm:$0xff] }
0x24d2   :  { %1962 = vrot.lane.b32.xlu1 %v1960_v61, %s6857_s13 }
0x2544   :  { %v1963_v62 = vpop.permute.xlu1 %1962 }
0x2545   :  { %6051 = vmatmul.mubr.msk.f32.vlgmr.msra.gmra.mxu0 %vm110_vm2, %v1963_v62  ;;  %v7453_v62 = vld [vmem:[#allocation10 + $0x28] sm:$0xff] }
0x2546   :  { %6065 = vmatpush3.msra.mxu0 %v7359_v63  ;;  %6072 = vmatprep.mubr.msk.f32.mxu0 %vm6854_vm1, %v6853_v0 }
0x2547   :  { %6066 = vmatprep.subr.mxu0 %v6853_v0 }
0x2548   :  { %6067 = vmatpush3.msra.mxu0 %v7365_v39 }
0x2549   :  { %6068 = vmatprep.subr.mxu0 %v6853_v0 }
0x254a   :  { %6069 = vmatpush3.msra.mxu0 %v7369_v40 }
0x254b   :  { %6070 = vmatprep.subr.mxu0 %v6853_v0 }
0x254c   :  { %6071 = vmatpush3.msra.mxu0 %v7373_v42 }
0x254d   :  { %6073 = vmatmul.mubr.msk.f32.vlgmr.msra.gmra.mxu0 %vm110_vm2, %v7314_v32  ;;  %6086 = vmatprep.subr.mxu0 %v6853_v0 }
0x254e   :  { %6087 = vmatpush3.msra.mxu0 %v7379_v5  ;;  %6094 = vmatprep.mubr.msk.f32.mxu0 %vm6854_vm1, %v6853_v0 }
0x254f   :  { %6088 = vmatprep.subr.mxu0 %v6853_v0 }
0x2550   :  { %6089 = vmatpush3.msra.mxu0 %v7385_v43 }
0x2551   :  { %6090 = vmatprep.subr.mxu0 %v6853_v0 }
0x2552   :  { %6091 = vmatpush3.msra.mxu0 %v7389_v22 }
0x2553   :  { %6092 = vmatprep.subr.mxu0 %v6853_v0 }
0x2554   :  { %6093 = vmatpush3.msra.mxu0 %v7393_v12 }
0x2555   :  { %6108 = vmatprep.subr.mxu0 %v6853_v0 }
0x2605   :  { %v2032_v30 = vpop.f32.mrf.mxu0 }
0x2606   :  { %v2033_v36 = vadd.f32 %v2032_v30, %v7131_v13  ;;  %v7458_v30 = vld [vmem:[#allocation8 + $0x68] sm:$0xff] }
0x2607   :  { %v6052_v38 = vpop.f32.mrf.mxu0 }
0x2608   :  { %2043 = vrot.lane.b32.xlu0 %v2033_v36, %s6855_s0  ;;  %v5477_v21 = vmul.f32 -1.442695, %v2033_v36  ;;  %v7465_v38 = vld [vmem:[#allocation8 + $0x60] sm:$0xff] }
0x260a   :  { %6540 = vpow2.f32 %v5477_v21 }
0x260d   :  { %v7399_v44 = vpop.f32.mrf.mxu0 }
0x260f   :  { %v6074_v20 = vpop.f32.mrf.mxu0 }
0x2617   :  { %v6541_v45 = vpop.eup %6540 }
0x2618   :  { %v2039_v24 = vadd.f32 1.0, %v6541_v45 }
0x261a   :  { %6542 = vrcp.f32 %v2039_v24 }
0x2627   :  { %v6543_v27 = vpop.eup %6542 }
0x2628   :  { %v2053_v46 = vsub.f32 1.0, %v6543_v27  ;;  %v2059_v9 = vmul.f32 %v6543_v27, %v1960_v61  ;;  %v7450_v61 = vld [vmem:[#allocation8 + $0x70] sm:$0xff] }
0x267a   :  { %v2044_v32 = vpop.permute.xlu0 %2043 }
0x267b   :  { %v2046_v26 = vmul.f32 %v6543_v27, %v2044_v32  ;;  %v7476_v32 = vld [vmem:[%s8118_s3] sm:$0x1] }
0x267d   :  { %2048 = vrot.lane.b32.xlu1 %v2046_v26, %s6856_s2 }
0x26ef   :  { %v2049_v29 = vpop.permute.xlu1 %2048 }
0x26f0   :  { %v2051_v8 = vadd.f32 %v2049_v29, %v2033_v36  ;;  %v7461_v36 = vld [vmem:[#allocation10 + $0x20] sm:$0xff] }
0x26f2   :  { %6544 = vtanh.f32 %v2051_v8 }
0x26ff   :  { %v6545_v13 = vpop.eup %6544 }
0x2700   :  { %2055 = vrot.lane.b32.xlu0 %v6545_v13, %s6857_s13 }
0x2772   :  { %v2056_v34 = vpop.permute.xlu0 %2055 }
0x2773   :  { %v2058_v47 = vmul.f32 %v2056_v34, %v2053_v46 }
0x2775   :  { %v7403_v49 = vadd.f32 %v2059_v9, %v2058_v47 }
0x2777   :  { %2065 = vrot.lane.b32.xlu1 %v7403_v49, %s6857_s13 }
0x27e9   :  { %v2066_v10 = vpop.permute.xlu1 %2065 }
0x27ea   :  { %6062 = vmatmul.mubr.msk.f32.vlgmr.msra.gmra.mxu1 %vm110_vm2, %v2066_v10 }
0x27eb   :  { %6076 = vmatpush3.msra.mxu1 %v7408_v35  ;;  %6083 = vmatprep.mubr.msk.f32.mxu1 %vm6854_vm1, %v6853_v0 }
0x27ec   :  { %6077 = vmatprep.subr.mxu1 %v6853_v0 }
0x27ed   :  { %6078 = vmatpush3.msra.mxu1 %v7414_v11 }
0x27ee   :  { %6079 = vmatprep.subr.mxu1 %v6853_v0 }
0x27ef   :  { %6080 = vmatpush3.msra.mxu1 %v7418_v50 }
0x27f0   :  { %6081 = vmatprep.subr.mxu1 %v6853_v0 }
0x27f1   :  { %6082 = vmatpush3.msra.mxu1 %v7422_v52 }
0x27f2   :  { %6097 = vmatprep.subr.mxu1 %v6853_v0 }
0x28aa   :  { %v2135_v14 = vpop.f32.mrf.mxu1 }
0x28ab   :  { %v2139_v54 = vadd.f32 %v2135_v14, %v2063_v53 }
0x28ac   :  { %v6063_v55 = vpop.f32.mrf.mxu1 }
0x28ad   :  { %2147 = vrot.lane.b32.xlu0 %v2139_v54, %s6855_s0  ;;  %v5479_v51 = vmul.f32 -1.442695, %v2139_v54 }
0x28af   :  { %6546 = vpow2.f32 %v5479_v51 }
0x28bc   :  { %v6547_v57 = vpop.eup %6546 }
0x28bd   :  { %v2143_v48 = vadd.f32 1.0, %v6547_v57 }
0x28bf   :  { %6548 = vrcp.f32 %v2143_v48  ;;  %v7491_v48 = vld [vmem:[#allocation8 + $0x98] sm:$0xff] }
0x28cc   :  { %v6549_v1 = vpop.eup %6548 }
0x28cd   :  { %v2157_v33 = vsub.f32 1.0, %v6549_v1  ;;  %v2163_v37 = vmul.f32 %v6549_v1, %v7403_v49 }
0x291f   :  { %v2148_v25 = vpop.permute.xlu0 %2147 }
0x2920   :  { %v2150_v7 = vmul.f32 %v6549_v1, %v2148_v25  ;;  %v7501_v1 = vld [vmem:[#allocation8 + $0x88] sm:$0xff]  ;;  %v7505_v25 = vld [vmem:[#allocation8 + $0x80] sm:$0xff] }
0x2922   :  { %2152 = vrot.lane.b32.xlu1 %v2150_v7, %s6856_s2 }
0x2994   :  { %v2153_v15 = vpop.permute.xlu1 %2152 }
0x2995   :  { %v2155_v28 = vadd.f32 %v2153_v15, %v2139_v54 }
0x2997   :  { %6550 = vtanh.f32 %v2155_v28 }
0x29a4   :  { %v6551_v16 = vpop.eup %6550 }
0x29a5   :  { %2159 = vrot.lane.b32.xlu0 %v6551_v16, %s6857_s13  ;;  %v7512_v16 = vld [vmem:[%s8118_s3 + $0x1] sm:$0x1] }
0x2a17   :  { %v2160_v2 = vpop.permute.xlu0 %2159 }
0x2a18   :  { %v2162_v17 = vmul.f32 %v2160_v2, %v2157_v33 }
0x2a1a   :  { %v7430_v3 = vadd.f32 %v2163_v37, %v2162_v17 }
0x2a1c   :  { %2236 = vrot.lane.b32.xlu1 %v7430_v3, %s6857_s13 }
0x2a8e   :  { %v2237_v41 = vpop.permute.xlu1 %2236 }
0x2a8f   :  { %6084 = vmatmul.mubr.msk.f32.vlgmr.msra.gmra.mxu1 %vm110_vm2, %v2237_v41  ;;  %6095 = vmatmul.mubr.msk.f32.vlgmr.msra.gmra.mxu0 %vm110_vm2, %v2237_v41 }
0x2a90   :  { %6098 = vmatpush3.msra.mxu1 %v7436_v18  ;;  %6105 = vmatprep.mubr.msk.f32.mxu1 %vm6854_vm1, %v6853_v0 }
0x2a91   :  { %6099 = vmatprep.subr.mxu1 %v6853_v0  ;;  %6109 = vmatpush3.msra.mxu0 %v7442_v4 }
0x2a92   :  { %6100 = vmatpush3.msra.mxu1 %v7445_v19  ;;  %6110 = vmatprep.subr.mxu0 %v6853_v0 }
0x2a93   :  { %6101 = vmatprep.subr.mxu1 %v6853_v0  ;;  %6111 = vmatpush3.msra.mxu0 %v7450_v61 }
0x2a94   :  { %6102 = vmatpush3.msra.mxu1 %v7453_v62  ;;  %6112 = vmatprep.subr.mxu0 %v6853_v0 }
0x2a95   :  { %6103 = vmatprep.subr.mxu1 %v6853_v0  ;;  %6113 = vmatpush3.msra.mxu0 %v7458_v30 }
0x2a96   :  { %6104 = vmatpush3.msra.mxu1 %v7461_v36  ;;  %6114 = vmatprep.subr.mxu0 %v6853_v0 }
0x2a97   :  { %6115 = vmatpush3.msra.mxu0 %v7465_v38  ;;  %6116 = vmatprep.mubr.msk.f32.mxu0 %vm6854_vm1, %v6853_v0 }
0x2a98   :  { %6119 = vmatprep.subr.mxu1 %v6853_v0  ;;  %6130 = vmatprep.subr.mxu0 %v6853_v0 }
0x2b4f   :  { %v2306_v20 = vpop.f32.mrf.mxu1  ;;  %v2402_v21 = vpop.f32.mrf.mxu0 }
0x2b50   :  { %v2307_v45 = vadd.f32 %v2306_v20, %v7399_v44 }
0x2b51   :  { %v6085_v24 = vpop.f32.mrf.mxu1  ;;  %v6096_v27 = vpop.f32.mrf.mxu0 }
0x2b52   :  { %v2310_v26 = vadd.f32 %v7476_v32, %v2307_v45 }
0x2b54   :  { %2318 = vrot.lane.b32.xlu0 %v2310_v26, %s6855_s0  ;;  %v5482_v29 = vmul.f32 -1.442695, %v2310_v26 }
0x2b56   :  { %6552 = vpow2.f32 %v5482_v29 }
0x2b63   :  { %v6553_v8 = vpop.eup %6552 }
0x2b64   :  { %v2314_v13 = vadd.f32 1.0, %v6553_v8 }
0x2b66   :  { %6554 = vrcp.f32 %v2314_v13 }
0x2b73   :  { %v6555_v46 = vpop.eup %6554 }
0x2b74   :  { %v2328_v53 = vsub.f32 1.0, %v6555_v46  ;;  %v2334_v54 = vmul.f32 %v6555_v46, %v7310_v31  ;;  %v7497_v31 = vld [vmem:[#allocation8 + $0x90] sm:$0xff] }
0x2bc6   :  { %v2319_v34 = vpop.permute.xlu0 %2318 }
0x2bc7   :  { %v2321_v9 = vmul.f32 %v6555_v46, %v2319_v34 }
0x2bc9   :  { %2323 = vrot.lane.b32.xlu1 %v2321_v9, %s6856_s2  ;;  %v7534_v9 = vld [vmem:[%s8118_s3 + $0x2] sm:$0x1] }
0x2c3b   :  { %v2324_v44 = vpop.permute.xlu1 %2323 }
0x2c3c   :  { %v2326_v47 = vadd.f32 %v2324_v44, %v2310_v26 }
0x2c3e   :  { %6556 = vtanh.f32 %v2326_v47 }
0x2c4b   :  { %v6557_v10 = vpop.eup %6556 }
0x2c4c   :  { %2330 = vrot.lane.b32.xlu0 %v6557_v10, %s6857_s13 }
0x2cbe   :  { %v2331_v14 = vpop.permute.xlu0 %2330 }
0x2cbf   :  { %v2333_v55 = vmul.f32 %v2331_v14, %v2328_v53 }
0x2cc1   :  { %v7483_v51 = vadd.f32 %v2334_v54, %v2333_v55 }
0x2cc3   :  { %2407 = vrot.lane.b32.xlu1 %v7483_v51, %s6857_s13 }
0x2d35   :  { %v7487_v57 = vpop.permute.xlu1 %2407 }
0x2d36   :  { %6106 = vmatmul.mubr.msk.f32.vlgmr.msra.gmra.mxu1 %vm110_vm2, %v7487_v57 }
0x2d37   :  { %6120 = vmatpush3.msra.mxu1 %v7491_v48  ;;  %6127 = vmatprep.mubr.msk.f32.mxu1 %vm6854_vm1, %v6853_v0 }
0x2d38   :  { %6121 = vmatprep.subr.mxu1 %v6853_v0 }
0x2d39   :  { %6122 = vmatpush3.msra.mxu1 %v7497_v31 }
0x2d3a   :  { %6123 = vmatprep.subr.mxu1 %v6853_v0 }
0x2d3b   :  { %6124 = vmatpush3.msra.mxu1 %v7501_v1 }
0x2d3c   :  { %6125 = vmatprep.subr.mxu1 %v6853_v0 }
0x2d3d   :  { %6126 = vmatpush3.msra.mxu1 %v7505_v25 }
0x2d3e   :  { %6141 = vmatprep.subr.mxu1 %v6853_v0 }
0x2df6   :  { %v2477_v7 = vpop.f32.mrf.mxu1 }
0x2df7   :  { %v2478_v15 = vadd.f32 %v2477_v7, %v2402_v21 }
0x2df8   :  { %v6107_v28 = vpop.f32.mrf.mxu1 }
0x2df9   :  { %v2481_v33 = vadd.f32 %v7512_v16, %v2478_v15 }
0x2dfb   :  { %2489 = vrot.lane.b32.xlu0 %v2481_v33, %s6855_s0  ;;  %v5485_v2 = vmul.f32 -1.442695, %v2481_v33 }
0x2dfd   :  { %6558 = vpow2.f32 %v5485_v2 }
0x2e0a   :  { %v6559_v37 = vpop.eup %6558 }
0x2e0b   :  { %v2485_v17 = vadd.f32 1.0, %v6559_v37 }
0x2e0d   :  { %6560 = vrcp.f32 %v2485_v17 }
0x2e1a   :  { %v6561_v41 = vpop.eup %6560 }
0x2e1b   :  { %v2499_v26 = vsub.f32 1.0, %v6561_v41  ;;  %v2505_v8 = vmul.f32 %v6561_v41, %v7430_v3 }
0x2e6d   :  { %v2490_v20 = vpop.permute.xlu0 %2489 }
0x2e6e   :  { %v2492_v45 = vmul.f32 %v6561_v41, %v2490_v20 }
0x2e70   :  { %2494 = vrot.lane.b32.xlu1 %v2492_v45, %s6856_s2 }
0x2ee2   :  { %v2495_v21 = vpop.permute.xlu1 %2494 }
0x2ee3   :  { %v2497_v24 = vadd.f32 %v2495_v21, %v2481_v33  ;;  %v7567_v21 = vld [vmem:[%s8118_s3 + $0x3] sm:$0x1] }
0x2ee5   :  { %6562 = vtanh.f32 %v2497_v24 }
0x2ef2   :  { %v6563_v27 = vpop.eup %6562 }
0x2ef3   :  { %2501 = vrot.lane.b32.xlu0 %v6563_v27, %s6857_s13 }
0x2f65   :  { %v2502_v29 = vpop.permute.xlu0 %2501 }
0x2f66   :  { %v2504_v13 = vmul.f32 %v2502_v29, %v2499_v26 }
0x2f68   :  { %v2506_v46 = vadd.f32 %v2505_v8, %v2504_v13 }
0x2f6a   :  { %2508 = vrot.lane.b32.xlu1 %v2506_v46, %s6857_s13 }
0x2fdc   :  { %v2509_v34 = vpop.permute.xlu1 %2508 }
0x2fdd   :  { %6117 = vmatmul.mubr.msk.f32.vlgmr.msra.gmra.mxu0 %vm110_vm2, %v2509_v34 }
0x2fde   :  { %6131 = vmatpush3.msra.mxu0 %v7335_v59  ;;  %6138 = vmatprep.mubr.msk.f32.mxu0 %vm6854_vm1, %v6853_v0 }
0x2fdf   :  { %6132 = vmatprep.subr.mxu0 %v6853_v0 }
0x2fe0   :  { %6133 = vmatpush3.msra.mxu0 %v7341_v60 }
0x2fe1   :  { %6134 = vmatprep.subr.mxu0 %v6853_v0 }
0x2fe2   :  { %6135 = vmatpush3.msra.mxu0 %v7345_v23 }
0x2fe3   :  { %6136 = vmatprep.subr.mxu0 %v6853_v0 }
0x2fe4   :  { %6137 = vmatpush3.msra.mxu0 %v7349_v6 }
0x2fe5   :  { %6152 = vmatprep.subr.mxu0 %v6853_v0 }
0x309d   :  { %v2578_v3 = vpop.f32.mrf.mxu0 }
0x309e   :  { %v2579_v44 = vadd.f32 %v7534_v9, %v2578_v3 }
0x309f   :  { %v6118_v47 = vpop.f32.mrf.mxu0 }
0x30a0   :  { %2589 = vrot.lane.b32.xlu0 %v2579_v44, %s6855_s0  ;;  %v5487_v10 = vmul.f32 -1.442695, %v2579_v44 }
0x30a2   :  { %6564 = vpow2.f32 %v5487_v10 }
0x30af   :  { %v6565_v53 = vpop.eup %6564 }
0x30b0   :  { %v2585_v14 = vadd.f32 1.0, %v6565_v53 }
0x30b2   :  { %6566 = vrcp.f32 %v2585_v14 }
0x30bf   :  { %v6567_v54 = vpop.eup %6566 }
0x30c0   :  { %v2599_v2 = vsub.f32 1.0, %v6567_v54  ;;  %v2605_v17 = vmul.f32 %v6567_v54, %v2506_v46 }
0x3112   :  { %v2590_v55 = vpop.permute.xlu0 %2589 }
0x3113   :  { %v2592_v7 = vmul.f32 %v6567_v54, %v2590_v55 }
0x3115   :  { %2594 = vrot.lane.b32.xlu1 %v2592_v7, %s6856_s2 }
0x3187   :  { %v2595_v15 = vpop.permute.xlu1 %2594 }
0x3188   :  { %v2597_v28 = vadd.f32 %v2595_v15, %v2579_v44 }
0x318a   :  { %6568 = vtanh.f32 %v2597_v28 }
0x3197   :  { %v6569_v33 = vpop.eup %6568 }
0x3198   :  { %2601 = vrot.lane.b32.xlu0 %v6569_v33, %s6857_s13  ;;  %v2709_v33 = vld [vmem:[#allocation5 + $0x4] sm:$0x1] }
0x320a   :  { %v2602_v37 = vpop.permute.xlu0 %2601 }
0x320b   :  { %v2604_v41 = vmul.f32 %v2602_v37, %v2599_v2 }
0x320d   :  { %v2606_v20 = vadd.f32 %v2605_v17, %v2604_v41 }
0x320f   :  { %2608 = vrot.lane.b32.xlu1 %v2606_v20, %s6857_s13 }
0x3281   :  { %v2609_v45 = vpop.permute.xlu1 %2608 }
0x3282   :  { %6128 = vmatmul.mubr.msk.f32.vlgmr.msra.gmra.mxu1 %vm110_vm2, %v2609_v45 }
0x3283   :  { %6142 = vmatpush3.msra.mxu1 %v7359_v63  ;;  %6149 = vmatprep.mubr.msk.f32.mxu1 %vm6854_vm1, %v6853_v0 }
0x3284   :  { %6143 = vmatprep.subr.mxu1 %v6853_v0 }
0x3285   :  { %6144 = vmatpush3.msra.mxu1 %v7365_v39 }
0x3286   :  { %6145 = vmatprep.subr.mxu1 %v6853_v0 }
0x3287   :  { %6146 = vmatpush3.msra.mxu1 %v7369_v40 }
0x3288   :  { %6147 = vmatprep.subr.mxu1 %v6853_v0 }
0x3289   :  { %6148 = vmatpush3.msra.mxu1 %v7373_v42 }
0x328a   :  { %6150 = vmatmul.mubr.msk.f32.vlgmr.msra.gmra.mxu1 %vm110_vm2, %v7487_v57  ;;  %6163 = vmatprep.subr.mxu1 %v6853_v0 }
0x328b   :  { %6164 = vmatpush3.msra.mxu1 %v7379_v5  ;;  %6171 = vmatprep.mubr.msk.f32.mxu1 %vm6854_vm1, %v6853_v0 }
0x328c   :  { %6165 = vmatprep.subr.mxu1 %v6853_v0 }
0x328d   :  { %6166 = vmatpush3.msra.mxu1 %v7385_v43 }
0x328e   :  { %6167 = vmatprep.subr.mxu1 %v6853_v0 }
0x328f   :  { %6168 = vmatpush3.msra.mxu1 %v7389_v22 }
0x3290   :  { %6169 = vmatprep.subr.mxu1 %v6853_v0 }
0x3291   :  { %6170 = vmatpush3.msra.mxu1 %v7393_v12 }
0x3292   :  { %6185 = vmatprep.subr.mxu1 %v6853_v0 }
0x3342   :  { %v2678_v57 = vpop.f32.mrf.mxu1 }
0x3343   :  { %v2679_v24 = vadd.f32 %v7567_v21, %v2678_v57 }
0x3344   :  { %v6129_v27 = vpop.f32.mrf.mxu1 }
0x3345   :  { %2689 = vrot.lane.b32.xlu0 %v2679_v24, %s6855_s0  ;;  %v5489_v8 = vmul.f32 -1.442695, %v2679_v24 }
0x3347   :  { %6570 = vpow2.f32 %v5489_v8 }
0x334a   :  { %v7571_v26 = vpop.f32.mrf.mxu1 }
0x334c   :  { %v6151_v29 = vpop.f32.mrf.mxu1 }
0x3354   :  { %v6571_v13 = vpop.eup %6570 }
0x3355   :  { %v2685_v46 = vadd.f32 1.0, %v6571_v13 }
0x3357   :  { %6572 = vrcp.f32 %v2685_v46 }
0x3364   :  { %v6573_v34 = vpop.eup %6572 }
0x3365   :  { %v2699_v14 = vsub.f32 1.0, %v6573_v34  ;;  %v2705_v55 = vmul.f32 %v6573_v34, %v2606_v20 }
0x33b7   :  { %v2690_v3 = vpop.permute.xlu0 %2689 }
0x33b8   :  { %v2692_v44 = vmul.f32 %v6573_v34, %v2690_v3 }
0x33ba   :  { %2694 = vrot.lane.b32.xlu1 %v2692_v44, %s6856_s2 }
0x342c   :  { %v2695_v47 = vpop.permute.xlu1 %2694 }
0x342d   :  { %v2697_v10 = vadd.f32 %v2695_v47, %v2679_v24 }
0x342f   :  { %6574 = vtanh.f32 %v2697_v10 }
0x343c   :  { %v6575_v53 = vpop.eup %6574 }
0x343d   :  { %2701 = vrot.lane.b32.xlu0 %v6575_v53, %s6857_s13 }
0x34af   :  { %v2702_v54 = vpop.permute.xlu0 %2701 }
0x34b0   :  { %v2704_v7 = vmul.f32 %v2702_v54, %v2699_v14 }
0x34b2   :  { %v7575_v15 = vadd.f32 %v2705_v55, %v2704_v7 }
0x34b4   :  { %2711 = vrot.lane.b32.xlu1 %v7575_v15, %s6857_s13 }
0x3526   :  { %v2712_v28 = vpop.permute.xlu1 %2711 }
0x3527   :  { %6139 = vmatmul.mubr.msk.f32.vlgmr.msra.gmra.mxu0 %vm110_vm2, %v2712_v28 }
0x3528   :  { %6153 = vmatpush3.msra.mxu0 %v7408_v35  ;;  %6160 = vmatprep.mubr.msk.f32.mxu0 %vm6854_vm1, %v6853_v0 }
0x3529   :  { %6154 = vmatprep.subr.mxu0 %v6853_v0 }
0x352a   :  { %6155 = vmatpush3.msra.mxu0 %v7414_v11 }
0x352b   :  { %6156 = vmatprep.subr.mxu0 %v6853_v0 }
0x352c   :  { %6157 = vmatpush3.msra.mxu0 %v7418_v50 }
0x352d   :  { %6158 = vmatprep.subr.mxu0 %v6853_v0 }
0x352e   :  { %6159 = vmatpush3.msra.mxu0 %v7422_v52 }
0x352f   :  { %6174 = vmatprep.subr.mxu0 %v6853_v0 }
0x35e7   :  { %v2781_v2 = vpop.f32.mrf.mxu0 }
0x35e8   :  { %v2785_v37 = vadd.f32 %v2781_v2, %v2709_v33 }
0x35e9   :  { %v6140_v17 = vpop.f32.mrf.mxu0 }
0x35ea   :  { %2793 = vrot.lane.b32.xlu0 %v2785_v37, %s6855_s0  ;;  %v5491_v41 = vmul.f32 -1.442695, %v2785_v37 }
0x35ec   :  { %6576 = vpow2.f32 %v5491_v41 }
0x35f9   :  { %v6577_v20 = vpop.eup %6576 }
0x35fa   :  { %v2789_v45 = vadd.f32 1.0, %v6577_v20 }
0x35fc   :  { %6578 = vrcp.f32 %v2789_v45 }
0x3609   :  { %v6579_v57 = vpop.eup %6578 }
0x360a   :  { %v2803_v46 = vsub.f32 1.0, %v6579_v57  ;;  %v2809_v3 = vmul.f32 %v6579_v57, %v7575_v15 }
0x365c   :  { %v2794_v24 = vpop.permute.xlu0 %2793 }
0x365d   :  { %v2796_v27 = vmul.f32 %v6579_v57, %v2794_v24 }
0x365f   :  { %2798 = vrot.lane.b32.xlu1 %v2796_v27, %s6856_s2 }
0x36d1   :  { %v2799_v29 = vpop.permute.xlu1 %2798 }
0x36d2   :  { %v2801_v8 = vadd.f32 %v2799_v29, %v2785_v37 }
0x36d4   :  { %6580 = vtanh.f32 %v2801_v8 }
0x36e1   :  { %v6581_v13 = vpop.eup %6580 }
0x36e2   :  { %2805 = vrot.lane.b32.xlu0 %v6581_v13, %s6857_s13 }
0x3754   :  { %v2806_v34 = vpop.permute.xlu0 %2805 }
0x3755   :  { %v2808_v44 = vmul.f32 %v2806_v34, %v2803_v46 }
0x3757   :  { %v7594_v47 = vadd.f32 %v2809_v3, %v2808_v44 }
0x3759   :  { %2882 = vrot.lane.b32.xlu1 %v7594_v47, %s6857_s13 }
0x37cb   :  { %v2883_v10 = vpop.permute.xlu1 %2882 }
0x37cc   :  { %6161 = vmatmul.mubr.msk.f32.vlgmr.msra.gmra.mxu0 %vm110_vm2, %v2883_v10  ;;  %6172 = vmatmul.mubr.msk.f32.vlgmr.msra.gmra.mxu1 %vm110_vm2, %v2883_v10 }
0x37cd   :  { %6175 = vmatpush3.msra.mxu0 %v7436_v18  ;;  %6182 = vmatprep.mubr.msk.f32.mxu0 %vm6854_vm1, %v6853_v0 }
0x37ce   :  { %6176 = vmatprep.subr.mxu0 %v6853_v0  ;;  %6186 = vmatpush3.msra.mxu1 %v7442_v4 }
0x37cf   :  { %6177 = vmatpush3.msra.mxu0 %v7445_v19  ;;  %6187 = vmatprep.subr.mxu1 %v6853_v0 }
0x37d0   :  { %6178 = vmatprep.subr.mxu0 %v6853_v0  ;;  %6188 = vmatpush3.msra.mxu1 %v7450_v61 }
0x37d1   :  { %6179 = vmatpush3.msra.mxu0 %v7453_v62  ;;  %6189 = vmatprep.subr.mxu1 %v6853_v0 }
0x37d2   :  { %6180 = vmatprep.subr.mxu0 %v6853_v0  ;;  %6190 = vmatpush3.msra.mxu1 %v7458_v30 }
0x37d3   :  { %6181 = vmatpush3.msra.mxu0 %v7461_v36  ;;  %6191 = vmatprep.subr.mxu1 %v6853_v0 }
0x37d4   :  { %6192 = vmatpush3.msra.mxu1 %v7465_v38  ;;  %6193 = vmatprep.mubr.msk.f32.mxu1 %vm6854_vm1, %v6853_v0 }
0x37d5   :  { %6196 = vmatprep.subr.mxu0 %v6853_v0  ;;  %6207 = vmatprep.subr.mxu1 %v6853_v0 }
0x388c   :  { %v2952_v53 = vpop.f32.mrf.mxu0  ;;  %v3048_v14 = vpop.f32.mrf.mxu1 }
0x388d   :  { %v2953_v54 = vadd.f32 %v2952_v53, %v7571_v26 }
0x388e   :  { %v6162_v55 = vpop.f32.mrf.mxu0  ;;  %v6173_v7 = vpop.f32.mrf.mxu1 }
0x388f   :  { %v2956_v28 = vadd.f32 %v7476_v32, %v2953_v54 }
0x3891   :  { %2964 = vrot.lane.b32.xlu0 %v2956_v28, %s6855_s0  ;;  %v5494_v33 = vmul.f32 -1.442695, %v2956_v28 }
0x3893   :  { %6582 = vpow2.f32 %v5494_v33 }
0x38a0   :  { %v6583_v2 = vpop.eup %6582 }
0x38a1   :  { %v2960_v37 = vadd.f32 1.0, %v6583_v2 }
0x38a3   :  { %6584 = vrcp.f32 %v2960_v37 }
0x38b0   :  { %v6585_v17 = vpop.eup %6584 }
0x38b1   :  { %v2974_v24 = vsub.f32 1.0, %v6585_v17  ;;  %v2980_v29 = vmul.f32 %v6585_v17, %v7483_v51 }
0x3903   :  { %v2965_v41 = vpop.permute.xlu0 %2964 }
0x3904   :  { %v2967_v20 = vmul.f32 %v6585_v17, %v2965_v41 }
0x3906   :  { %2969 = vrot.lane.b32.xlu1 %v2967_v20, %s6856_s2 }
0x3978   :  { %v2970_v45 = vpop.permute.xlu1 %2969 }
0x3979   :  { %v2972_v57 = vadd.f32 %v2970_v45, %v2956_v28 }
0x397b   :  { %6586 = vtanh.f32 %v2972_v57 }
0x3988   :  { %v6587_v26 = vpop.eup %6586 }
0x3989   :  { %2976 = vrot.lane.b32.xlu0 %v6587_v26, %s6857_s13 }
0x39fb   :  { %v2977_v27 = vpop.permute.xlu0 %2976 }
0x39fc   :  { %v2979_v8 = vmul.f32 %v2977_v27, %v2974_v24 }
0x39fe   :  { %v7626_v13 = vadd.f32 %v2980_v29, %v2979_v8 }
0x3a00   :  { %3053 = vrot.lane.b32.xlu1 %v7626_v13, %s6857_s13 }
0x3a72   :  { %v7630_v46 = vpop.permute.xlu1 %3053 }
0x3a73   :  { %6183 = vmatmul.mubr.msk.f32.vlgmr.msra.gmra.mxu0 %vm110_vm2, %v7630_v46 }
0x3a74   :  { %6197 = vmatpush3.msra.mxu0 %v7491_v48  ;;  %6204 = vmatprep.mubr.msk.f32.mxu0 %vm6854_vm1, %v6853_v0 }
0x3a75   :  { %6198 = vmatprep.subr.mxu0 %v6853_v0 }
0x3a76   :  { %6199 = vmatpush3.msra.mxu0 %v7497_v31 }
0x3a77   :  { %6200 = vmatprep.subr.mxu0 %v6853_v0 }
0x3a78   :  { %6201 = vmatpush3.msra.mxu0 %v7501_v1 }
0x3a79   :  { %6202 = vmatprep.subr.mxu0 %v6853_v0 }
0x3a7a   :  { %6203 = vmatpush3.msra.mxu0 %v7505_v25 }
0x3a7b   :  { %6218 = vmatprep.subr.mxu0 %v6853_v0 }
0x3b33   :  { %v3123_v51 = vpop.f32.mrf.mxu0 }
0x3b34   :  { %v3124_v34 = vadd.f32 %v3123_v51, %v3048_v14 }
0x3b35   :  { %v6184_v3 = vpop.f32.mrf.mxu0 }
0x3b36   :  { %v3127_v44 = vadd.f32 %v7512_v16, %v3124_v34 }
0x3b38   :  { %3135 = vrot.lane.b32.xlu0 %v3127_v44, %s6855_s0  ;;  %v5497_v10 = vmul.f32 -1.442695, %v3127_v44 }
0x3b3a   :  { %6588 = vpow2.f32 %v5497_v10 }
0x3b47   :  { %v6589_v53 = vpop.eup %6588 }
0x3b48   :  { %v3131_v54 = vadd.f32 1.0, %v6589_v53 }
0x3b4a   :  { %6590 = vrcp.f32 %v3131_v54 }
0x3b57   :  { %v6591_v55 = vpop.eup %6590 }
0x3b58   :  { %v3145_v14 = vsub.f32 1.0, %v6591_v55  ;;  %v3151_v41 = vmul.f32 %v6591_v55, %v7594_v47 }
0x3baa   :  { %v3136_v7 = vpop.permute.xlu0 %3135 }
0x3bab   :  { %v3138_v28 = vmul.f32 %v6591_v55, %v3136_v7 }
0x3bad   :  { %3140 = vrot.lane.b32.xlu1 %v3138_v28, %s6856_s2 }
0x3c1f   :  { %v3141_v33 = vpop.permute.xlu1 %3140 }
0x3c20   :  { %v3143_v2 = vadd.f32 %v3141_v33, %v3127_v44 }
0x3c22   :  { %6592 = vtanh.f32 %v3143_v2 }
0x3c2f   :  { %v6593_v37 = vpop.eup %6592 }
0x3c30   :  { %3147 = vrot.lane.b32.xlu0 %v6593_v37, %s6857_s13 }
0x3ca2   :  { %v3148_v17 = vpop.permute.xlu0 %3147 }
0x3ca3   :  { %v3150_v20 = vmul.f32 %v3148_v17, %v3145_v14 }
0x3ca5   :  { %v3152_v45 = vadd.f32 %v3151_v41, %v3150_v20 }
0x3ca7   :  { %3154 = vrot.lane.b32.xlu1 %v3152_v45, %s6857_s13 }
0x3d19   :  { %v3155_v57 = vpop.permute.xlu1 %3154 }
0x3d1a   :  { %6194 = vmatmul.mubr.msk.f32.vlgmr.msra.gmra.mxu1 %vm110_vm2, %v3155_v57 }
0x3d1b   :  { %6208 = vmatpush3.msra.mxu1 %v7335_v59  ;;  %6215 = vmatprep.mubr.msk.f32.mxu1 %vm6854_vm1, %v6853_v0 }
0x3d1c   :  { %6209 = vmatprep.subr.mxu1 %v6853_v0 }
0x3d1d   :  { %6210 = vmatpush3.msra.mxu1 %v7341_v60 }
0x3d1e   :  { %6211 = vmatprep.subr.mxu1 %v6853_v0 }
0x3d1f   :  { %6212 = vmatpush3.msra.mxu1 %v7345_v23 }
0x3d20   :  { %6213 = vmatprep.subr.mxu1 %v6853_v0 }
0x3d21   :  { %6214 = vmatpush3.msra.mxu1 %v7349_v6 }
0x3d22   :  { %6229 = vmatprep.subr.mxu1 %v6853_v0 }
0x3dda   :  { %v3224_v47 = vpop.f32.mrf.mxu1 }
0x3ddb   :  { %v3225_v59 = vadd.f32 %v7534_v9, %v3224_v47  ;;  %v3355_v47 = vld [vmem:[#allocation5 + $0x5] sm:$0x1] }
0x3ddc   :  { %v6195_v26 = vpop.f32.mrf.mxu1 }
0x3ddd   :  { %3235 = vrot.lane.b32.xlu0 %v3225_v59, %s6855_s0  ;;  %v5499_v24 = vmul.f32 -1.442695, %v3225_v59 }
0x3ddf   :  { %6594 = vpow2.f32 %v5499_v24 }
0x3dec   :  { %v6595_v27 = vpop.eup %6594 }
0x3ded   :  { %v3231_v60 = vadd.f32 1.0, %v6595_v27 }
0x3def   :  { %6596 = vrcp.f32 %v3231_v60 }
0x3dfc   :  { %v6597_v29 = vpop.eup %6596 }
0x3dfd   :  { %v3245_v3 = vsub.f32 1.0, %v6597_v29  ;;  %v3251_v10 = vmul.f32 %v6597_v29, %v3152_v45 }
0x3e4f   :  { %v3236_v8 = vpop.permute.xlu0 %3235 }
0x3e50   :  { %v3238_v23 = vmul.f32 %v6597_v29, %v3236_v8 }
0x3e52   :  { %3240 = vrot.lane.b32.xlu1 %v3238_v23, %s6856_s2 }
0x3ec4   :  { %v3241_v51 = vpop.permute.xlu1 %3240 }
0x3ec5   :  { %v3243_v6 = vadd.f32 %v3241_v51, %v3225_v59 }
0x3ec7   :  { %6598 = vtanh.f32 %v3243_v6 }
0x3ed4   :  { %v6599_v34 = vpop.eup %6598 }
0x3ed5   :  { %3247 = vrot.lane.b32.xlu0 %v6599_v34, %s6857_s13 }
0x3f47   :  { %v3248_v44 = vpop.permute.xlu0 %3247 }
0x3f48   :  { %v3250_v53 = vmul.f32 %v3248_v44, %v3245_v3 }
0x3f4a   :  { %v3252_v54 = vadd.f32 %v3251_v10, %v3250_v53 }
0x3f4c   :  { %3254 = vrot.lane.b32.xlu1 %v3252_v54, %s6857_s13 }
0x3fbe   :  { %v3255_v55 = vpop.permute.xlu1 %3254 }
0x3fbf   :  { %6205 = vmatmul.mubr.msk.f32.vlgmr.msra.gmra.mxu0 %vm110_vm2, %v3255_v55 }
0x3fc0   :  { %6219 = vmatpush3.msra.mxu0 %v7359_v63  ;;  %6226 = vmatprep.mubr.msk.f32.mxu0 %vm6854_vm1, %v6853_v0 }
0x3fc1   :  { %6220 = vmatprep.subr.mxu0 %v6853_v0 }
0x3fc2   :  { %6221 = vmatpush3.msra.mxu0 %v7365_v39 }
0x3fc3   :  { %6222 = vmatprep.subr.mxu0 %v6853_v0 }
0x3fc4   :  { %6223 = vmatpush3.msra.mxu0 %v7369_v40 }
0x3fc5   :  { %6224 = vmatprep.subr.mxu0 %v6853_v0 }
0x3fc6   :  { %6225 = vmatpush3.msra.mxu0 %v7373_v42 }
0x3fc7   :  { %6227 = vmatmul.mubr.msk.f32.vlgmr.msra.gmra.mxu0 %vm110_vm2, %v7630_v46  ;;  %6240 = vmatprep.subr.mxu0 %v6853_v0 }
0x3fc8   :  { %6241 = vmatpush3.msra.mxu0 %v7379_v5  ;;  %6248 = vmatprep.mubr.msk.f32.mxu0 %vm6854_vm1, %v6853_v0 }
0x3fc9   :  { %6242 = vmatprep.subr.mxu0 %v6853_v0 }
0x3fca   :  { %6243 = vmatpush3.msra.mxu0 %v7385_v43 }
0x3fcb   :  { %6244 = vmatprep.subr.mxu0 %v6853_v0 }
0x3fcc   :  { %6245 = vmatpush3.msra.mxu0 %v7389_v22 }
0x3fcd   :  { %6246 = vmatprep.subr.mxu0 %v6853_v0 }
0x3fce   :  { %6247 = vmatpush3.msra.mxu0 %v7393_v12 }
0x3fcf   :  { %6262 = vmatprep.subr.mxu0 %v6853_v0 }
0x407f   :  { %v3324_v63 = vpop.f32.mrf.mxu0 }
0x4080   :  { %v3325_v39 = vadd.f32 %v7567_v21, %v3324_v63 }
0x4081   :  { %v6206_v40 = vpop.f32.mrf.mxu0 }
0x4082   :  { %3335 = vrot.lane.b32.xlu0 %v3325_v39, %s6855_s0  ;;  %v5501_v43 = vmul.f32 -1.442695, %v3325_v39 }
0x4084   :  { %6600 = vpow2.f32 %v5501_v43 }
0x4087   :  { %v7691_v42 = vpop.f32.mrf.mxu0 }
0x4089   :  { %v6228_v5 = vpop.f32.mrf.mxu0 }
0x4091   :  { %v6601_v46 = vpop.eup %6600 }
0x4092   :  { %v3331_v7 = vadd.f32 1.0, %v6601_v46 }
0x4094   :  { %6602 = vrcp.f32 %v3331_v7 }
0x40a1   :  { %v6603_v22 = vpop.eup %6602 }
0x40a2   :  { %v3345_v14 = vsub.f32 1.0, %v6603_v22  ;;  %v3351_v41 = vmul.f32 %v6603_v22, %v3252_v54 }
0x40f4   :  { %v3336_v28 = vpop.permute.xlu0 %3335 }
0x40f5   :  { %v3338_v33 = vmul.f32 %v6603_v22, %v3336_v28 }
0x40f7   :  { %3340 = vrot.lane.b32.xlu1 %v3338_v33, %s6856_s2 }
0x4169   :  { %v3341_v12 = vpop.permute.xlu1 %3340 }
0x416a   :  { %v3343_v2 = vadd.f32 %v3341_v12, %v3325_v39 }
0x416c   :  { %6604 = vtanh.f32 %v3343_v2 }
0x4179   :  { %v6605_v37 = vpop.eup %6604 }
0x417a   :  { %3347 = vrot.lane.b32.xlu0 %v6605_v37, %s6857_s13 }
0x41ec   :  { %v3348_v17 = vpop.permute.xlu0 %3347 }
0x41ed   :  { %v3350_v20 = vmul.f32 %v3348_v17, %v3345_v14 }
0x41ef   :  { %v7695_v45 = vadd.f32 %v3351_v41, %v3350_v20 }
0x41f1   :  { %3357 = vrot.lane.b32.xlu1 %v7695_v45, %s6857_s13 }
0x4263   :  { %v3358_v57 = vpop.permute.xlu1 %3357 }
0x4264   :  { %6216 = vmatmul.mubr.msk.f32.vlgmr.msra.gmra.mxu1 %vm110_vm2, %v3358_v57 }
0x4265   :  { %6230 = vmatpush3.msra.mxu1 %v7408_v35  ;;  %6237 = vmatprep.mubr.msk.f32.mxu1 %vm6854_vm1, %v6853_v0 }
0x4266   :  { %6231 = vmatprep.subr.mxu1 %v6853_v0 }
0x4267   :  { %6232 = vmatpush3.msra.mxu1 %v7414_v11 }
0x4268   :  { %6233 = vmatprep.subr.mxu1 %v6853_v0 }
0x4269   :  { %6234 = vmatpush3.msra.mxu1 %v7418_v50 }
0x426a   :  { %6235 = vmatprep.subr.mxu1 %v6853_v0 }
0x426b   :  { %6236 = vmatpush3.msra.mxu1 %v7422_v52 }
0x426c   :  { %6251 = vmatprep.subr.mxu1 %v6853_v0 }
0x4324   :  { %v3427_v59 = vpop.f32.mrf.mxu1 }
0x4325   :  { %v3431_v35 = vadd.f32 %v3427_v59, %v3355_v47 }
0x4326   :  { %v6217_v26 = vpop.f32.mrf.mxu1 }
0x4327   :  { %3439 = vrot.lane.b32.xlu0 %v3431_v35, %s6855_s0  ;;  %v5503_v24 = vmul.f32 -1.442695, %v3431_v35  ;;  %v7771_v26 = vld [vmem:[#allocation8 + $0x18] sm:$0xff] }
0x4329   :  { %6606 = vpow2.f32 %v5503_v24  ;;  %v7777_v24 = vld [vmem:[#allocation8 + $0x10] sm:$0xff] }
0x4336   :  { %v6607_v27 = vpop.eup %6606 }
0x4337   :  { %v3435_v11 = vadd.f32 1.0, %v6607_v27  ;;  %v7781_v27 = vld [vmem:[#allocation8 + $0x8] sm:$0xff] }
0x4339   :  { %6608 = vrcp.f32 %v3435_v11  ;;  %v7785_v11 = vld [vmem:[#allocation8] sm:$0xff] }
0x4346   :  { %v6609_v60 = vpop.eup %6608 }
0x4347   :  { %v3449_v51 = vsub.f32 1.0, %v6609_v60  ;;  %v3455_v34 = vmul.f32 %v6609_v60, %v7695_v45 }
0x4399   :  { %v3440_v29 = vpop.permute.xlu0 %3439 }
0x439a   :  { %v3442_v50 = vmul.f32 %v6609_v60, %v3440_v29 }
0x439c   :  { %3444 = vrot.lane.b32.xlu1 %v3442_v50, %s6856_s2 }
0x440e   :  { %v3445_v8 = vpop.permute.xlu1 %3444 }
0x440f   :  { %v3447_v52 = vadd.f32 %v3445_v8, %v3431_v35 }
0x4411   :  { %6610 = vtanh.f32 %v3447_v52 }
0x441e   :  { %v6611_v23 = vpop.eup %6610 }
0x441f   :  { %3451 = vrot.lane.b32.xlu0 %v6611_v23, %s6857_s13 }
0x4491   :  { %v3452_v6 = vpop.permute.xlu0 %3451 }
0x4492   :  { %v3454_v3 = vmul.f32 %v3452_v6, %v3449_v51 }
0x4494   :  { %v7714_v44 = vadd.f32 %v3455_v34, %v3454_v3 }
0x4496   :  { %3528 = vrot.lane.b32.xlu1 %v7714_v44, %s6857_s13 }
0x4508   :  { %v3529_v10 = vpop.permute.xlu1 %3528 }
0x4509   :  { %6238 = vmatmul.mubr.msk.f32.vlgmr.msra.gmra.mxu1 %vm110_vm2, %v3529_v10  ;;  %6249 = vmatmul.mubr.msk.f32.vlgmr.msra.gmra.mxu0 %vm110_vm2, %v3529_v10 }
0x450a   :  { %6252 = vmatpush3.msra.mxu1 %v7436_v18  ;;  %6259 = vmatprep.mubr.msk.f32.mxu1 %vm6854_vm1, %v6853_v0 }
0x450b   :  { %6253 = vmatprep.subr.mxu1 %v6853_v0  ;;  %6263 = vmatpush3.msra.mxu0 %v7442_v4 }
0x450c   :  { %6254 = vmatpush3.msra.mxu1 %v7445_v19  ;;  %6264 = vmatprep.subr.mxu0 %v6853_v0 }
0x450d   :  { %6255 = vmatprep.subr.mxu1 %v6853_v0  ;;  %6265 = vmatpush3.msra.mxu0 %v7450_v61 }
0x450e   :  { %6256 = vmatpush3.msra.mxu1 %v7453_v62  ;;  %6266 = vmatprep.subr.mxu0 %v6853_v0 }
0x450f   :  { %6257 = vmatprep.subr.mxu1 %v6853_v0  ;;  %6267 = vmatpush3.msra.mxu0 %v7458_v30 }
0x4510   :  { %6258 = vmatpush3.msra.mxu1 %v7461_v36  ;;  %6268 = vmatprep.subr.mxu0 %v6853_v0 }
0x4511   :  { %6269 = vmatpush3.msra.mxu0 %v7465_v38  ;;  %6270 = vmatprep.mubr.msk.f32.mxu0 %vm6854_vm1, %v6853_v0 }
0x4512   :  { %6273 = vmatprep.subr.mxu1 %v6853_v0  ;;  %6284 = vmatprep.subr.mxu0 %v6853_v0 }
0x45c9   :  { %v3598_v18 = vpop.f32.mrf.mxu1  ;;  %v3694_v4 = vpop.f32.mrf.mxu0 }
0x45ca   :  { %v3599_v19 = vadd.f32 %v3598_v18, %v7691_v42 }
0x45cb   :  { %v6239_v61 = vpop.f32.mrf.mxu1  ;;  %v6250_v62 = vpop.f32.mrf.mxu0 }
0x45cc   :  { %v3602_v30 = vadd.f32 %v7476_v32, %v3599_v19 }
0x45ce   :  { %3610 = vrot.lane.b32.xlu0 %v3602_v30, %s6855_s0  ;;  %v5506_v36 = vmul.f32 -1.442695, %v3602_v30 }
0x45d0   :  { %6612 = vpow2.f32 %v5506_v36  ;;  %v7801_v36 = vld [vmem:[#allocation8 + $0x30] sm:$0xff] }
0x45dd   :  { %v6613_v38 = vpop.eup %6612 }
0x45de   :  { %v3606_v53 = vadd.f32 1.0, %v6613_v38  ;;  %v7805_v38 = vld [vmem:[#allocation8 + $0x28] sm:$0xff] }
0x45e0   :  { %6614 = vrcp.f32 %v3606_v53  ;;  %v7809_v53 = vld [vmem:[#allocation8 + $0x20] sm:$0xff] }
0x45ed   :  { %v6615_v54 = vpop.eup %6614 }
0x45ee   :  { %v3620_v5 = vsub.f32 1.0, %v6615_v54  ;;  %v3626_v43 = vmul.f32 %v6615_v54, %v7626_v13 }
0x4640   :  { %v3611_v55 = vpop.permute.xlu0 %3610 }
0x4641   :  { %v3613_v63 = vmul.f32 %v6615_v54, %v3611_v55  ;;  %v7815_v54 = vld [vmem:[#allocation8 + $0x58] sm:$0xff]  ;;  %v7821_v55 = vld [vmem:[#allocation8 + $0x50] sm:$0xff] }
0x4643   :  { %3615 = vrot.lane.b32.xlu1 %v3613_v63, %s6856_s2  ;;  %v7825_v63 = vld [vmem:[#allocation8 + $0x48] sm:$0xff] }
0x46b5   :  { %v3616_v39 = vpop.permute.xlu1 %3615 }
0x46b6   :  { %v3618_v40 = vadd.f32 %v3616_v39, %v3602_v30  ;;  %v7795_v30 = vld [vmem:[#allocation8 + $0x38] sm:$0xff]  ;;  %v7829_v39 = vld [vmem:[#allocation8 + $0x40] sm:$0xff] }
0x46b8   :  { %6616 = vtanh.f32 %v3618_v40 }
0x46c5   :  { %v6617_v42 = vpop.eup %6616 }
0x46c6   :  { %3622 = vrot.lane.b32.xlu0 %v6617_v42, %s6857_s13 }
0x4738   :  { %v3623_v32 = vpop.permute.xlu0 %3622 }
0x4739   :  { %v3625_v46 = vmul.f32 %v3623_v32, %v3620_v5 }
0x473b   :  { %v7746_v7 = vadd.f32 %v3626_v43, %v3625_v46 }
0x473d   :  { %3699 = vrot.lane.b32.xlu1 %v7746_v7, %s6857_s13 }
0x47af   :  { %v7750_v22 = vpop.permute.xlu1 %3699 }
0x47b0   :  { %6260 = vmatmul.mubr.msk.f32.vlgmr.msra.gmra.mxu1 %vm110_vm2, %v7750_v22 }
0x47b1   :  { %6274 = vmatpush3.msra.mxu1 %v7491_v48  ;;  %6281 = vmatprep.mubr.msk.f32.mxu1 %vm6854_vm1, %v6853_v0 }
0x47b2   :  { %6275 = vmatprep.subr.mxu1 %v6853_v0 }
0x47b3   :  { %6276 = vmatpush3.msra.mxu1 %v7497_v31 }
0x47b4   :  { %6277 = vmatprep.subr.mxu1 %v6853_v0 }
0x47b5   :  { %6278 = vmatpush3.msra.mxu1 %v7501_v1 }
0x47b6   :  { %6279 = vmatprep.subr.mxu1 %v6853_v0 }
0x47b7   :  { %6280 = vmatpush3.msra.mxu1 %v7505_v25 }
0x47b8   :  { %6295 = vmatprep.subr.mxu1 %v6853_v0 }
0x4870   :  { %v3769_v13 = vpop.f32.mrf.mxu1 }
0x4871   :  { %v3770_v28 = vadd.f32 %v3769_v13, %v3694_v4 }
0x4872   :  { %v6261_v48 = vpop.f32.mrf.mxu1 }
0x4873   :  { %v3773_v33 = vadd.f32 %v7512_v16, %v3770_v28 }
0x4875   :  { %3781 = vrot.lane.b32.xlu0 %v3773_v33, %s6855_s0  ;;  %v5509_v12 = vmul.f32 -1.442695, %v3773_v33 }
0x4877   :  { %6618 = vpow2.f32 %v5509_v12 }
0x4884   :  { %v6619_v31 = vpop.eup %6618 }
0x4885   :  { %v3777_v2 = vadd.f32 1.0, %v6619_v31 }
0x4887   :  { %6620 = vrcp.f32 %v3777_v2 }
0x4894   :  { %v6621_v37 = vpop.eup %6620 }
0x4895   :  { %v3791_v20 = vsub.f32 1.0, %v6621_v37  ;;  %v3797_v57 = vmul.f32 %v6621_v37, %v7714_v44 }
0x48e7   :  { %v3782_v1 = vpop.permute.xlu0 %3781 }
0x48e8   :  { %v3784_v14 = vmul.f32 %v6621_v37, %v3782_v1 }
0x48ea   :  { %3786 = vrot.lane.b32.xlu1 %v3784_v14, %s6856_s2 }
0x495c   :  { %v3787_v25 = vpop.permute.xlu1 %3786 }
0x495d   :  { %v3789_v17 = vadd.f32 %v3787_v25, %v3773_v33 }
0x495f   :  { %6622 = vtanh.f32 %v3789_v17 }
0x496c   :  { %v6623_v41 = vpop.eup %6622 }
0x496d   :  { %3793 = vrot.lane.b32.xlu0 %v6623_v41, %s6857_s13  ;;  %v7844_v41 = vld [vmem:[#allocation10 + $0x18] sm:$0xff] }
0x49df   :  { %v3794_v16 = vpop.permute.xlu0 %3793 }
0x49e0   :  { %v3796_v47 = vmul.f32 %v3794_v16, %v3791_v20  ;;  %v7850_v20 = vld [vmem:[#allocation10 + $0x10] sm:$0xff]  ;;  %v7854_v16 = vld [vmem:[#allocation10 + $0x8] sm:$0xff] }
0x49e2   :  { %v3798_v59 = vadd.f32 %v3797_v57, %v3796_v47  ;;  %v7858_v57 = vld [vmem:[#allocation10] sm:$0xff]  ;;  %v4001_v47 = vld [vmem:[#allocation5 + $0x6] sm:$0x1] }
0x49e4   :  { %3800 = vrot.lane.b32.xlu1 %v3798_v59, %s6857_s13 }
0x4a56   :  { %v3801_v35 = vpop.permute.xlu1 %3800 }
0x4a57   :  { %6271 = vmatmul.mubr.msk.f32.vlgmr.msra.gmra.mxu0 %vm110_vm2, %v3801_v35 }
0x4a58   :  { %6285 = vmatpush3.msra.mxu0 %v7771_v26  ;;  %6292 = vmatprep.mubr.msk.f32.mxu0 %vm6854_vm1, %v6853_v0 }
0x4a59   :  { %6286 = vmatprep.subr.mxu0 %v6853_v0 }
0x4a5a   :  { %6287 = vmatpush3.msra.mxu0 %v7777_v24 }
0x4a5b   :  { %6288 = vmatprep.subr.mxu0 %v6853_v0 }
0x4a5c   :  { %6289 = vmatpush3.msra.mxu0 %v7781_v27 }
0x4a5d   :  { %6290 = vmatprep.subr.mxu0 %v6853_v0 }
0x4a5e   :  { %6291 = vmatpush3.msra.mxu0 %v7785_v11 }
0x4a5f   :  { %6306 = vmatprep.subr.mxu0 %v6853_v0 }
0x4b17   :  { %v3870_v60 = vpop.f32.mrf.mxu0 }
0x4b18   :  { %v3871_v29 = vadd.f32 %v7534_v9, %v3870_v60 }
0x4b19   :  { %v6272_v50 = vpop.f32.mrf.mxu0 }
0x4b1a   :  { %3881 = vrot.lane.b32.xlu0 %v3871_v29, %s6855_s0  ;;  %v5511_v8 = vmul.f32 -1.442695, %v3871_v29 }
0x4b1c   :  { %6624 = vpow2.f32 %v5511_v8 }
0x4b29   :  { %v6625_v52 = vpop.eup %6624 }
0x4b2a   :  { %v3877_v23 = vadd.f32 1.0, %v6625_v52 }
0x4b2c   :  { %6626 = vrcp.f32 %v3877_v23 }
0x4b39   :  { %v6627_v51 = vpop.eup %6626 }
0x4b3a   :  { %v3891_v9 = vsub.f32 1.0, %v6627_v51  ;;  %v3897_v4 = vmul.f32 %v6627_v51, %v3798_v59 }
0x4b8c   :  { %v3882_v6 = vpop.permute.xlu0 %3881 }
0x4b8d   :  { %v3884_v34 = vmul.f32 %v6627_v51, %v3882_v6 }
0x4b8f   :  { %3886 = vrot.lane.b32.xlu1 %v3884_v34, %s6856_s2 }
0x4c01   :  { %v3887_v3 = vpop.permute.xlu1 %3886 }
0x4c02   :  { %v3889_v44 = vadd.f32 %v3887_v3, %v3871_v29 }
0x4c04   :  { %6628 = vtanh.f32 %v3889_v44 }
0x4c11   :  { %v6629_v10 = vpop.eup %6628 }
0x4c12   :  { %3893 = vrot.lane.b32.xlu0 %v6629_v10, %s6857_s13 }
0x4c84   :  { %v3894_v18 = vpop.permute.xlu0 %3893 }
0x4c85   :  { %v3896_v19 = vmul.f32 %v3894_v18, %v3891_v9 }
0x4c87   :  { %v3898_v61 = vadd.f32 %v3897_v4, %v3896_v19 }
0x4c89   :  { %3900 = vrot.lane.b32.xlu1 %v3898_v61, %s6857_s13 }
0x4cfb   :  { %v3901_v62 = vpop.permute.xlu1 %3900 }
0x4cfc   :  { %6282 = vmatmul.mubr.msk.f32.vlgmr.msra.gmra.mxu1 %vm110_vm2, %v3901_v62  ;;  %v7878_v62 = vld [vmem:[#allocation8 + $0x78] sm:$0xff] }
0x4cfd   :  { %6296 = vmatpush3.msra.mxu1 %v7795_v30  ;;  %6303 = vmatprep.mubr.msk.f32.mxu1 %vm6854_vm1, %v6853_v0 }
0x4cfe   :  { %6297 = vmatprep.subr.mxu1 %v6853_v0 }
0x4cff   :  { %6298 = vmatpush3.msra.mxu1 %v7801_v36 }
0x4d00   :  { %6299 = vmatprep.subr.mxu1 %v6853_v0 }
0x4d01   :  { %6300 = vmatpush3.msra.mxu1 %v7805_v38 }
0x4d02   :  { %6301 = vmatprep.subr.mxu1 %v6853_v0 }
0x4d03   :  { %6302 = vmatpush3.msra.mxu1 %v7809_v53 }
0x4d04   :  { %6304 = vmatmul.mubr.msk.f32.vlgmr.msra.gmra.mxu1 %vm110_vm2, %v7750_v22  ;;  %6317 = vmatprep.subr.mxu1 %v6853_v0 }
0x4d05   :  { %6318 = vmatpush3.msra.mxu1 %v7815_v54  ;;  %6325 = vmatprep.mubr.msk.f32.mxu1 %vm6854_vm1, %v6853_v0 }
0x4d06   :  { %6319 = vmatprep.subr.mxu1 %v6853_v0 }
0x4d07   :  { %6320 = vmatpush3.msra.mxu1 %v7821_v55 }
0x4d08   :  { %6321 = vmatprep.subr.mxu1 %v6853_v0 }
0x4d09   :  { %6322 = vmatpush3.msra.mxu1 %v7825_v63 }
0x4d0a   :  { %6323 = vmatprep.subr.mxu1 %v6853_v0 }
0x4d0b   :  { %6324 = vmatpush3.msra.mxu1 %v7829_v39 }
0x4d0c   :  { %6339 = vmatprep.subr.mxu1 %v6853_v0 }
0x4dbc   :  { %v3970_v40 = vpop.f32.mrf.mxu1 }
0x4dbd   :  { %v3971_v42 = vadd.f32 %v7567_v21, %v3970_v40  ;;  %v7881_v40 = vld [vmem:[#allocation10 + $0x30] sm:$0xff] }
0x4dbe   :  { %v6283_v5 = vpop.f32.mrf.mxu1 }
0x4dbf   :  { %3981 = vrot.lane.b32.xlu0 %v3971_v42, %s6855_s0  ;;  %v5513_v46 = vmul.f32 -1.442695, %v3971_v42  ;;  %v7889_v5 = vld [vmem:[#allocation10 + $0x28] sm:$0xff] }
0x4dc1   :  { %6630 = vpow2.f32 %v5513_v46  ;;  %v7897_v46 = vld [vmem:[#allocation10 + $0x20] sm:$0xff] }
0x4dc4   :  { %v7835_v32 = vpop.f32.mrf.mxu1 }
0x4dc6   :  { %v6305_v43 = vpop.f32.mrf.mxu1 }
0x4dc7   :  { %v7894_v43 = vld [vmem:[#allocation8 + $0x68] sm:$0xff] }
0x4dce   :  { %v6631_v22 = vpop.eup %6630 }
0x4dcf   :  { %v3977_v13 = vadd.f32 1.0, %v6631_v22  ;;  %v7901_v22 = vld [vmem:[#allocation8 + $0x60] sm:$0xff] }
0x4dd1   :  { %6632 = vrcp.f32 %v3977_v13 }
0x4dde   :  { %v6633_v28 = vpop.eup %6632 }
0x4ddf   :  { %v3991_v2 = vsub.f32 1.0, %v6633_v28  ;;  %v3997_v1 = vmul.f32 %v6633_v28, %v3898_v61  ;;  %v7872_v61 = vld [vmem:[#allocation10 + $0x38] sm:$0xff] }
0x4e31   :  { %v3982_v48 = vpop.permute.xlu0 %3981 }
0x4e32   :  { %v3984_v33 = vmul.f32 %v6633_v28, %v3982_v48 }
0x4e34   :  { %3986 = vrot.lane.b32.xlu1 %v3984_v33, %s6856_s2 }
0x4ea6   :  { %v3987_v12 = vpop.permute.xlu1 %3986 }
0x4ea7   :  { %v3989_v31 = vadd.f32 %v3987_v12, %v3971_v42  ;;  %v7886_v42 = vld [vmem:[#allocation8 + $0x70] sm:$0xff] }
0x4ea9   :  { %6634 = vtanh.f32 %v3989_v31  ;;  %v7912_v31 = vld [vmem:[%s8118_s3] sm:$0x1] }
0x4eb6   :  { %v6635_v21 = vpop.eup %6634 }
0x4eb7   :  { %3993 = vrot.lane.b32.xlu0 %v6635_v21, %s6857_s13 }
0x4f29   :  { %v3994_v37 = vpop.permute.xlu0 %3993 }
0x4f2a   :  { %v3996_v14 = vmul.f32 %v3994_v37, %v3991_v2 }
0x4f2c   :  { %v7839_v25 = vadd.f32 %v3997_v1, %v3996_v14 }
0x4f2e   :  { %4003 = vrot.lane.b32.xlu1 %v7839_v25, %s6857_s13 }
0x4fa0   :  { %v4004_v17 = vpop.permute.xlu1 %4003 }
0x4fa1   :  { %6293 = vmatmul.mubr.msk.f32.vlgmr.msra.gmra.mxu0 %vm110_vm2, %v4004_v17 }
0x4fa2   :  { %6307 = vmatpush3.msra.mxu0 %v7844_v41  ;;  %6314 = vmatprep.mubr.msk.f32.mxu0 %vm6854_vm1, %v6853_v0 }
0x4fa3   :  { %6308 = vmatprep.subr.mxu0 %v6853_v0 }
0x4fa4   :  { %6309 = vmatpush3.msra.mxu0 %v7850_v20 }
0x4fa5   :  { %6310 = vmatprep.subr.mxu0 %v6853_v0 }
0x4fa6   :  { %6311 = vmatpush3.msra.mxu0 %v7854_v16 }
0x4fa7   :  { %6312 = vmatprep.subr.mxu0 %v6853_v0 }
0x4fa8   :  { %6313 = vmatpush3.msra.mxu0 %v7858_v57 }
0x4fa9   :  { %6328 = vmatprep.subr.mxu0 %v6853_v0 }
0x5061   :  { %v4073_v59 = vpop.f32.mrf.mxu0 }
0x5062   :  { %v4077_v35 = vadd.f32 %v4073_v59, %v4001_v47 }
0x5063   :  { %v6294_v60 = vpop.f32.mrf.mxu0 }
0x5064   :  { %4085 = vrot.lane.b32.xlu0 %v4077_v35, %s6855_s0  ;;  %v5515_v29 = vmul.f32 -1.442695, %v4077_v35 }
0x5066   :  { %6636 = vpow2.f32 %v5515_v29 }
0x5073   :  { %v6637_v50 = vpop.eup %6636 }
0x5074   :  { %v4081_v8 = vadd.f32 1.0, %v6637_v50 }
0x5076   :  { %6638 = vrcp.f32 %v4081_v8 }
0x5083   :  { %v6639_v52 = vpop.eup %6638 }
0x5084   :  { %v4095_v44 = vsub.f32 1.0, %v6639_v52  ;;  %v4101_v9 = vmul.f32 %v6639_v52, %v7839_v25 }
0x50d6   :  { %v4086_v23 = vpop.permute.xlu0 %4085 }
0x50d7   :  { %v4088_v51 = vmul.f32 %v6639_v52, %v4086_v23 }
0x50d9   :  { %4090 = vrot.lane.b32.xlu1 %v4088_v51, %s6856_s2  ;;  %v7927_v51 = vld [vmem:[#allocation8 + $0x98] sm:$0xff] }
0x514b   :  { %v4091_v6 = vpop.permute.xlu1 %4090 }
0x514c   :  { %v4093_v34 = vadd.f32 %v4091_v6, %v4077_v35  ;;  %v7937_v6 = vld [vmem:[#allocation8 + $0x88] sm:$0xff] }
0x514e   :  { %6640 = vtanh.f32 %v4093_v34  ;;  %v7941_v34 = vld [vmem:[#allocation8 + $0x80] sm:$0xff] }
0x515b   :  { %v6641_v3 = vpop.eup %6640 }
0x515c   :  { %4097 = vrot.lane.b32.xlu0 %v6641_v3, %s6857_s13 }
0x51ce   :  { %v4098_v10 = vpop.permute.xlu0 %4097 }
0x51cf   :  { %v4100_v18 = vmul.f32 %v4098_v10, %v4095_v44 }
0x51d1   :  { %v7866_v4 = vadd.f32 %v4101_v9, %v4100_v18  ;;  %v7948_v9 = vld [vmem:[%s8118_s3 + $0x1] sm:$0x1] }
0x51d3   :  { %4174 = vrot.lane.b32.xlu1 %v7866_v4, %s6857_s13 }
0x5245   :  { %v4175_v19 = vpop.permute.xlu1 %4174 }
0x5246   :  { %6315 = vmatmul.mubr.msk.f32.vlgmr.msra.gmra.mxu0 %vm110_vm2, %v4175_v19  ;;  %6326 = vmatmul.mubr.msk.f32.vlgmr.msra.gmra.mxu1 %vm110_vm2, %v4175_v19 }
0x5247   :  { %6329 = vmatpush3.msra.mxu0 %v7872_v61  ;;  %6336 = vmatprep.mubr.msk.f32.mxu0 %vm6854_vm1, %v6853_v0 }
0x5248   :  { %6330 = vmatprep.subr.mxu0 %v6853_v0  ;;  %6340 = vmatpush3.msra.mxu1 %v7878_v62 }
0x5249   :  { %6331 = vmatpush3.msra.mxu0 %v7881_v40  ;;  %6341 = vmatprep.subr.mxu1 %v6853_v0 }
0x524a   :  { %6332 = vmatprep.subr.mxu0 %v6853_v0  ;;  %6342 = vmatpush3.msra.mxu1 %v7886_v42 }
0x524b   :  { %6333 = vmatpush3.msra.mxu0 %v7889_v5  ;;  %6343 = vmatprep.subr.mxu1 %v6853_v0 }
0x524c   :  { %6334 = vmatprep.subr.mxu0 %v6853_v0  ;;  %6344 = vmatpush3.msra.mxu1 %v7894_v43 }
0x524d   :  { %6335 = vmatpush3.msra.mxu0 %v7897_v46  ;;  %6345 = vmatprep.subr.mxu1 %v6853_v0 }
0x524e   :  { %6346 = vmatpush3.msra.mxu1 %v7901_v22  ;;  %6347 = vmatprep.mubr.msk.f32.mxu1 %vm6854_vm1, %v6853_v0 }
0x524f   :  { %6350 = vmatprep.subr.mxu0 %v6853_v0  ;;  %6361 = vmatprep.subr.mxu1 %v6853_v0 }
0x5306   :  { %v4244_v13 = vpop.f32.mrf.mxu0  ;;  %v4340_v28 = vpop.f32.mrf.mxu1 }
0x5307   :  { %v4245_v48 = vadd.f32 %v4244_v13, %v7835_v32 }
0x5308   :  { %v6316_v33 = vpop.f32.mrf.mxu0  ;;  %v6327_v12 = vpop.f32.mrf.mxu1 }
0x5309   :  { %v4248_v21 = vadd.f32 %v7912_v31, %v4245_v48 }
0x530b   :  { %4256 = vrot.lane.b32.xlu0 %v4248_v21, %s6855_s0  ;;  %v5518_v2 = vmul.f32 -1.442695, %v4248_v21 }
0x530d   :  { %6642 = vpow2.f32 %v5518_v2 }
0x531a   :  { %v6643_v37 = vpop.eup %6642 }
0x531b   :  { %v4252_v1 = vadd.f32 1.0, %v6643_v37 }
0x531d   :  { %6644 = vrcp.f32 %v4252_v1 }
0x532a   :  { %v6645_v14 = vpop.eup %6644 }
0x532b   :  { %v4266_v60 = vsub.f32 1.0, %v6645_v14  ;;  %v4272_v50 = vmul.f32 %v6645_v14, %v7746_v7  ;;  %v7933_v7 = vld [vmem:[#allocation8 + $0x90] sm:$0xff] }
0x537d   :  { %v4257_v17 = vpop.permute.xlu0 %4256 }
0x537e   :  { %v4259_v47 = vmul.f32 %v6645_v14, %v4257_v17 }
0x5380   :  { %4261 = vrot.lane.b32.xlu1 %v4259_v47, %s6856_s2 }
0x53f2   :  { %v4262_v32 = vpop.permute.xlu1 %4261 }
0x53f3   :  { %v4264_v59 = vadd.f32 %v4262_v32, %v4248_v21 }
0x53f5   :  { %6646 = vtanh.f32 %v4264_v59 }
0x5402   :  { %v6647_v35 = vpop.eup %6646 }
0x5403   :  { %4268 = vrot.lane.b32.xlu0 %v6647_v35, %s6857_s13 }
0x5475   :  { %v4269_v29 = vpop.permute.xlu0 %4268 }
0x5476   :  { %v4271_v8 = vmul.f32 %v4269_v29, %v4266_v60 }
0x5478   :  { %v7919_v52 = vadd.f32 %v4272_v50, %v4271_v8 }
0x547a   :  { %4345 = vrot.lane.b32.xlu1 %v7919_v52, %s6857_s13 }
0x54ec   :  { %v7923_v23 = vpop.permute.xlu1 %4345 }
0x54ed   :  { %6337 = vmatmul.mubr.msk.f32.vlgmr.msra.gmra.mxu0 %vm110_vm2, %v7923_v23 }
0x54ee   :  { %6351 = vmatpush3.msra.mxu0 %v7927_v51  ;;  %6358 = vmatprep.mubr.msk.f32.mxu0 %vm6854_vm1, %v6853_v0 }
0x54ef   :  { %6352 = vmatprep.subr.mxu0 %v6853_v0 }
0x54f0   :  { %6353 = vmatpush3.msra.mxu0 %v7933_v7 }
0x54f1   :  { %6354 = vmatprep.subr.mxu0 %v6853_v0 }
0x54f2   :  { %6355 = vmatpush3.msra.mxu0 %v7937_v6 }
0x54f3   :  { %6356 = vmatprep.subr.mxu0 %v6853_v0 }
0x54f4   :  { %6357 = vmatpush3.msra.mxu0 %v7941_v34 }
0x54f5   :  { %6372 = vmatprep.subr.mxu0 %v6853_v0 }
0x55ad   :  { %v4415_v3 = vpop.f32.mrf.mxu0 }
0x55ae   :  { %v4416_v44 = vadd.f32 %v4415_v3, %v4340_v28 }
0x55af   :  { %v6338_v10 = vpop.f32.mrf.mxu0 }
0x55b0   :  { %v4419_v18 = vadd.f32 %v7948_v9, %v4416_v44 }
0x55b2   :  { %4427 = vrot.lane.b32.xlu0 %v4419_v18, %s6855_s0  ;;  %v5521_v19 = vmul.f32 -1.442695, %v4419_v18 }
0x55b4   :  { %6648 = vpow2.f32 %v5521_v19 }
0x55c1   :  { %v6649_v13 = vpop.eup %6648 }
0x55c2   :  { %v4423_v48 = vadd.f32 1.0, %v6649_v13 }
0x55c4   :  { %6650 = vrcp.f32 %v4423_v48 }
0x55d1   :  { %v6651_v33 = vpop.eup %6650 }
0x55d2   :  { %v4437_v1 = vsub.f32 1.0, %v6651_v33  ;;  %v4443_v17 = vmul.f32 %v6651_v33, %v7866_v4 }
0x5624   :  { %v4428_v12 = vpop.permute.xlu0 %4427 }
0x5625   :  { %v4430_v21 = vmul.f32 %v6651_v33, %v4428_v12 }
0x5627   :  { %4432 = vrot.lane.b32.xlu1 %v4430_v21, %s6856_s2 }
0x5699   :  { %v4433_v28 = vpop.permute.xlu1 %4432 }
0x569a   :  { %v4435_v2 = vadd.f32 %v4433_v28, %v4419_v18 }
0x569c   :  { %6652 = vtanh.f32 %v4435_v2 }
0x56a9   :  { %v6653_v37 = vpop.eup %6652 }
0x56aa   :  { %4439 = vrot.lane.b32.xlu0 %v6653_v37, %s6857_s13 }
0x571c   :  { %v4440_v14 = vpop.permute.xlu0 %4439 }
0x571d   :  { %v4442_v47 = vmul.f32 %v4440_v14, %v4437_v1 }
0x571f   :  { %v4444_v32 = vadd.f32 %v4443_v17, %v4442_v47 }
0x5721   :  { %4446 = vrot.lane.b32.xlu1 %v4444_v32, %s6857_s13 }
0x5793   :  { %v4447_v59 = vpop.permute.xlu1 %4446 }
0x5794   :  { %6348 = vmatmul.mubr.msk.f32.vlgmr.msra.gmra.mxu1 %vm110_vm2, %v4447_v59 }
0x5795   :  { %6362 = vmatpush3.msra.mxu1 %v7771_v26  ;;  %6369 = vmatprep.mubr.msk.f32.mxu1 %vm6854_vm1, %v6853_v0  ;;  %v7970_v26 = vld [vmem:[%s8118_s3 + $0x2] sm:$0x1] }
0x5796   :  { %6363 = vmatprep.subr.mxu1 %v6853_v0 }
0x5797   :  { %6364 = vmatpush3.msra.mxu1 %v7777_v24 }
0x5798   :  { %6365 = vmatprep.subr.mxu1 %v6853_v0 }
0x5799   :  { %6366 = vmatpush3.msra.mxu1 %v7781_v27 }
0x579a   :  { %6367 = vmatprep.subr.mxu1 %v6853_v0 }
0x579b   :  { %6368 = vmatpush3.msra.mxu1 %v7785_v11 }
0x579c   :  { %6383 = vmatprep.subr.mxu1 %v6853_v0 }
0x5854   :  { %v4516_v4 = vpop.f32.mrf.mxu1 }
0x5855   :  { %v4517_v35 = vadd.f32 %v7970_v26, %v4516_v4 }
0x5856   :  { %v6349_v60 = vpop.f32.mrf.mxu1 }
0x5857   :  { %4527 = vrot.lane.b32.xlu0 %v4517_v35, %s6855_s0  ;;  %v5523_v24 = vmul.f32 -1.442695, %v4517_v35  ;;  %v4647_v60 = vld [vmem:[#allocation5 + $0x7] sm:$0x1] }
0x5859   :  { %6654 = vpow2.f32 %v5523_v24 }
0x5866   :  { %v6655_v27 = vpop.eup %6654 }
0x5867   :  { %v4523_v29 = vadd.f32 1.0, %v6655_v27 }
0x5869   :  { %6656 = vrcp.f32 %v4523_v29 }
0x5876   :  { %v6657_v50 = vpop.eup %6656 }
0x5877   :  { %v4537_v18 = vsub.f32 1.0, %v6657_v50  ;;  %v4543_v13 = vmul.f32 %v6657_v50, %v4444_v32 }
0x58c9   :  { %v4528_v11 = vpop.permute.xlu0 %4527 }
0x58ca   :  { %v4530_v8 = vmul.f32 %v6657_v50, %v4528_v11 }
0x58cc   :  { %4532 = vrot.lane.b32.xlu1 %v4530_v8, %s6856_s2 }
0x593e   :  { %v4533_v3 = vpop.permute.xlu1 %4532 }
0x593f   :  { %v4535_v44 = vadd.f32 %v4533_v3, %v4517_v35 }
0x5941   :  { %6658 = vtanh.f32 %v4535_v44 }
0x594e   :  { %v6659_v10 = vpop.eup %6658 }
0x594f   :  { %4539 = vrot.lane.b32.xlu0 %v6659_v10, %s6857_s13 }
0x59c1   :  { %v4540_v19 = vpop.permute.xlu0 %4539 }
0x59c2   :  { %v4542_v48 = vmul.f32 %v4540_v19, %v4537_v18 }
0x59c4   :  { %v4544_v33 = vadd.f32 %v4543_v13, %v4542_v48 }
0x59c6   :  { %4546 = vrot.lane.b32.xlu1 %v4544_v33, %s6857_s13 }
0x5a38   :  { %v4547_v12 = vpop.permute.xlu1 %4546 }
0x5a39   :  { %6359 = vmatmul.mubr.msk.f32.vlgmr.msra.gmra.mxu0 %vm110_vm2, %v4547_v12 }
0x5a3a   :  { %6373 = vmatpush3.msra.mxu0 %v7795_v30  ;;  %6380 = vmatprep.mubr.msk.f32.mxu0 %vm6854_vm1, %v6853_v0 }
0x5a3b   :  { %6374 = vmatprep.subr.mxu0 %v6853_v0 }
0x5a3c   :  { %6375 = vmatpush3.msra.mxu0 %v7801_v36  ;;  %v8003_v36 = vld [vmem:[%s8118_s3 + $0x3] sm:$0x1] }
0x5a3d   :  { %6376 = vmatprep.subr.mxu0 %v6853_v0 }
0x5a3e   :  { %6377 = vmatpush3.msra.mxu0 %v7805_v38 }
0x5a3f   :  { %6378 = vmatprep.subr.mxu0 %v6853_v0 }
0x5a40   :  { %6379 = vmatpush3.msra.mxu0 %v7809_v53 }
0x5a41   :  { %6381 = vmatmul.mubr.msk.f32.vlgmr.msra.gmra.mxu0 %vm110_vm2, %v7923_v23  ;;  %6394 = vmatprep.subr.mxu0 %v6853_v0 }
0x5a42   :  { %6395 = vmatpush3.msra.mxu0 %v7815_v54  ;;  %6402 = vmatprep.mubr.msk.f32.mxu0 %vm6854_vm1, %v6853_v0 }
0x5a43   :  { %6396 = vmatprep.subr.mxu0 %v6853_v0 }
0x5a44   :  { %6397 = vmatpush3.msra.mxu0 %v7821_v55 }
0x5a45   :  { %6398 = vmatprep.subr.mxu0 %v6853_v0 }
0x5a46   :  { %6399 = vmatpush3.msra.mxu0 %v7825_v63 }
0x5a47   :  { %6400 = vmatprep.subr.mxu0 %v6853_v0 }
0x5a48   :  { %6401 = vmatpush3.msra.mxu0 %v7829_v39 }
0x5a49   :  { %6416 = vmatprep.subr.mxu0 %v6853_v0 }
0x5af9   :  { %v4616_v30 = vpop.f32.mrf.mxu0 }
0x5afa   :  { %v4617_v38 = vadd.f32 %v8003_v36, %v4616_v30 }
0x5afb   :  { %v6360_v53 = vpop.f32.mrf.mxu0 }
0x5afc   :  { %4627 = vrot.lane.b32.xlu0 %v4617_v38, %s6855_s0  ;;  %v5525_v63 = vmul.f32 -1.442695, %v4617_v38 }
0x5afe   :  { %6660 = vpow2.f32 %v5525_v63 }
0x5b01   :  { %v8007_v54 = vpop.f32.mrf.mxu0 }
0x5b03   :  { %v6382_v55 = vpop.f32.mrf.mxu0 }
0x5b0b   :  { %v6661_v23 = vpop.eup %6660 }
0x5b0c   :  { %v4623_v39 = vadd.f32 1.0, %v6661_v23 }
0x5b0e   :  { %6662 = vrcp.f32 %v4623_v39 }
0x5b1b   :  { %v6663_v21 = vpop.eup %6662 }
0x5b1c   :  { %v4637_v17 = vsub.f32 1.0, %v6663_v21  ;;  %v4643_v32 = vmul.f32 %v6663_v21, %v4544_v33 }
0x5b6e   :  { %v4628_v28 = vpop.permute.xlu0 %4627 }
0x5b6f   :  { %v4630_v2 = vmul.f32 %v6663_v21, %v4628_v28 }
0x5b71   :  { %4632 = vrot.lane.b32.xlu1 %v4630_v2, %s6856_s2 }
0x5be3   :  { %v4633_v37 = vpop.permute.xlu1 %4632 }
0x5be4   :  { %v4635_v1 = vadd.f32 %v4633_v37, %v4617_v38 }
0x5be6   :  { %6664 = vtanh.f32 %v4635_v1 }
0x5bf3   :  { %v6665_v14 = vpop.eup %6664 }
0x5bf4   :  { %4639 = vrot.lane.b32.xlu0 %v6665_v14, %s6857_s13 }
0x5c66   :  { %v4640_v47 = vpop.permute.xlu0 %4639 }
0x5c67   :  { %v4642_v59 = vmul.f32 %v4640_v47, %v4637_v17 }
0x5c69   :  { %v8011_v4 = vadd.f32 %v4643_v32, %v4642_v59 }
0x5c6b   :  { %4649 = vrot.lane.b32.xlu1 %v8011_v4, %s6857_s13 }
0x5cdd   :  { %v4650_v35 = vpop.permute.xlu1 %4649 }
0x5cde   :  { %6370 = vmatmul.mubr.msk.f32.vlgmr.msra.gmra.mxu1 %vm110_vm2, %v4650_v35 }
0x5cdf   :  { %6384 = vmatpush3.msra.mxu1 %v7844_v41  ;;  %6391 = vmatprep.mubr.msk.f32.mxu1 %vm6854_vm1, %v6853_v0 }
0x5ce0   :  { %6385 = vmatprep.subr.mxu1 %v6853_v0 }
0x5ce1   :  { %6386 = vmatpush3.msra.mxu1 %v7850_v20 }
0x5ce2   :  { %6387 = vmatprep.subr.mxu1 %v6853_v0 }
0x5ce3   :  { %6388 = vmatpush3.msra.mxu1 %v7854_v16 }
0x5ce4   :  { %6389 = vmatprep.subr.mxu1 %v6853_v0 }
0x5ce5   :  { %6390 = vmatpush3.msra.mxu1 %v7858_v57 }
0x5ce6   :  { %6405 = vmatprep.subr.mxu1 %v6853_v0 }
0x5d9e   :  { %v4719_v24 = vpop.f32.mrf.mxu1 }
0x5d9f   :  { %v4723_v41 = vadd.f32 %v4719_v24, %v4647_v60 }
0x5da0   :  { %v6371_v27 = vpop.f32.mrf.mxu1 }
0x5da1   :  { %4731 = vrot.lane.b32.xlu0 %v4723_v41, %s6855_s0  ;;  %v5527_v29 = vmul.f32 -1.442695, %v4723_v41 }
0x5da3   :  { %6666 = vpow2.f32 %v5527_v29 }
0x5db0   :  { %v6667_v50 = vpop.eup %6666 }
0x5db1   :  { %v4727_v20 = vadd.f32 1.0, %v6667_v50 }
0x5db3   :  { %6668 = vrcp.f32 %v4727_v20 }
0x5dc0   :  { %v6669_v11 = vpop.eup %6668 }
0x5dc1   :  { %v4741_v10 = vsub.f32 1.0, %v6669_v11  ;;  %v4747_v19 = vmul.f32 %v6669_v11, %v8011_v4 }
0x5e13   :  { %v4732_v8 = vpop.permute.xlu0 %4731 }
0x5e14   :  { %v4734_v16 = vmul.f32 %v6669_v11, %v4732_v8 }
0x5e16   :  { %4736 = vrot.lane.b32.xlu1 %v4734_v16, %s6856_s2 }
0x5e88   :  { %v4737_v3 = vpop.permute.xlu1 %4736 }
0x5e89   :  { %v4739_v57 = vadd.f32 %v4737_v3, %v4723_v41 }
0x5e8b   :  { %6670 = vtanh.f32 %v4739_v57 }
0x5e98   :  { %v6671_v44 = vpop.eup %6670 }
0x5e99   :  { %4743 = vrot.lane.b32.xlu0 %v6671_v44, %s6857_s13 }
0x5f0b   :  { %v4744_v18 = vpop.permute.xlu0 %4743 }
0x5f0c   :  { %v4746_v13 = vmul.f32 %v4744_v18, %v4741_v10 }
0x5f0e   :  { %v8030_v48 = vadd.f32 %v4747_v19, %v4746_v13 }
0x5f10   :  { %4820 = vrot.lane.b32.xlu1 %v8030_v48, %s6857_s13 }
0x5f82   :  { %v4821_v33 = vpop.permute.xlu1 %4820 }
0x5f83   :  { %6392 = vmatmul.mubr.msk.f32.vlgmr.msra.gmra.mxu1 %vm110_vm2, %v4821_v33  ;;  %6403 = vmatmul.mubr.msk.f32.vlgmr.msra.gmra.mxu0 %vm110_vm2, %v4821_v33 }
0x5f84   :  { %6406 = vmatpush3.msra.mxu1 %v7872_v61  ;;  %6413 = vmatprep.mubr.msk.f32.mxu1 %vm6854_vm1, %v6853_v0 }
0x5f85   :  { %6407 = vmatprep.subr.mxu1 %v6853_v0  ;;  %6417 = vmatpush3.msra.mxu0 %v7878_v62 }
0x5f86   :  { %6408 = vmatpush3.msra.mxu1 %v7881_v40  ;;  %6418 = vmatprep.subr.mxu0 %v6853_v0 }
0x5f87   :  { %6409 = vmatprep.subr.mxu1 %v6853_v0  ;;  %6419 = vmatpush3.msra.mxu0 %v7886_v42 }
0x5f88   :  { %6410 = vmatpush3.msra.mxu1 %v7889_v5  ;;  %6420 = vmatprep.subr.mxu0 %v6853_v0 }
0x5f89   :  { %6411 = vmatprep.subr.mxu1 %v6853_v0  ;;  %6421 = vmatpush3.msra.mxu0 %v7894_v43 }
0x5f8a   :  { %6412 = vmatpush3.msra.mxu1 %v7897_v46  ;;  %6422 = vmatprep.subr.mxu0 %v6853_v0 }
0x5f8b   :  { %6423 = vmatpush3.msra.mxu0 %v7901_v22  ;;  %6424 = vmatprep.mubr.msk.f32.mxu0 %vm6854_vm1, %v6853_v0 }
0x5f8c   :  { %6427 = vmatprep.subr.mxu1 %v6853_v0  ;;  %6438 = vmatprep.subr.mxu0 %v6853_v0 }
0x6043   :  { %v4890_v61 = vpop.f32.mrf.mxu1  ;;  %v4986_v62 = vpop.f32.mrf.mxu0 }
0x6044   :  { %v4891_v40 = vadd.f32 %v4890_v61, %v8007_v54 }
0x6045   :  { %v6393_v42 = vpop.f32.mrf.mxu1  ;;  %v6404_v5 = vpop.f32.mrf.mxu0 }
0x6046   :  { %v4894_v43 = vadd.f32 %v7912_v31, %v4891_v40 }
0x6048   :  { %4902 = vrot.lane.b32.xlu0 %v4894_v43, %s6855_s0  ;;  %v5530_v46 = vmul.f32 -1.442695, %v4894_v43 }
0x604a   :  { %6672 = vpow2.f32 %v5530_v46 }
0x6057   :  { %v6673_v22 = vpop.eup %6672 }
0x6058   :  { %v4898_v12 = vadd.f32 1.0, %v6673_v22 }
0x605a   :  { %6674 = vrcp.f32 %v4898_v12 }
0x6067   :  { %v6675_v30 = vpop.eup %6674 }
0x6068   :  { %v4912_v23 = vsub.f32 1.0, %v6675_v30  ;;  %v4918_v39 = vmul.f32 %v6675_v30, %v7919_v52 }
0x60ba   :  { %v4903_v38 = vpop.permute.xlu0 %4902 }
0x60bb   :  { %v4905_v53 = vmul.f32 %v6675_v30, %v4903_v38 }
0x60bd   :  { %4907 = vrot.lane.b32.xlu1 %v4905_v53, %s6856_s2 }
0x612f   :  { %v4908_v55 = vpop.permute.xlu1 %4907 }
0x6130   :  { %v4910_v63 = vadd.f32 %v4908_v55, %v4894_v43 }
0x6132   :  { %6676 = vtanh.f32 %v4910_v63 }
0x613f   :  { %v6677_v54 = vpop.eup %6676 }
0x6140   :  { %4914 = vrot.lane.b32.xlu0 %v6677_v54, %s6857_s13  ;;  %v5293_v54 = vrot.slane %v7403_v49, 6 }
0x61b2   :  { %v4915_v31 = vpop.permute.xlu0 %4914 }
0x61b3   :  { %v4917_v21 = vmul.f32 %v4915_v31, %v4912_v23  ;;  %v5295_v23 = vrot.slane %v7575_v15, 5 }
0x61b5   :  { %v4919_v28 = vadd.f32 %v4918_v39, %v4917_v21  ;;  %v5297_v21 = vrot.slane %v7695_v45, 4  ;;  %v5334_v45 = vld [vmem:[%s8120_s5] sm:$0xf]  ;;  %s6859_s5 = smov [#allocation11]  }
0x61b7   :  { %4991 = vrot.lane.b32.xlu1 %v4919_v28, %s6857_s13 }
0x6229   :  { %v4992_v2 = vpop.permute.xlu1 %4991 }
0x622a   :  { %5331 = vst.msk [vmem:[#allocation3] sm:$0x1] %vm67_vm0, %v4992_v2  ;;  %6414 = vmatmul.mubr.msk.f32.vlgmr.msra.gmra.mxu1 %vm110_vm2, %v4992_v2  ;;  %v5299_v2 = vrot.slane %v7839_v25, 3 }
0x622b   :  { %6428 = vmatpush3.msra.mxu1 %v7927_v51  ;;  %6435 = vmatprep.mubr.msk.f32.mxu1 %vm6854_vm1, %v6853_v0 }
0x622c   :  { %6429 = vmatprep.subr.mxu1 %v6853_v0 }
0x622d   :  { %6430 = vmatpush3.msra.mxu1 %v7933_v7 }
0x622e   :  { %6431 = vmatprep.subr.mxu1 %v6853_v0 }
0x622f   :  { %6432 = vmatpush3.msra.mxu1 %v7937_v6 }
0x6230   :  { %6433 = vmatprep.subr.mxu1 %v6853_v0 }
0x6231   :  { %6434 = vmatpush3.msra.mxu1 %v7941_v34 }
0x62ea   :  { %v5061_v52 = vpop.f32.mrf.mxu1 }
0x62eb   :  { %v5062_v37 = vadd.f32 %v5061_v52, %v4986_v62 }
0x62ec   :  { %v6415_v1 = vpop.f32.mrf.mxu1 }
0x62ed   :  { %v5065_v51 = vadd.f32 %v7948_v9, %v5062_v37 }
0x62ef   :  { %5073 = vrot.lane.b32.xlu0 %v5065_v51, %s6855_s0  ;;  %v5533_v14 = vmul.f32 -1.442695, %v5065_v51 }
0x62f1   :  { %6678 = vpow2.f32 %v5533_v14 }
0x62fe   :  { %v6679_v17 = vpop.eup %6678 }
0x62ff   :  { %v5069_v47 = vadd.f32 1.0, %v6679_v17 }
0x6301   :  { %6680 = vrcp.f32 %v5069_v47  ;;  %v6858_v47 = vmov 0  }
0x6302   :  { %6455 = vset.pattern.permute.xlu0 %v6858_v47 }
0x630e   :  { %v6681_v7 = vpop.eup %6680 }
0x630f   :  { %v5083_v60 = vsub.f32 1.0, %v6681_v7  ;;  %v5089_v24 = vmul.f32 %v6681_v7, %v8030_v48 }
0x6361   :  { %v5074_v32 = vpop.permute.xlu0 %5073 }
0x6362   :  { %v5076_v59 = vmul.f32 %v6681_v7, %v5074_v32 }
0x6364   :  { %5078 = vrot.lane.b32.xlu1 %v5076_v59, %s6856_s2  ;;  %v5332_v59 = vld [vmem:[%s8119_s4] sm:$0xf] }
0x63d6   :  { %v5079_v6 = vpop.permute.xlu1 %5078 }
0x63d7   :  { %v5081_v35 = vadd.f32 %v5079_v6, %v5065_v51 }
0x63d9   :  { %6682 = vtanh.f32 %v5081_v35 }
0x63e6   :  { %v6683_v34 = vpop.eup %6682 }
0x63e7   :  { %5085 = vrot.lane.b32.xlu0 %v6683_v34, %s6857_s13 }
0x6459   :  { %v5086_v9 = vpop.permute.xlu0 %5085 }
0x645a   :  { %v5088_v41 = vmul.f32 %v5086_v9, %v5083_v60 }
0x645c   :  { %v5090_v27 = vadd.f32 %v5089_v24, %v5088_v41 }
0x645e   :  { %5092 = vrot.lane.b32.xlu1 %v5090_v27, %s6857_s13 }
0x64d0   :  { %v5093_v29 = vpop.permute.xlu1 %5092 }
0x64d1   :  { %6425 = vmatmul.mubr.msk.f32.vlgmr.msra.gmra.mxu0 %vm110_vm2, %v5093_v29 }
0x64d2   :  { %6440 = vmatprep.mubr.msk.f32.mxu0 %vm6854_vm1, %v6853_v0 }
0x6591   :  { %v5162_v50 = vpop.f32.mrf.mxu0 }
0x6592   :  { %v5163_v20 = vadd.f32 %v7970_v26, %v5162_v50 }
0x6593   :  { %v6426_v11 = vpop.f32.mrf.mxu0 }
0x6594   :  { %5173 = vrot.lane.b32.xlu0 %v5163_v20, %s6855_s0  ;;  %v5535_v8 = vmul.f32 -1.442695, %v5163_v20 }
0x6596   :  { %6684 = vpow2.f32 %v5535_v8 }
0x65a3   :  { %v6685_v16 = vpop.eup %6684 }
0x65a4   :  { %v5169_v3 = vadd.f32 1.0, %v6685_v16 }
0x65a6   :  { %6686 = vrcp.f32 %v5169_v3 }
0x65b3   :  { %v6687_v57 = vpop.eup %6686 }
0x65b4   :  { %v5183_v26 = vsub.f32 1.0, %v6687_v57  ;;  %v5189_v48 = vmul.f32 %v6687_v57, %v5090_v27 }
0x6606   :  { %v5174_v44 = vpop.permute.xlu0 %5173 }
0x6607   :  { %v5176_v10 = vmul.f32 %v6687_v57, %v5174_v44 }
0x6609   :  { %5178 = vrot.lane.b32.xlu1 %v5176_v10, %s6856_s2 }
0x667b   :  { %v5179_v18 = vpop.permute.xlu1 %5178 }
0x667c   :  { %v5181_v19 = vadd.f32 %v5179_v18, %v5163_v20 }
0x667e   :  { %6688 = vtanh.f32 %v5181_v19 }
0x668b   :  { %v6689_v0 = vpop.eup %6688 }
0x668c   :  { %5185 = vrot.lane.b32.xlu0 %v6689_v0, %s6857_s13 }
0x66fe   :  { %v5186_v13 = vpop.permute.xlu0 %5185 }
0x66ff   :  { %v5188_v33 = vmul.f32 %v5186_v13, %v5183_v26 }
0x6701   :  { %v5190_v61 = vadd.f32 %v5189_v48, %v5188_v33 }
0x6703   :  { %5192 = vrot.lane.b32.xlu1 %v5190_v61, %s6857_s13 }
0x6775   :  { %v5193_v62 = vpop.permute.xlu1 %5192 }
0x6776   :  { %6436 = vmatmul.mubr.msk.f32.vlgmr.msra.gmra.mxu1 %vm110_vm2, %v5193_v62 }
0x6836   :  { %v5262_v40 = vpop.f32.mrf.mxu1 }
0x6837   :  { %v5263_v42 = vadd.f32 %v8003_v36, %v5262_v40  ;;  %v5291_v36 = vrot.slane %v7259_v56, 7  ;;  %v5301_v56 = vrot.slane %v8011_v4, 2 }
0x6838   :  { %v6437_v5 = vpop.f32.mrf.mxu1 }
0x6839   :  { %5273 = vrot.lane.b32.xlu0 %v5263_v42, %s6855_s0  ;;  %v5537_v43 = vmul.f32 -1.442695, %v5263_v42  ;;  %v5307_v39 = vsel %vm5306_vm3, %v7139_v58, %v5291_v36 }
0x683a   :  { %v5309_v1 = vsel %vm5308_vm4, %v5307_v39, %v5293_v54 }
0x683b   :  { %6690 = vpow2.f32 %v5537_v43  ;;  %v5311_v49 = vsel %vm5310_vm5, %v5309_v1, %v5295_v23 }
0x683c   :  { %v5313_v15 = vsel %vm5312_vm6, %v5311_v49, %v5297_v21 }
0x683d   :  { %v5315_v58 = vsel %vm5314_vm7, %v5313_v15, %v5299_v2 }
0x683e   :  { %v5317_v17 = vsel %vm5316_vm8, %v5315_v58, %v5301_v56 }
0x6848   :  { %v6691_v46 = vpop.eup %6690 }
0x6849   :  { %v5269_v22 = vadd.f32 1.0, %v6691_v46 }
0x684b   :  { %6692 = vrcp.f32 %v5269_v22 }
0x6858   :  { %v6693_v12 = vpop.eup %6692 }
0x6859   :  { %v5283_v31 = vsub.f32 1.0, %v6693_v12  ;;  %v5289_v52 = vmul.f32 %v6693_v12, %v5190_v61 }
0x68ab   :  { %v5274_v30 = vpop.permute.xlu0 %5273 }
0x68ac   :  { %v5276_v38 = vmul.f32 %v6693_v12, %v5274_v30 }
0x68ae   :  { %5278 = vrot.lane.b32.xlu1 %v5276_v38, %s6856_s2 }
0x6920   :  { %v5279_v53 = vpop.permute.xlu1 %5278 }
0x6921   :  { %v5281_v55 = vadd.f32 %v5279_v53, %v5263_v42 }
0x6923   :  { %6694 = vtanh.f32 %v5281_v55 }
0x6930   :  { %v6695_v63 = vpop.eup %6694 }
0x6931   :  { %5285 = vrot.lane.b32.xlu0 %v6695_v63, %s6857_s13 }
0x6935   :  { %5337 = vperm.xlu0 %6455, %v5334_v45  }
0x69a3   :  { %v5286_v28 = vpop.permute.xlu0 %5285 }
0x69a4   :  { %v5288_v37 = vmul.f32 %v5286_v28, %v5283_v31 }
0x69a6   :  { %v5290_v51 = vadd.f32 %v5289_v52, %v5288_v37 }
0x69a8   :  { %v5304_v14 = vrot.slane %v5290_v51, 1 }
0x69aa   :  { %v5319_v25 = vsel %vm5318_vm9, %v5317_v17, %v5304_v14 }
0x69ab   :  { %5321 = vrot.lane.b32.xlu1 %v5319_v25, %s6857_s13 }
0x69af   :  { %5325 = vrot.lane.b32.xlu1 %v5290_v51, %s6857_s13  ;;  %s5425_s13 = sshll.u32 %s6859_s5, 4  ;;  %s5426_s13 = int_to_ptr.vmem [resolvable:$true] %s5425_s13 }
0x69b0   :  { %v5338_v6 = vpop.permute.xlu0 %5337  ;;  %s6822_s15 = scalar_lea.vmem %s5426_s13, 64  ;;  %p6827_p2 = scmp.lt.s32.totalorder %s5426_s13, %s5426_s13 }
0x69b1   :  { %p6823_p1 = scmp.ne.s32.totalorder %s5426_s13, %s6822_s15  ;;  %p6828_p3 = scmp.lt.s32.totalorder %s6822_s15, %s6822_s15 }
0x69b3   :  { %p6829_p4 = por %p6828_p3, %p6827_p2 }
0x69b5   :  { %p6830_p5 = pnand %p6829_p4, %p6823_p1 }
0x6a1d   :  { %v5322_v4 = vpop.permute.xlu1 %5321 }
0x6a1e   :  { %5324 = vst.msk [vmem:[#allocation4] sm:$0xff] %vm110_vm2, %v5322_v4 }
0x6a21   :  { %v5326_v7 = vpop.permute.xlu1 %5325 }
0x6a22   :  { %5329 = vst.msk [vmem:[#allocation2] sm:$0x1] %vm67_vm0, %v5326_v7 }
0x6a25   :  { %v5333_v32 = vld [vmem:[#allocation4] sm:$0xff] }
0x6a26   :  { %6439 = vmatpush3.xpose.msk.msra.mxu0 %vm110_vm2, %v5333_v32 }
0x6a29   :  { %6441 = vmatmul.mubr.msk.f32.vlgmr.msra.gmra.mxu0 %vm110_vm2, %v5332_v59 }
0x6ae9   :  { %v5412_v35 = vpop.f32.mrf.mxu0 }
0x6aea   :  { %v5413_v34 = vadd.f32 %v5412_v35, %v5338_v6 }
0x6aeb   :  { %v6442_v60 = vpop.f32.mrf.mxu0 }
0x6aec   :  { %6696 = vtanh.f32 %v5413_v34 }
0x6af9   :  { %v6697_v9 = vpop.eup %6696 }
0x6afa   :  { %5418 = vst.msk [vmem:[#allocation11] sm:$0xf] %vm5417_vm10, %v6697_v9 }
0x6afb   :  { %6833 = shalt.err (!%p6830_p5)
}
0x6afc   :  { %5428 = dma.vmem_to_hbm [thread:$0]  %s5426_s13, 64, %s8121_s6, [#allocation7]  }
0x6afd   :  { %6846 = dma.done.wait [#allocation7], 64  }
0x6afe   :  { %6847 = vsyncadd [#allocation7], 4294967232 }
0x6aff   :  { %5432 = vsyncpa [#allocation6], 1 }
0x6b00   :  { %5433 = vsyncpa [#allocation9], 1 }
0x6b01   :  { %5434 = vsyncpa [#allocation7], 1 }

</bundles_post_ra>
